<compile_context>
chip_gen: v5e
topology: v5e:2x2
jax: 0.10.0
libtpu: 0.0.40
codegen_flags: <defaults>
</compile_context>

<pallas_src>
import functools

import jax
import jax.numpy as jnp
from jax import lax
from jax.experimental import pallas as pl
from jax.experimental.pallas import tpu as pltpu

LANE = 128


def _sep_conv_kernel(x_ref, wdw_ref, bdw_ref, wpw_ref, bpw_ref, o_ref, *,
                     k, s, Ho, Wo):
    # x_ref:   (Hp, Wp, Cin)   zero-padded input slab for one batch element
    # wdw_ref: (k, k, 1, Cin)  depthwise weights, channel-last
    # bdw_ref: (1, Cin)        depthwise bias
    # wpw_ref: (Cin, Cout)     pointwise weights
    # bpw_ref: (1, Cout)       pointwise bias
    # o_ref:   (Ho, Wo, Cout)  output slab for one batch element
    cin = x_ref.shape[-1]

    # Depthwise conv: k*k vectorized shifted-slice FMAs, f32 accumulation.
    dw = jnp.zeros((Ho, Wo, cin), jnp.float32)
    for kh in range(k):
        for kw in range(k):
            if s == 1:
                win = x_ref[kh:kh + Ho, kw:kw + Wo, :]
            else:
                win = x_ref[pl.ds(kh, Ho, stride=s), pl.ds(kw, Wo, stride=s), :]
            dw = dw + win.astype(jnp.float32) * wdw_ref[kh, kw].astype(jnp.float32)
    dw = dw + bdw_ref[...].astype(jnp.float32)            # (Ho, Wo, Cin)

    # Pointwise 1x1 conv: single MXU matmul over the flattened spatial dim.
    out = lax.dot_general(
        dw.reshape(Ho * Wo, cin), wpw_ref[...].astype(jnp.float32),
        dimension_numbers=(((1,), (0,)), ((), ())),
        preferred_element_type=jnp.float32,
        precision=lax.Precision.HIGHEST)
    out = out + bpw_ref[...].astype(jnp.float32)          # (Ho*Wo, Cout)
    o_ref[...] = out.reshape(Ho, Wo, -1).astype(o_ref.dtype)


def separable_conv2d(x_nchw, dw_weight, dw_bias, pw_weight, pw_bias, *,
                     stride=1, padding=0):
    """SeparableConv2d.forward: depthwise Conv2d then pointwise 1x1 Conv2d.

    x_nchw:    (N, Cin, H, W)
    dw_weight: (Cin, 1, k, k)   PyTorch depthwise layout (groups=Cin)
    dw_bias:   (Cin,)
    pw_weight: (Cout, Cin, 1, 1)
    pw_bias:   (Cout,)
    Returns    (N, Cout, Ho, Wo) in NCHW.
    """
    N, Cin, H, W = x_nchw.shape
    Cout = pw_weight.shape[0]
    k = dw_weight.shape[-1]
    s, p = stride, padding
    Ho = (H + 2 * p - k) // s + 1
    Wo = (W + 2 * p - k) // s + 1
    Hp = (Ho - 1) * s + k                   # input rows/cols actually used
    Wp = (Wo - 1) * s + k
    Cin_p = -(-Cin // LANE) * LANE          # pad channels to 128 lanes
    Cout_p = -(-Cout // LANE) * LANE

    # NCHW -> NHWC; fuse the spatial zero-pad and channel pad into ONE jnp.pad.
    x = jnp.transpose(x_nchw, (0, 2, 3, 1))
    x = jnp.pad(x, ((0, 0), (p, p), (p, p), (0, Cin_p - Cin)))
    x = x[:, :Hp, :Wp, :]                   # drop rows/cols no window touches

    # Weights channel-last + lane padding (zero channels contribute zero).
    wdw = jnp.transpose(dw_weight, (2, 3, 1, 0))            # (k, k, 1, Cin)
    wdw = jnp.pad(wdw, ((0, 0), (0, 0), (0, 0), (0, Cin_p - Cin)))
    bdw = jnp.pad(dw_bias, (0, Cin_p - Cin)).reshape(1, Cin_p)
    wpw = jnp.transpose(pw_weight[:, :, 0, 0], (1, 0))      # (Cin, Cout)
    wpw = jnp.pad(wpw, ((0, Cin_p - Cin), (0, Cout_p - Cout)))
    bpw = jnp.pad(pw_bias, (0, Cout_p - Cout)).reshape(1, Cout_p)

    kernel = functools.partial(_sep_conv_kernel, k=k, s=s, Ho=Ho, Wo=Wo)

    flops = 2 * N * Ho * Wo * Cin_p * (k * k + Cout_p)
    bytes_accessed = 4 * (x.size + N * Ho * Wo * Cout_p
                          + wdw.size + bdw.size + wpw.size + bpw.size)

    out_nhwc = pl.pallas_call(
        kernel,
        out_shape=jax.ShapeDtypeStruct((N, Ho, Wo, Cout_p), x_nchw.dtype),
        grid_spec=pltpu.PrefetchScalarGridSpec(
            num_scalar_prefetch=0,
            grid=(N,),
            in_specs=[
                pl.BlockSpec((None, Hp, Wp, Cin_p), lambda n: (n, 0, 0, 0)),
                pl.BlockSpec((k, k, 1, Cin_p), lambda n: (0, 0, 0, 0)),
                pl.BlockSpec((1, Cin_p), lambda n: (0, 0)),
                pl.BlockSpec((Cin_p, Cout_p), lambda n: (0, 0)),
                pl.BlockSpec((1, Cout_p), lambda n: (0, 0)),
            ],
            out_specs=pl.BlockSpec((None, Ho, Wo, Cout_p),
                                   lambda n: (n, 0, 0, 0)),
        ),
        compiler_params=pltpu.CompilerParams(
            dimension_semantics=("parallel",)),
        cost_estimate=pl.CostEstimate(
            flops=flops, transcendentals=0, bytes_accessed=bytes_accessed),
    )(x, wdw, bdw, wpw, bpw)

    # Drop channel padding, NHWC -> NCHW.
    return jnp.transpose(out_nhwc[..., :Cout], (0, 3, 1, 2))


if __name__ == "__main__":
    key = jax.random.PRNGKey(0)
    k1, k2, k3, k4, k5 = jax.random.split(key, 5)

    N, Cin, H, W = 2, 4, 16, 16
    Cout, ksz, stride, pad = 8, 3, 1, 1

    x = jax.random.normal(k1, (N, Cin, H, W), jnp.float32)
    dw_w = jax.random.normal(k2, (Cin, 1, ksz, ksz), jnp.float32) * 0.3
    dw_b = jax.random.normal(k3, (Cin,), jnp.float32) * 0.1
    pw_w = jax.random.normal(k4, (Cout, Cin, 1, 1), jnp.float32) * 0.3
    pw_b = jax.random.normal(k5, (Cout,), jnp.float32) * 0.1

    out = separable_conv2d(x, dw_w, dw_b, pw_w, pw_b, stride=stride, padding=pad)
    out = jax.block_until_ready(out)

    # Pure-JAX reference of the PyTorch forward.
    dw_ref = lax.conv_general_dilated(
        x, dw_w, (stride, stride), [(pad, pad), (pad, pad)],
        feature_group_count=Cin,
        dimension_numbers=("NCHW", "OIHW", "NCHW"),
        precision=lax.Precision.HIGHEST) + dw_b.reshape(1, Cin, 1, 1)
    ref = lax.conv_general_dilated(
        dw_ref, pw_w, (1, 1), [(0, 0), (0, 0)],
        dimension_numbers=("NCHW", "OIHW", "NCHW"),
        precision=lax.Precision.HIGHEST) + pw_b.reshape(1, Cout, 1, 1)

    assert out.shape == ref.shape == (N, Cout, H, W), (out.shape, ref.shape)
    assert jnp.allclose(out, ref, rtol=1e-4, atol=1e-4), \
        "Pallas output does not match reference"
    print("KERNEL_OK")
</pallas_src>

<mosaic_0001>
module attributes {stable_mosaic.version = 11 : i64} {
  func.func @_sep_conv_kernel(%arg0: i32, %arg1: memref<1x18x18x128xf32, #tpu.memory_space<vmem>>, %arg2: memref<3x3x1x128xf32, #tpu.memory_space<vmem>>, %arg3: memref<1x128xf32, #tpu.memory_space<vmem>>, %arg4: memref<128x128xf32, #tpu.memory_space<vmem>>, %arg5: memref<1x128xf32, #tpu.memory_space<vmem>>, %arg6: memref<1x16x16x128xf32, #tpu.memory_space<vmem>>) attributes {dimension_semantics = [#tpu.dimension_semantics<parallel>], iteration_bounds = array<i64: 2>, scalar_prefetch = 0 : i64, scratch_operands = 0 : i64, tpu.core_type = #tpu.core_type<tc>, window_params = [{transform_indices = @transform_0, window_bounds = array<i64: 1, 18, 18, 128>}, {pipeline_mode = #tpu.pipeline_mode<synchronous>, transform_indices = @transform_1, window_bounds = array<i64: 3, 3, 1, 128>}, {pipeline_mode = #tpu.pipeline_mode<synchronous>, transform_indices = @transform_2, window_bounds = array<i64: 1, 128>}, {pipeline_mode = #tpu.pipeline_mode<synchronous>, transform_indices = @transform_3, window_bounds = array<i64: 128, 128>}, {pipeline_mode = #tpu.pipeline_mode<synchronous>, transform_indices = @transform_4, window_bounds = array<i64: 1, 128>}, {transform_indices = @transform_5, window_bounds = array<i64: 1, 16, 16, 128>}]} {
    %cst = arith.constant 0.000000e+00 : f32
    %0 = vector.broadcast %cst : f32 to vector<16x16x128xf32>
    %c0 = arith.constant 0 : index
    %c0_0 = arith.constant 0 : index
    %c0_1 = arith.constant 0 : index
    %c0_2 = arith.constant 0 : index
    %1 = vector.load %arg1[%c0, %c0_0, %c0_1, %c0_2] : memref<1x18x18x128xf32, #tpu.memory_space<vmem>>, vector<1x16x16x128xf32>
    %2 = vector.shape_cast %1 : vector<1x16x16x128xf32> to vector<16x16x128xf32>
    %c0_3 = arith.constant 0 : index
    %c0_4 = arith.constant 0 : index
    %c0_5 = arith.constant 0 : index
    %c0_6 = arith.constant 0 : index
    %3 = vector.load %arg2[%c0_3, %c0_4, %c0_5, %c0_6] : memref<3x3x1x128xf32, #tpu.memory_space<vmem>>, vector<1x1x1x128xf32>
    %4 = vector.shape_cast %3 : vector<1x1x1x128xf32> to vector<1x128xf32>
    %5 = vector.shape_cast %4 : vector<1x128xf32> to vector<1x1x128xf32>
    %6 = vector.broadcast %5 : vector<1x1x128xf32> to vector<16x16x128xf32>
    %7 = arith.mulf %2, %6 : vector<16x16x128xf32>
    %8 = arith.addf %0, %7 : vector<16x16x128xf32>
    %c0_7 = arith.constant 0 : index
    %c0_8 = arith.constant 0 : index
    %c1 = arith.constant 1 : index
    %c0_9 = arith.constant 0 : index
    %9 = vector.load %arg1[%c0_7, %c0_8, %c1, %c0_9] : memref<1x18x18x128xf32, #tpu.memory_space<vmem>>, vector<1x16x16x128xf32>
    %10 = vector.shape_cast %9 : vector<1x16x16x128xf32> to vector<16x16x128xf32>
    %c0_10 = arith.constant 0 : index
    %c1_11 = arith.constant 1 : index
    %c0_12 = arith.constant 0 : index
    %c0_13 = arith.constant 0 : index
    %11 = vector.load %arg2[%c0_10, %c1_11, %c0_12, %c0_13] : memref<3x3x1x128xf32, #tpu.memory_space<vmem>>, vector<1x1x1x128xf32>
    %12 = vector.shape_cast %11 : vector<1x1x1x128xf32> to vector<1x128xf32>
    %13 = vector.shape_cast %12 : vector<1x128xf32> to vector<1x1x128xf32>
    %14 = vector.broadcast %13 : vector<1x1x128xf32> to vector<16x16x128xf32>
    %15 = arith.mulf %10, %14 : vector<16x16x128xf32>
    %16 = arith.addf %8, %15 : vector<16x16x128xf32>
    %c0_14 = arith.constant 0 : index
    %c0_15 = arith.constant 0 : index
    %c2 = arith.constant 2 : index
    %c0_16 = arith.constant 0 : index
    %17 = vector.load %arg1[%c0_14, %c0_15, %c2, %c0_16] : memref<1x18x18x128xf32, #tpu.memory_space<vmem>>, vector<1x16x16x128xf32>
    %18 = vector.shape_cast %17 : vector<1x16x16x128xf32> to vector<16x16x128xf32>
    %c0_17 = arith.constant 0 : index
    %c2_18 = arith.constant 2 : index
    %c0_19 = arith.constant 0 : index
    %c0_20 = arith.constant 0 : index
    %19 = vector.load %arg2[%c0_17, %c2_18, %c0_19, %c0_20] : memref<3x3x1x128xf32, #tpu.memory_space<vmem>>, vector<1x1x1x128xf32>
    %20 = vector.shape_cast %19 : vector<1x1x1x128xf32> to vector<1x128xf32>
    %21 = vector.shape_cast %20 : vector<1x128xf32> to vector<1x1x128xf32>
    %22 = vector.broadcast %21 : vector<1x1x128xf32> to vector<16x16x128xf32>
    %23 = arith.mulf %18, %22 : vector<16x16x128xf32>
    %24 = arith.addf %16, %23 : vector<16x16x128xf32>
    %c0_21 = arith.constant 0 : index
    %c1_22 = arith.constant 1 : index
    %c0_23 = arith.constant 0 : index
    %c0_24 = arith.constant 0 : index
    %25 = vector.load %arg1[%c0_21, %c1_22, %c0_23, %c0_24] : memref<1x18x18x128xf32, #tpu.memory_space<vmem>>, vector<1x16x16x128xf32>
    %26 = vector.shape_cast %25 : vector<1x16x16x128xf32> to vector<16x16x128xf32>
    %c1_25 = arith.constant 1 : index
    %c0_26 = arith.constant 0 : index
    %c0_27 = arith.constant 0 : index
    %c0_28 = arith.constant 0 : index
    %27 = vector.load %arg2[%c1_25, %c0_26, %c0_27, %c0_28] : memref<3x3x1x128xf32, #tpu.memory_space<vmem>>, vector<1x1x1x128xf32>
    %28 = vector.shape_cast %27 : vector<1x1x1x128xf32> to vector<1x128xf32>
    %29 = vector.shape_cast %28 : vector<1x128xf32> to vector<1x1x128xf32>
    %30 = vector.broadcast %29 : vector<1x1x128xf32> to vector<16x16x128xf32>
    %31 = arith.mulf %26, %30 : vector<16x16x128xf32>
    %32 = arith.addf %24, %31 : vector<16x16x128xf32>
    %c0_29 = arith.constant 0 : index
    %c1_30 = arith.constant 1 : index
    %c1_31 = arith.constant 1 : index
    %c0_32 = arith.constant 0 : index
    %33 = vector.load %arg1[%c0_29, %c1_30, %c1_31, %c0_32] : memref<1x18x18x128xf32, #tpu.memory_space<vmem>>, vector<1x16x16x128xf32>
    %34 = vector.shape_cast %33 : vector<1x16x16x128xf32> to vector<16x16x128xf32>
    %c1_33 = arith.constant 1 : index
    %c1_34 = arith.constant 1 : index
    %c0_35 = arith.constant 0 : index
    %c0_36 = arith.constant 0 : index
    %35 = vector.load %arg2[%c1_33, %c1_34, %c0_35, %c0_36] : memref<3x3x1x128xf32, #tpu.memory_space<vmem>>, vector<1x1x1x128xf32>
    %36 = vector.shape_cast %35 : vector<1x1x1x128xf32> to vector<1x128xf32>
    %37 = vector.shape_cast %36 : vector<1x128xf32> to vector<1x1x128xf32>
    %38 = vector.broadcast %37 : vector<1x1x128xf32> to vector<16x16x128xf32>
    %39 = arith.mulf %34, %38 : vector<16x16x128xf32>
    %40 = arith.addf %32, %39 : vector<16x16x128xf32>
    %c0_37 = arith.constant 0 : index
    %c1_38 = arith.constant 1 : index
    %c2_39 = arith.constant 2 : index
    %c0_40 = arith.constant 0 : index
    %41 = vector.load %arg1[%c0_37, %c1_38, %c2_39, %c0_40] : memref<1x18x18x128xf32, #tpu.memory_space<vmem>>, vector<1x16x16x128xf32>
    %42 = vector.shape_cast %41 : vector<1x16x16x128xf32> to vector<16x16x128xf32>
    %c1_41 = arith.constant 1 : index
    %c2_42 = arith.constant 2 : index
    %c0_43 = arith.constant 0 : index
    %c0_44 = arith.constant 0 : index
    %43 = vector.load %arg2[%c1_41, %c2_42, %c0_43, %c0_44] : memref<3x3x1x128xf32, #tpu.memory_space<vmem>>, vector<1x1x1x128xf32>
    %44 = vector.shape_cast %43 : vector<1x1x1x128xf32> to vector<1x128xf32>
    %45 = vector.shape_cast %44 : vector<1x128xf32> to vector<1x1x128xf32>
    %46 = vector.broadcast %45 : vector<1x1x128xf32> to vector<16x16x128xf32>
    %47 = arith.mulf %42, %46 : vector<16x16x128xf32>
    %48 = arith.addf %40, %47 : vector<16x16x128xf32>
    %c0_45 = arith.constant 0 : index
    %c2_46 = arith.constant 2 : index
    %c0_47 = arith.constant 0 : index
    %c0_48 = arith.constant 0 : index
    %49 = vector.load %arg1[%c0_45, %c2_46, %c0_47, %c0_48] : memref<1x18x18x128xf32, #tpu.memory_space<vmem>>, vector<1x16x16x128xf32>
    %50 = vector.shape_cast %49 : vector<1x16x16x128xf32> to vector<16x16x128xf32>
    %c2_49 = arith.constant 2 : index
    %c0_50 = arith.constant 0 : index
    %c0_51 = arith.constant 0 : index
    %c0_52 = arith.constant 0 : index
    %51 = vector.load %arg2[%c2_49, %c0_50, %c0_51, %c0_52] : memref<3x3x1x128xf32, #tpu.memory_space<vmem>>, vector<1x1x1x128xf32>
    %52 = vector.shape_cast %51 : vector<1x1x1x128xf32> to vector<1x128xf32>
    %53 = vector.shape_cast %52 : vector<1x128xf32> to vector<1x1x128xf32>
    %54 = vector.broadcast %53 : vector<1x1x128xf32> to vector<16x16x128xf32>
    %55 = arith.mulf %50, %54 : vector<16x16x128xf32>
    %56 = arith.addf %48, %55 : vector<16x16x128xf32>
    %c0_53 = arith.constant 0 : index
    %c2_54 = arith.constant 2 : index
    %c1_55 = arith.constant 1 : index
    %c0_56 = arith.constant 0 : index
    %57 = vector.load %arg1[%c0_53, %c2_54, %c1_55, %c0_56] : memref<1x18x18x128xf32, #tpu.memory_space<vmem>>, vector<1x16x16x128xf32>
    %58 = vector.shape_cast %57 : vector<1x16x16x128xf32> to vector<16x16x128xf32>
    %c2_57 = arith.constant 2 : index
    %c1_58 = arith.constant 1 : index
    %c0_59 = arith.constant 0 : index
    %c0_60 = arith.constant 0 : index
    %59 = vector.load %arg2[%c2_57, %c1_58, %c0_59, %c0_60] : memref<3x3x1x128xf32, #tpu.memory_space<vmem>>, vector<1x1x1x128xf32>
    %60 = vector.shape_cast %59 : vector<1x1x1x128xf32> to vector<1x128xf32>
    %61 = vector.shape_cast %60 : vector<1x128xf32> to vector<1x1x128xf32>
    %62 = vector.broadcast %61 : vector<1x1x128xf32> to vector<16x16x128xf32>
    %63 = arith.mulf %58, %62 : vector<16x16x128xf32>
    %64 = arith.addf %56, %63 : vector<16x16x128xf32>
    %c0_61 = arith.constant 0 : index
    %c2_62 = arith.constant 2 : index
    %c2_63 = arith.constant 2 : index
    %c0_64 = arith.constant 0 : index
    %65 = vector.load %arg1[%c0_61, %c2_62, %c2_63, %c0_64] : memref<1x18x18x128xf32, #tpu.memory_space<vmem>>, vector<1x16x16x128xf32>
    %66 = vector.shape_cast %65 : vector<1x16x16x128xf32> to vector<16x16x128xf32>
    %c2_65 = arith.constant 2 : index
    %c2_66 = arith.constant 2 : index
    %c0_67 = arith.constant 0 : index
    %c0_68 = arith.constant 0 : index
    %67 = vector.load %arg2[%c2_65, %c2_66, %c0_67, %c0_68] : memref<3x3x1x128xf32, #tpu.memory_space<vmem>>, vector<1x1x1x128xf32>
    %68 = vector.shape_cast %67 : vector<1x1x1x128xf32> to vector<1x128xf32>
    %69 = vector.shape_cast %68 : vector<1x128xf32> to vector<1x1x128xf32>
    %70 = vector.broadcast %69 : vector<1x1x128xf32> to vector<16x16x128xf32>
    %71 = arith.mulf %66, %70 : vector<16x16x128xf32>
    %72 = arith.addf %64, %71 : vector<16x16x128xf32>
    %c0_69 = arith.constant 0 : index
    %c0_70 = arith.constant 0 : index
    %73 = vector.load %arg3[%c0_69, %c0_70] : memref<1x128xf32, #tpu.memory_space<vmem>>, vector<1x128xf32>
    %74 = vector.shape_cast %73 : vector<1x128xf32> to vector<1x1x128xf32>
    %75 = vector.broadcast %74 : vector<1x1x128xf32> to vector<16x16x128xf32>
    %76 = arith.addf %72, %75 : vector<16x16x128xf32>
    %77 = vector.shape_cast %76 : vector<16x16x128xf32> to vector<256x128xf32>
    %c0_71 = arith.constant 0 : index
    %c0_72 = arith.constant 0 : index
    %78 = vector.load %arg4[%c0_71, %c0_72] : memref<128x128xf32, #tpu.memory_space<vmem>>, vector<128x128xf32>
    %cst_73 = arith.constant dense<0.000000e+00> : vector<256x128xf32>
    %79 = tpu.matmul %77, %78, %cst_73 {dimension_numbers = #tpu.dot_dimension_numbers<[1], [0], [0], [1], [0, 0, 1, 1], [], []>, precision = #tpu.contract_precision<fp32>} : vector<256x128xf32>, vector<128x128xf32>, vector<256x128xf32> -> vector<256x128xf32>
    %c0_74 = arith.constant 0 : index
    %c0_75 = arith.constant 0 : index
    %80 = vector.load %arg5[%c0_74, %c0_75] : memref<1x128xf32, #tpu.memory_space<vmem>>, vector<1x128xf32>
    %81 = vector.broadcast %80 : vector<1x128xf32> to vector<256x128xf32>
    %82 = arith.addf %79, %81 : vector<256x128xf32>
    %83 = vector.shape_cast %82 : vector<256x128xf32> to vector<16x16x128xf32>
    %c0_76 = arith.constant 0 : index
    %c0_77 = arith.constant 0 : index
    %c0_78 = arith.constant 0 : index
    %c0_79 = arith.constant 0 : index
    %84 = vector.load %arg6[%c0_76, %c0_77, %c0_78, %c0_79] : memref<1x16x16x128xf32, #tpu.memory_space<vmem>>, vector<1x16x16x128xf32>
    %85 = vector.shape_cast %84 : vector<1x16x16x128xf32> to vector<16x16x128xf32>
    %86 = vector.shape_cast %83 : vector<16x16x128xf32> to vector<1x16x16x128xf32>
    tpu.vector_store %arg6[%c0_76, %c0_77, %c0_78, %c0_79], %86 {strides = array<i32>} : memref<1x16x16x128xf32, #tpu.memory_space<vmem>>, vector<1x16x16x128xf32>,
    return
  }
  func.func @transform_0(%arg0: i32) -> (i32, i32, i32, i32) {
    %c0_i32 = arith.constant 0 : i32
    %c0_i32_0 = arith.constant 0 : i32
    %c0_i32_1 = arith.constant 0 : i32
    %c0_i32_2 = arith.constant 0 : i32
    return %arg0, %c0_i32, %c0_i32_0, %c0_i32_1 : i32, i32, i32, i32
  }
  func.func @transform_1(%arg0: i32) -> (i32, i32, i32, i32) {
    %c0_i32 = arith.constant 0 : i32
    %c0_i32_0 = arith.constant 0 : i32
    %c0_i32_1 = arith.constant 0 : i32
    %c0_i32_2 = arith.constant 0 : i32
    %c0_i32_3 = arith.constant 0 : i32
    return %c0_i32, %c0_i32_0, %c0_i32_1, %c0_i32_2 : i32, i32, i32, i32
  }
  func.func @transform_2(%arg0: i32) -> (i32, i32) {
    %c0_i32 = arith.constant 0 : i32
    %c0_i32_0 = arith.constant 0 : i32
    %c0_i32_1 = arith.constant 0 : i32
    return %c0_i32, %c0_i32_0 : i32, i32
  }
  func.func @transform_3(%arg0: i32) -> (i32, i32) {
    %c0_i32 = arith.constant 0 : i32
    %c0_i32_0 = arith.constant 0 : i32
    %c0_i32_1 = arith.constant 0 : i32
    return %c0_i32, %c0_i32_0 : i32, i32
  }
  func.func @transform_4(%arg0: i32) -> (i32, i32) {
    %c0_i32 = arith.constant 0 : i32
    %c0_i32_0 = arith.constant 0 : i32
    %c0_i32_1 = arith.constant 0 : i32
    return %c0_i32, %c0_i32_0 : i32, i32
  }
  func.func @transform_5(%arg0: i32) -> (i32, i32, i32, i32) {
    %c0_i32 = arith.constant 0 : i32
    %c0_i32_0 = arith.constant 0 : i32
    %c0_i32_1 = arith.constant 0 : i32
    %c0_i32_2 = arith.constant 0 : i32
    return %arg0, %c0_i32, %c0_i32_0, %c0_i32_1 : i32, i32, i32, i32
  }
}

</mosaic_0001>

<bundles_post_ra>
// kernel: tpu_custom_call.1
= control target key start
LH: loop header
LB: loop body
LE: loop exit
PB: predicated region body
PF: predicated region fallthrough
CT: control target
= control target key end

     0   :  { %10 = vsyncpa [#allocation3], 0  ;;  %s5182_s0 = inlined_call_operand.vmem [shape: f32[2,18,18,128], index: 0, kind: input, shape index: {}]   ;;  %s5183_s1 = inlined_call_operand.vmem [shape: f32[3,3,1,128], index: 1, kind: input, shape index: {}]   ;;  %s5184_s2 = inlined_call_operand.vmem [shape: f32[1,128], index: 2, kind: input, shape index: {}]   ;;  %s5185_s3 = inlined_call_operand.vmem [shape: f32[128,128], index: 3, kind: input, shape index: {}]   ;;  %s5186_s4 = inlined_call_operand.vmem [shape: f32[1,128], index: 4, kind: input, shape index: {}]   ;;  %s5187_s5 = inlined_call_operand.hbm [shape: f32[2,16,16,128], index: 5, kind: output, shape index: {}]  }
   0x1   :  { %12 = vsyncpa [#allocation3 + $0x1], 0  ;;  %s3004_s18 = smov 0   ;;  %s3006_s19 = smov 0  }
   0x2   :  { %s3008_s20 = smov 0   ;;  %s3010_s21 = smov 0  }
   0x3 LB: > { %s3025_s22 = sadd.s32 4294967295, %s2970_s21   ;;  %s2601_s23 = sadd.s32 4294967294, %s2970_s21   ;;  %s2970_s21 = sphi %s3010_s21, %s5549_s21   ;;  %s2966_s20 = sphi %s3008_s20, %s5548_s20   ;;  %s2962_s19 = sphi %s3006_s19, %s5547_s19   ;;  %s2958_s18 = sphi %s3004_s18, %s5546_s18  }
   0x4   : > { %s3029_s24 = sadd.s32 1, %s2970_s21   ;;  %s135_s25 = sadd.s32 1, %s2966_s20 }
   0x5   : > { %s132_s26 = ssub.s32 %s2970_s21, %s3029_s24  ;;  %p145_p0 = scmp.ne.s32.totalorder %s2966_s20, %s2962_s19 }
   0x6   : > { %p133_p1 = scmp.eq.s32.totalorder %s132_s26, 0  ;;  %p146_p2 = scmp.eq.s32.totalorder %s3025_s22, 1 }
   0x7   : > { %p151_p3 = scmp.ne.s32.totalorder %s2962_s19, %s2958_s18  ;;  %p152_p4 = scmp.eq.s32.totalorder %s2601_s23, 1 }
   0x8   : > { %s3040_s27 = scalar_select %p133_p1, %s2966_s20, %s135_s25  }
   0x9   : > { %p3042_p5 = por %p146_p2, %p145_p0  ;;  %p3046_p6 = por %p152_p4, %p151_p3 }
   0xa   : > { %p2604_p7 = scmp.ge.s32.totalorder %s2970_s21, 1  ;;  %p190_p8 = scmp.lt.s32.totalorder %s2970_s21, 3 }
   0xc   : > { %p191_p9 = pnand %p2604_p7, %p190_p8 }
   0xe   : > { %194 = sbr.rel (%p191_p9) target bundleno = 644 (0x284), region = 40 }
  0x13   : > { %v1184_v0 = vld [vmem:[%s5185_s3 + $0x78] sm:$0xff]  ;;  %v1183_v1 = vld [vmem:[%s5185_s3 + $0x70] sm:$0xff]  ;;  %v1182_v2 = vld [vmem:[%s5185_s3 + $0x68] sm:$0xff]  ;;  %p218_p10 = scmp.lt.s32.totalorder %s3025_s22, 1  ;;  %s215_s6 = sand.u32 1, %s2962_s19  }
  0x14   : > { %v3062_v3 = vand.u32 4294901760, %v1184_v0  ;;  %v3064_v4 = vand.u32 4294901760, %v1183_v1  ;;  %v3066_v5 = vand.u32 4294901760, %v1182_v2  ;;  %v1181_v6 = vld [vmem:[%s5185_s3 + $0x60] sm:$0xff]  ;;  %v1180_v7 = vld [vmem:[%s5185_s3 + $0x58] sm:$0xff]  ;;  %v1179_v8 = vld [vmem:[%s5185_s3 + $0x50] sm:$0xff] }
  0x15   : > { %v3077_v9 = vand.u32 4294901760, %v1181_v6  ;;  %v3079_v10 = vand.u32 4294901760, %v1180_v7  ;;  %v3081_v11 = vand.u32 4294901760, %v1179_v8  ;;  %v1178_v12 = vld [vmem:[%s5185_s3 + $0x48] sm:$0xff]  ;;  %v1177_v13 = vld [vmem:[%s5185_s3 + $0x40] sm:$0xff]  ;;  %s3105_s30 = scalar_select %p218_p10, %s3025_s22, 1 }
  0x16   : > { %2813 = vmatpush.msra.mxu2 %v3062_v3  ;;  %v3091_v14 = vsub.f32 %v1184_v0, %v3062_v3  ;;  %v3094_v15 = vsub.f32 %v1183_v1, %v3064_v4  ;;  %v3097_v16 = vsub.f32 %v1182_v2, %v3066_v5  ;;  %1190 = vmatpush.msra.mxu0 %v3062_v3  ;;  %v3100_v17 = vand.u32 4294901760, %v1178_v12  ;;  %v1176_v21 = vld [vmem:[%s5185_s3 + $0x38] sm:$0xff]  ;;  %v1175_v26 = vld [vmem:[%s5185_s3 + $0x30] sm:$0xff]  ;;  %v1174_v36 = vld [vmem:[%s5185_s3 + $0x28] sm:$0xff]  ;;  %s2605_s7 = sshll.u32 %s215_s6, 8  ;;  %s2812_s9 = sshll.u32 %s3025_s22, 8 }
  0x17   : > { %v3108_v18 = vsub.f32 %v1181_v6, %v3077_v9  ;;  %v3111_v19 = vsub.f32 %v1180_v7, %v3079_v10  ;;  %v3114_v20 = vsub.f32 %v1179_v8, %v3081_v11  ;;  %v3124_v25 = vand.u32 4294901760, %v1177_v13  ;;  %s2845_s10 = smul.u32 432, %s3105_s30  ;;  %v1173_v37 = vld [vmem:[%s5185_s3 + $0x20] sm:$0xff]  ;;  %v1172_v42 = vld [vmem:[%s5185_s3 + $0x18] sm:$0xff]  ;;  %v1171_v50 = vld [vmem:[%s5185_s3 + $0x10] sm:$0xff]  ;;  %s4961_s8 = scalar_lea.vmem [#allocation2], %s2605_s7 }
  0x18   : > { %2814 = vmatpush.msra.mxu2 %v3064_v4  ;;  %v5200_v22 = vand.u32 4294901760, %v3091_v14  ;;  %v5199_v23 = vand.u32 4294901760, %v3094_v15  ;;  %v5197_v24 = vand.u32 4294901760, %v3097_v16  ;;  %1192 = vmatpush.msra.mxu0 %v3064_v4  ;;  %v3134_v30 = vsub.f32 %v1178_v12, %v3100_v17  ;;  %v3205_v54 = vld [vmem:[%s5183_s1] ss:$0 sm:$0xff]  ;;  %v3218_v59 = vld [vmem:[%s5185_s3 + $0x8] sm:$0xff]  ;;  %s2535_s12 = scalar_lea.hbm %s5187_s5, %s2812_s9 }
  0x19   : > { %5342 = vst [vmem:[#allocation5_spill] sm:$0xff] %v3124_v25  ;;  %v5196_v27 = vand.u32 4294901760, %v3108_v18  ;;  %v5195_v28 = vand.u32 4294901760, %v3111_v19  ;;  %v5194_v29 = vand.u32 4294901760, %v3114_v20  ;;  %v3147_v34 = vand.u32 4294901760, %v1176_v21  ;;  %s3171_s25 = scalar_lea.vmem %s5182_s0, %s2845_s10  ;;  %v3223_v60 = vld [vmem:[%s5185_s3] sm:$0xff] }
  0x1a   : > { %2815 = vmatpush.msra.mxu2 %v3066_v5  ;;  %v1481_v31 = vsub.f32 %v3091_v14, %v5200_v22  ;;  %v1487_v32 = vsub.f32 %v3094_v15, %v5199_v23  ;;  %v1493_v33 = vsub.f32 %v3097_v16, %v5197_v24  ;;  %1194 = vmatpush.msra.mxu0 %v3066_v5  ;;  %v3149_v35 = vand.u32 4294901760, %v1175_v26  ;;  %v239_v53 = vld [vmem:[%s3171_s25 + $0xc0] sm:$0xff]  ;;  %s2536_s13 = sshll.u32 %s4961_s8, 4  ;;  %s2538_s14 = sshll.u32 %s2535_s12, 4  ;;  %s2537_s13 = int_to_ptr.vmem [resolvable:$true] %s2536_s13  ;;  %s2539_s14 = int_to_ptr.hbm [resolvable:$true] %s2538_s14 }
  0x1b   : > { %5343 = vst [vmem:[#allocation6_spill] sm:$0xff] %v3147_v34  ;;  %v1499_v40 = vsub.f32 %v3108_v18, %v5196_v27  ;;  %v3163_v41 = vsub.f32 %v1177_v13, %v3124_v25  ;;  %v3176_v43 = vsub.f32 %v3111_v19, %v5195_v28  ;;  %v3181_v44 = vsub.f32 %v3114_v20, %v5194_v29  ;;  %v3228_v61 = vld [vmem:[%s5183_s1 + $0x1] ss:$0 sm:$0xff]  ;;  %v3240_v1 = vld [vmem:[%s5183_s1 + $0x2] ss:$0 sm:$0xff]  ;;  %v3342_v28 = vld [vmem:[%s3171_s25 + $0xf0] sm:$0xff] }
  0x1c   : > { %5344 = vst [vmem:[#allocation7_spill] sm:$0xff] %v3149_v35  ;;  %v1482_v38 = vand.u32 4294901760, %v1481_v31  ;;  %2816 = vmatpush.msra.mxu2 %v3077_v9  ;;  %v1488_v39 = vand.u32 4294901760, %v1487_v32  ;;  %1196 = vmatpush.msra.mxu0 %v3077_v9  ;;  %v5189_v45 = vand.u32 4294901760, %v3134_v30  ;;  %v1494_v46 = vand.u32 4294901760, %v1493_v33  ;;  %v339_v0 = vld [vmem:[%s3171_s25 + $0xc1] sm:$0xff] }
  0x1d   : > { %5345 = vst [vmem:[#allocation8_spill] sm:$0xff] %v3163_v41  ;;  %v3185_v47 = vand.u32 4294901760, %v1174_v36  ;;  %v3188_v48 = vsub.f32 %v1176_v21, %v3147_v34  ;;  %v3190_v49 = vand.u32 4294901760, %v1173_v37  ;;  %v3197_v51 = vsub.f32 %v1175_v26, %v3149_v35  ;;  %v440_v12 = vld [vmem:[%s3171_s25 + $0xc2] sm:$0xff]  ;;  %v3263_v33 = vld [vmem:[%s3171_s25 + $0xd8] sm:$0xff]  ;;  %v441_v27 = vld [vmem:[%s3171_s25 + $0xca] sm:$0xff] }
  0x1e   : > { %2829 = vmatpush.msra.mxu3 %v1482_v38  ;;  %2817 = vmatpush.msra.mxu2 %v3079_v10  ;;  %v3199_v52 = vand.u32 4294901760, %v1172_v42  ;;  %v1500_v55 = vand.u32 4294901760, %v1499_v40  ;;  %v5188_v56 = vand.u32 4294901760, %v3163_v41  ;;  %v3231_v62 = vand.u32 4294901760, %v1171_v50  ;;  %v3255_v13 = vld [vmem:[%s5183_s1 + $0x3] ss:$0 sm:$0xff] }
  0x1f   : > { %5346 = vst [vmem:[#allocation9_spill] sm:$0xff] %v3185_v47  ;;  %1483 = vmatpush.msra.mxu1 %v1482_v38  ;;  %1198 = vmatpush.msra.mxu0 %v3079_v10  ;;  %v3210_v57 = vsub.f32 %v1174_v36, %v3185_v47  ;;  %v3213_v58 = vsub.f32 %v1173_v37, %v3190_v49  ;;  %v1506_v2 = vand.u32 4294901760, %v3176_v43  ;;  %v1512_v6 = vand.u32 4294901760, %v3181_v44  ;;  %v3279_v40 = vld [vmem:[%s5183_s1 + $0x4] ss:$0 sm:$0xff]  ;;  %s2524_s22 = scalar_lea.sflag [#allocation3], %s215_s6 }
  0x20   : > { %5347 = vst [vmem:[#allocation10_spill] sm:$0xff] %v3188_v48  ;;  %2830 = vmatpush.msra.mxu3 %v1488_v39  ;;  %2818 = vmatpush.msra.mxu2 %v3081_v11  ;;  %v3234_v63 = vsub.f32 %v1172_v42, %v3199_v52  ;;  %v3248_v7 = vsub.f32 %v3134_v30, %v5189_v45  ;;  %v5193_v8 = vand.u32 4294901760, %v3188_v48  ;;  %v5190_v21 = vand.u32 4294901760, %v3197_v51  ;;  %v3368_v23 = vld [vmem:[%s3171_s25 + $0xe0] sm:$0xff]  ;;  %s2922_s15 = sshra.s32 %s2539_s14, 4  ;;  %s2928_s26 = scalar_lea.hbm %s5187_s5, 512  ;;  %s2923_s15 = int_to_ptr.hbm [resolvable:$true] %s2922_s15 }
  0x21   : > { %5348 = vst [vmem:[#allocation11_spill] sm:$0xff] %v3190_v49  ;;  %1489 = vmatpush.msra.mxu1 %v1488_v39  ;;  %1200 = vmatpush.msra.mxu0 %v3081_v11  ;;  %v5191_v26 = vand.u32 4294901760, %v3210_v57  ;;  %v5192_v31 = vand.u32 4294901760, %v3213_v58  ;;  %v275_v32 = vmul.f32 %v3205_v54, %v239_v53  ;;  %v3269_v36 = vsub.f32 %v3163_v41, %v5188_v56  ;;  %v3274_v39 = vld [vmem:[%s3171_s25 + $0xd9] sm:$0xff]  ;;  %v3295_v53 = vld [vmem:[%s5183_s1 + $0x5] ss:$0 sm:$0xff]  ;;  %p2929_p0 = scmp.lt.s32.totalorder %s2923_s15, %s5187_s5 }
  0x22   : > { %5349 = vst [vmem:[#allocation12_spill] sm:$0xff] %v3197_v51  ;;  %2831 = vmatpush.msra.mxu3 %v1494_v46  ;;  %2819 = vmatpush.msra.mxu2 %v3100_v17  ;;  %v5198_v37 = vand.u32 4294901760, %v3234_v63  ;;  %v376_v38 = vmul.f32 %v3228_v61, %v339_v0  ;;  %v3283_v42 = vand.u32 4294901760, %v3218_v59  ;;  %v3286_v43 = vand.u32 4294901760, %v3223_v60  ;;  %v3307_v56 = vld [vmem:[%s3171_s25 + $0xda] sm:$0xff]  ;;  %s2924_s16 = scalar_lea.hbm %s2923_s15, 256 }
  0x23   : > { %5350 = vst [vmem:[#allocation13_spill] sm:$0xff] %v3199_v52  ;;  %1495 = vmatpush.msra.mxu1 %v1494_v46  ;;  %1202 = vmatpush.msra.mxu0 %v3100_v17  ;;  %v3289_v44 = vsub.f32 %v1171_v50, %v3231_v62  ;;  %v477_v46 = vmul.f32 %v3240_v1, %v440_v12  ;;  %p2925_p11 = scmp.ne.s32.totalorder %s2923_s15, %s2924_s16  ;;  %p2930_p1 = scmp.lt.s32.totalorder %s2928_s26, %s2924_s16 }
  0x24   : > { %5351 = vst [vmem:[#allocation14_spill] sm:$0xff] %v3210_v57  ;;  %2832 = vmatpush.msra.mxu3 %v1500_v55  ;;  %2820 = vmatpush.msra.mxu2 %v3124_v25  ;;  %v3302_v0 = vsub.f32 %v3188_v48, %v5193_v8  ;;  %v408_v50 = vadd.f32 %v376_v38, %v275_v32  ;;  %v240_v38 = vld [vmem:[%s3171_s25 + $0xc8] sm:$0xff] }
  0x25   : > { %5352 = vst [vmem:[#allocation15_spill] sm:$0xff] %v3213_v58  ;;  %1501 = vmatpush.msra.mxu1 %v1500_v55  ;;  %1204 = vmatpush.msra.mxu0 %v3124_v25  ;;  %v1518_v55 = vand.u32 4294901760, %v3248_v7  ;;  %v579_v12 = vmul.f32 %v3255_v13, %v3263_v33  ;;  %v3312_v45 = vsub.f32 %v3197_v51, %v5190_v21  ;;  %v340_v21 = vld [vmem:[%s3171_s25 + $0xc9] sm:$0xff]  ;;  %p2926_p12 = pnand %p2925_p11, %p3042_p5  ;;  %p2931_p2 = por %p2930_p1, %p2929_p0 }
  0x26   : > { %5353 = vst [vmem:[#allocation16_spill] sm:$0xff] %v3231_v62  ;;  %2833 = vmatpush.msra.mxu3 %v1506_v2  ;;  %2821 = vmatpush.msra.mxu2 %v3147_v34  ;;  %v3317_v7 = vsub.f32 %v3210_v57, %v5191_v26  ;;  %v3322_v32 = vsub.f32 %v3213_v58, %v5192_v31  ;;  %v1524_v26 = vand.u32 4294901760, %v3269_v36  ;;  %v1530_v22 = vand.u32 4294901760, %v3302_v0  ;;  %v3376_v58 = vld [vmem:[%s3171_s25 + $0xf2] sm:$0xff] }
  0x27   : > { %5354 = vst [vmem:[#allocation17_spill] sm:$0xff] %v3234_v63  ;;  %1507 = vmatpush.msra.mxu1 %v1506_v2  ;;  %1206 = vmatpush.msra.mxu0 %v3147_v34  ;;  %v3328_v2 = vld [vmem:[%s5183_s1 + $0x6] ss:$0 sm:$0xff]  ;;  %v3337_v31 = vsub.f32 %v3234_v63, %v5198_v37  ;;  %v509_v8 = vadd.f32 %v477_v46, %v408_v50  ;;  %v3352_v46 = vld [vmem:[%s5183_s1 + $0x7] ss:$0 sm:$0xff]  ;;  %v3373_v63 = vld [vmem:[%s3171_s25 + $0xf1] sm:$0xff]  ;;  %p2927_p13 = pneg %p2926_p12 }
  0x28   : > { %5355 = vst [vmem:[#allocation18_spill] sm:$0xff] %v3283_v42  ;;  %2834 = vmatpush.msra.mxu3 %v1512_v6  ;;  %2822 = vmatpush.msra.mxu2 %v3149_v35  ;;  %v680_v29 = vmul.f32 %v3279_v40, %v3274_v39  ;;  %v781_v36 = vmul.f32 %v3295_v53, %v3307_v56  ;;  %v3357_v50 = vld [vmem:[%s5183_s1 + $0x8] ss:$0 sm:$0xff] }
  0x29   : > { %5356 = vst [vmem:[#allocation19_spill] sm:$0xff] %v3286_v43  ;;  %1513 = vmatpush.msra.mxu1 %v1512_v6  ;;  %1208 = vmatpush.msra.mxu0 %v3149_v35  ;;  %v3361_v6 = vsub.f32 %v3218_v59, %v3283_v42  ;;  %v3365_v37 = vsub.f32 %v3223_v60, %v3286_v43  ;;  %v3394_v35 = vld [vmem:[%s3171_s25 + $0xe2] sm:$0xff]  ;;  %p2932_p3 = pnand %p2931_p2, %p2927_p13 }
  0x2a   : > { %5357 = vst [vmem:[#allocation20_spill] sm:$0xff] %v3289_v44  ;;  %2835 = vmatpush.msra.mxu3 %v1518_v55  ;;  %2823 = vmatpush.msra.mxu2 %v3185_v47  ;;  %v611_v24 = vadd.f32 %v579_v12, %v509_v8  ;;  %v276_v59 = vmul.f32 %v3205_v54, %v240_v38  ;;  %v3387_v12 = vld [vmem:[%s3171_s25 + $0xe1] sm:$0xff] }
  0x2b   : > { %5358 = vst [vmem:[#allocation21_spill] sm:$0xff] %v3361_v6  ;;  %v377_v57 = vmul.f32 %v3228_v61, %v340_v21  ;;  %1519 = vmatpush.msra.mxu1 %v1518_v55  ;;  %v883_v60 = vmul.f32 %v3328_v2, %v3342_v28  ;;  %1210 = vmatpush.msra.mxu0 %v3185_v47  ;;  %v1536_v21 = vand.u32 4294901760, %v3312_v45  ;;  %v1542_v45 = vand.u32 4294901760, %v3317_v7  ;;  %v424_v34 = vld [vmem:[%s3171_s25 + $0x2] sm:$0xff] }
  0x2c   : > { %5359 = vst [vmem:[#allocation22_spill] sm:$0xff] %v3365_v37  ;;  %v478_v0 = vmul.f32 %v3240_v1, %v441_v27  ;;  %2836 = vmatpush.msra.mxu3 %v1524_v26  ;;  %2824 = vmatpush.msra.mxu2 %v3190_v49  ;;  %v712_v55 = vadd.f32 %v680_v29, %v611_v24  ;;  %v5360_v27 = vand.u32 4294901760, %v3289_v44  ;;  %v223_v29 = vld [vmem:[%s3171_s25] sm:$0xff]  ;;  %v5362_v25 = vand.u32 4294901760, %v3365_v37 }
  0x2d   : > { %v409_v38 = vadd.f32 %v377_v57, %v276_v59  ;;  %v580_v47 = vmul.f32 %v3255_v13, %v3368_v23  ;;  %1525 = vmatpush.msra.mxu1 %v1524_v26  ;;  %v984_v51 = vmul.f32 %v3352_v46, %v3373_v63  ;;  %v1085_v24 = vmul.f32 %v3357_v50, %v3376_v58 }
  0x2e   : > { %v3399_v8 = vsub.f32 %v3289_v44, %v5360_v27  ;;  %1212 = vmatpush.msra.mxu0 %v3190_v49  ;;  %2837 = vmatpush.msra.mxu3 %v1530_v22  ;;  %v813_v57 = vadd.f32 %v781_v36, %v712_v55  ;;  %v681_v59 = vmul.f32 %v3279_v40, %v3387_v12  ;;  %v3412_v27 = vld [vmem:[%s3171_s25 + $0xf8] sm:$0xff]  ;;  %v323_v44 = vld [vmem:[%s3171_s25 + $0x1] sm:$0xff]  ;;  %v5361_v49 = vand.u32 4294901760, %v3361_v6 }
  0x2f   : > { %2825 = vmatpush.msra.mxu2 %v3199_v52  ;;  %v510_v26 = vadd.f32 %v478_v0, %v409_v38  ;;  %1531 = vmatpush.msra.mxu1 %v1530_v22  ;;  %v3424_v7 = vsub.f32 %v3365_v37, %v5362_v25  ;;  %v782_v36 = vmul.f32 %v3295_v53, %v3394_v35  ;;  %v3430_v0 = vld [vmem:[%s3171_s25 + $0xf9] sm:$0xff]  ;;  %v1548_v22 = vand.u32 4294901760, %v3322_v32 }
  0x30   : > { %v3419_v48 = vsub.f32 %v3361_v6, %v5361_v49  ;;  %1214 = vmatpush.msra.mxu0 %v3199_v52  ;;  %2838 = vmatpush.msra.mxu3 %v1536_v21  ;;  %v915_v49 = vadd.f32 %v883_v60, %v813_v57  ;;  %v3435_v38 = vld [vmem:[%s3171_s25 + $0xfa] sm:$0xff]  ;;  %v259_v25 = vmul.f32 %v3205_v54, %v223_v29 }
  0x31   : > { %2826 = vmatpush.msra.mxu2 %v3231_v62  ;;  %v612_v55 = vadd.f32 %v580_v47, %v510_v26  ;;  %v3439_v37 = vld [vmem:[%s3171_s25 + $0x18] sm:$0xff]  ;;  %1537 = vmatpush.msra.mxu1 %v1536_v21  ;;  %v884_v6 = vmul.f32 %v3328_v2, %v3412_v27  ;;  %v360_v52 = vmul.f32 %v3228_v61, %v323_v44  ;;  %v1554_v47 = vand.u32 4294901760, %v3337_v31  ;;  %v3454_v21 = vld [vmem:[%s5184_s2] ss:$0 sm:$0xff] }
  0x32   : > { %1216 = vmatpush.msra.mxu0 %v3231_v62  ;;  %v461_v41 = vmul.f32 %v3240_v1, %v424_v34  ;;  %v3447_v32 = vld [vmem:[%s3171_s25 + $0x19] sm:$0xff]  ;;  %2839 = vmatpush.msra.mxu3 %v1542_v45  ;;  %v1016_v60 = vadd.f32 %v984_v51, %v915_v49  ;;  %v985_v44 = vmul.f32 %v3352_v46, %v3430_v0  ;;  %v1560_v26 = vand.u32 4294901760, %v3399_v8 }
  0x33   : > { %2827 = vmatpush.msra.mxu2 %v3283_v42  ;;  %v713_v29 = vadd.f32 %v681_v59, %v612_v55  ;;  %v3459_v57 = vld [vmem:[%s3171_s25 + $0x1a] sm:$0xff]  ;;  %1543 = vmatpush.msra.mxu1 %v1542_v45  ;;  %v1086_v34 = vmul.f32 %v3357_v50, %v3435_v38  ;;  %v392_v31 = vadd.f32 %v360_v52, %v259_v25  ;;  %v3471_v55 = vld [vmem:[%s3171_s25 + $0x30] sm:$0xff] }
  0x34   : > { %1218 = vmatpush.msra.mxu0 %v3283_v42  ;;  %v563_v51 = vmul.f32 %v3255_v13, %v3439_v37  ;;  %2840 = vmatpush.msra.mxu3 %v1548_v22  ;;  %v1117_v59 = vadd.f32 %v1085_v24, %v1016_v60  ;;  %v664_v45 = vmul.f32 %v3279_v40, %v3447_v32  ;;  %v1566_v24 = vand.u32 4294901760, %v3419_v48  ;;  %v3482_v60 = vld [vmem:[%s3171_s25 + $0x31] sm:$0xff] }
  0x35   : > { %2828 = vmatpush.msra.mxu2 %v3286_v43  ;;  %v814_v49 = vadd.f32 %v782_v36, %v713_v29  ;;  %1549 = vmatpush.msra.mxu1 %v1548_v22  ;;  %v493_v52 = vadd.f32 %v461_v41, %v392_v31  ;;  %v765_v25 = vmul.f32 %v3295_v53, %v3459_v57  ;;  %v3485_v22 = vld [vmem:[%s3171_s25 + $0x32] sm:$0xff]  ;;  %v1572_v29 = vand.u32 4294901760, %v3424_v7 }
  0x36   : > { %v277_v42 = vmul.f32 %v3205_v54, %v3263_v33  ;;  %2841 = vmatpush.msra.mxu3 %v1554_v47  ;;  %v1153_v8 = vadd.f32 %v3454_v21, %v1117_v59  ;;  %1220 = vmatpush.msra.mxu0 %v3286_v43  ;;  %v378_v41 = vmul.f32 %v3228_v61, %v3274_v39 }
  0x37   : > { %1705 = vmatpush.msrb.mxu2 %v3091_v14  ;;  %v916_v36 = vadd.f32 %v884_v6, %v814_v49  ;;  %1555 = vmatpush.msra.mxu1 %v1554_v47  ;;  %v595_v33 = vadd.f32 %v563_v51, %v493_v52  ;;  %v867_v48 = vmul.f32 %v3328_v2, %v3471_v55  ;;  %v5364_v49 = vand.u32 4294901760, %v3091_v14  ;;  %v224_v47 = vld [vmem:[%s3171_s25 + $0x8] sm:$0xff] }
  0x38   : > { %v479_v6 = vmul.f32 %v3240_v1, %v3307_v56  ;;  %2842 = vmatpush.msra.mxu3 %v1560_v26  ;;  %v3495_v31 = vand.u32 4294901760, %v1153_v8  ;;  %v410_v39 = vadd.f32 %v378_v41, %v277_v42  ;;  %v581_v7 = vmul.f32 %v3255_v13, %v3342_v28  ;;  %v324_v51 = vld [vmem:[%s3171_s25 + $0x9] sm:$0xff] }
  0x39   : > { %1708 = vmatpush.msrb.mxu2 %v3094_v15  ;;  %v1017_v59 = vadd.f32 %v985_v44, %v916_v36  ;;  %2140 = vmatpush.msrb.mxu0 %v5364_v49  ;;  %v696_v52 = vadd.f32 %v664_v45, %v595_v33  ;;  %v968_v56 = vmul.f32 %v3352_v46, %v3482_v60  ;;  %v425_v44 = vld [vmem:[%s3171_s25 + $0xa] sm:$0xff]  ;;  %v3516_v45 = vld [vmem:[%s3171_s25 + $0x20] sm:$0xff] }
  0x3a   : > { %5363 = vst [vmem:[#allocation23_spill] sm:$0xff] %v3495_v31  ;;  %1561 = vmatpush.msra.mxu1 %v1560_v26  ;;  %v1069_v43 = vmul.f32 %v3357_v50, %v3485_v22  ;;  %v682_v14 = vmul.f32 %v3279_v40, %v3373_v63  ;;  %v3511_v42 = vsub.f32 %v1153_v8, %v3495_v31  ;;  %v3519_v49 = vld [vmem:[%s3171_s25 + $0x108] sm:$0xff] }
  0x3b   : > { %2843 = vmatpush.msra.mxu3 %v1566_v24  ;;  %v1118_v36 = vadd.f32 %v1086_v34, %v1017_v59  ;;  %v511_v41 = vadd.f32 %v479_v6, %v410_v39  ;;  %v783_v26 = vmul.f32 %v3295_v53, %v3376_v58  ;;  %v797_v33 = vadd.f32 %v765_v25, %v696_v52  ;;  %v3527_v39 = vld [vmem:[%s3171_s25 + $0x109] sm:$0xff] }
  0x3c   : > { %5365 = vst [vmem:[#allocation24_spill] sm:$0xff] %v3511_v42  ;;  %1567 = vmatpush.msra.mxu1 %v1566_v24  ;;  %1711 = vmatpush.msrb.mxu2 %v3097_v16  ;;  %v260_v8 = vmul.f32 %v3205_v54, %v224_v47  ;;  %v361_v62 = vmul.f32 %v3228_v61, %v324_v51  ;;  %v3531_v24 = vld [vmem:[%s3171_s25 + $0x21] sm:$0xff]  ;;  %v5366_v52 = vand.u32 4294901760, %v3094_v15  ;;  %v3537_v51 = vld [vmem:[%s3171_s25 + $0x10a] sm:$0xff] }
  0x3d   : > { %2844 = vmatpush.msra.mxu3 %v1572_v29  ;;  %v1154_v6 = vadd.f32 %v3454_v21, %v1118_v36  ;;  %v613_v59 = vadd.f32 %v581_v7, %v511_v41  ;;  %v462_v25 = vmul.f32 %v3240_v1, %v425_v44  ;;  %v899_v47 = vadd.f32 %v867_v48, %v797_v33 }
  0x3e   : > { %2144 = vmatpush.msrb.mxu0 %v5366_v52  ;;  %1639 = vmatmul.f32.vlgmr.msra.gmra.mxu3 %v3495_v31  ;;  %v393_v34 = vadd.f32 %v361_v62, %v260_v8  ;;  %v564_v7 = vmul.f32 %v3255_v13, %v3516_v45  ;;  %v5367_v36 = vand.u32 4294901760, %v3511_v42  ;;  %v3551_v62 = vld [vmem:[%s3171_s25 + $0x22] sm:$0xff]  ;;  %v986_v33 = vmul.f32 %v3352_v46, %v3527_v39 }
  0x3f   : > { %1573 = vmatpush.msra.mxu1 %v1572_v29  ;;  %1913 = vmatpush.msrb.mxu3 %v3062_v3  ;;  %v3545_v44 = vand.u32 4294901760, %v1154_v6  ;;  %v714_v15 = vadd.f32 %v682_v14, %v613_v59  ;;  %v885_v29 = vmul.f32 %v3328_v2, %v3519_v49  ;;  %v1000_v48 = vadd.f32 %v968_v56, %v899_v47  ;;  %v3565_v59 = vld [vmem:[%s3171_s25 + $0x38] sm:$0xff] }
  0x40   : > { %v1352_v41 = vsub.f32 %v3511_v42, %v5367_v36  ;;  %v494_v8 = vadd.f32 %v462_v25, %v393_v34  ;;  %v665_v52 = vmul.f32 %v3279_v40, %v3531_v24  ;;  %1714 = vmatpush.msrb.mxu2 %v3108_v18  ;;  %v1087_v56 = vmul.f32 %v3357_v50, %v3537_v51  ;;  %v3568_v47 = vld [vmem:[%s3171_s25 + $0x39] sm:$0xff] }
  0x41   : > { %5368 = vst [vmem:[#allocation25_spill] sm:$0xff] %v3545_v44  ;;  %2331 = vmatpush.msrb.mxu1 %v3062_v3  ;;  %v3559_v3 = vsub.f32 %v1154_v6, %v3545_v44  ;;  %1915 = vmatpush.msrb.mxu3 %v3064_v4  ;;  %v815_v14 = vadd.f32 %v783_v26, %v714_v15  ;;  %v5370_v31 = vand.u32 4294901760, %v3097_v16  ;;  %v3579_v42 = vld [vmem:[%s3171_s25 + $0x3a] sm:$0xff] }
  0x42   : > { %v1353_v36 = vand.u32 4294901760, %v1352_v41  ;;  %v1101_v34 = vadd.f32 %v1069_v43, %v1000_v48  ;;  %v596_v25 = vadd.f32 %v564_v7, %v494_v8  ;;  %v766_v41 = vmul.f32 %v3295_v53, %v3551_v62  ;;  %1717 = vmatpush.msrb.mxu2 %v3111_v19 }
  0x43   : > { %5369 = vst [vmem:[#allocation26_spill] sm:$0xff] %v3559_v3  ;;  %2333 = vmatpush.msrb.mxu1 %v3064_v4  ;;  %v278_v6 = vmul.f32 %v3205_v54, %v3368_v23  ;;  %2148 = vmatpush.msrb.mxu0 %v5370_v31  ;;  %v5241_v26 = vand.u32 4294901760, %v3559_v3  ;;  %v917_v15 = vadd.f32 %v885_v29, %v815_v14 }
  0x44   : > { %1354 = vmatmul.f32.vlgmr.msra.gmra.mxu2 %v1353_v36  ;;  %1917 = vmatpush.msrb.mxu3 %v3066_v5  ;;  %v379_v4 = vmul.f32 %v3228_v61, %v3387_v12  ;;  %v480_v43 = vmul.f32 %v3240_v1, %v3394_v35  ;;  %v1137_v23 = vadd.f32 %v3454_v21, %v1101_v34 }
  0x45   : > { %v697_v7 = vadd.f32 %v665_v52, %v596_v25  ;;  %v868_v16 = vmul.f32 %v3328_v2, %v3565_v59  ;;  %v969_v31 = vmul.f32 %v3352_v46, %v3568_v47  ;;  %2335 = vmatpush.msrb.mxu1 %v3066_v5  ;;  %v1360_v29 = vsub.f32 %v3559_v3, %v5241_v26  ;;  %v3622_v26 = vld [vmem:[%s3171_s25 + $0x112] sm:$0xff] }
  0x46   : > { %v1018_v12 = vadd.f32 %v986_v33, %v917_v15  ;;  %v411_v48 = vadd.f32 %v379_v4, %v278_v6  ;;  %v582_v35 = vmul.f32 %v3255_v13, %v3412_v27  ;;  %1919 = vmatpush.msrb.mxu3 %v3077_v9  ;;  %v3598_v8 = vand.u32 4294901760, %v1137_v23  ;;  %v3606_v33 = vld [vmem:[%s3171_s25 + $0x110] sm:$0xff]  ;;  %1720 = vmatpush.msrb.mxu2 %v3114_v20 }
  0x47   : > { %1643 = vmatmul.f32.gmra.mxu3 %v3545_v44  ;;  %v798_v52 = vadd.f32 %v766_v41, %v697_v7  ;;  %v1070_v5 = vmul.f32 %v3357_v50, %v3579_v42  ;;  %v683_v36 = vmul.f32 %v3279_v40, %v3430_v0  ;;  %v1361_v14 = vand.u32 4294901760, %v1360_v29  ;;  %v3619_v7 = vld [vmem:[%s3171_s25 + $0x111] sm:$0xff]  ;;  %2337 = vmatpush.msrb.mxu1 %v3077_v9 }
  0x48   : > { %v1119_v34 = vadd.f32 %v1087_v56, %v1018_v12  ;;  %v512_v25 = vadd.f32 %v480_v43, %v411_v48  ;;  %v784_v6 = vmul.f32 %v3295_v53, %v3435_v38  ;;  %1921 = vmatpush.msrb.mxu3 %v3079_v10  ;;  %v5371_v41 = vand.u32 4294901760, %v3108_v18  ;;  %1575 = vmatmul.f32.vlgmr.msra.gmra.mxu1 %v3598_v8 }
  0x49   : > { %v3615_v15 = vsub.f32 %v1137_v23, %v3598_v8  ;;  %v900_v4 = vadd.f32 %v868_v16, %v798_v52  ;;  %v261_v56 = vmul.f32 %v3205_v54, %v3439_v37  ;;  %v362_v43 = vmul.f32 %v3228_v61, %v3447_v32  ;;  %2339 = vmatpush.msrb.mxu1 %v3079_v10  ;;  %v3670_v10 = vld [vmem:[%s3171_s25 + $0x4a] sm:$0xff] }
  0x4a   : > { %2152 = vmatpush.msrb.mxu0 %v5371_v41  ;;  %v1155_v29 = vadd.f32 %v3454_v21, %v1119_v34  ;;  %v614_v18 = vadd.f32 %v582_v35, %v512_v25  ;;  %v886_v23 = vmul.f32 %v3328_v2, %v3606_v33  ;;  %v463_v12 = vmul.f32 %v3240_v1, %v3459_v57  ;;  %v3653_v41 = vld [vmem:[%s3171_s25 + $0x48] sm:$0xff] }
  0x4b   : > { %v5243_v16 = vand.u32 4294901760, %v3615_v15  ;;  %v1001_v48 = vadd.f32 %v969_v31, %v900_v4  ;;  %v394_v52 = vadd.f32 %v362_v43, %v261_v56  ;;  %v565_v37 = vmul.f32 %v3255_v13, %v3471_v55  ;;  %1923 = vmatpush.msrb.mxu3 %v3081_v11  ;;  %1723 = vmatpush.msrb.mxu2 %v3134_v30 }
  0x4c   : > { %1362 = vmatmul.f32.gmra.mxu2 %v1361_v14  ;;  %v3639_v32 = vand.u32 4294901760, %v1155_v29  ;;  %v715_v35 = vadd.f32 %v683_v36, %v614_v18  ;;  %v987_v57 = vmul.f32 %v3352_v46, %v3619_v7  ;;  %v1088_v9 = vmul.f32 %v3357_v50, %v3622_v26  ;;  %2341 = vmatpush.msrb.mxu1 %v3081_v11 }
  0x4d   : > { %v5373_v31 = vand.u32 4294901760, %v3111_v19  ;;  %v1224_v34 = vsub.f32 %v3615_v15, %v5243_v16  ;;  %v1102_v25 = vadd.f32 %v1070_v5, %v1001_v48  ;;  %v495_v14 = vadd.f32 %v463_v12, %v394_v52  ;;  %v3667_v48 = vld [vmem:[%s3171_s25 + $0x49] sm:$0xff]  ;;  %1925 = vmatpush.msrb.mxu3 %v3100_v17 }
  0x4e   : > { %5372 = vst [vmem:[#allocation27_spill] sm:$0xff] %v3639_v32  ;;  %v666_v36 = vmul.f32 %v3279_v40, %v3482_v60  ;;  %v3657_v4 = vsub.f32 %v1155_v29, %v3639_v32  ;;  %v816_v19 = vadd.f32 %v784_v6, %v715_v35  ;;  %v767_v56 = vmul.f32 %v3295_v53, %v3485_v22  ;;  %v3717_v16 = vld [vmem:[%s3171_s25 + $0x122] sm:$0xff] }
  0x4f   : > { %2156 = vmatpush.msrb.mxu0 %v5373_v31  ;;  %v279_v43 = vmul.f32 %v3205_v54, %v3342_v28  ;;  %v1225_v5 = vand.u32 4294901760, %v1224_v34  ;;  %v1138_v18 = vadd.f32 %v3454_v21, %v1102_v25  ;;  %1647 = vmatmul.f32.gmra.mxu3 %v3639_v32  ;;  %v597_v12 = vadd.f32 %v565_v37, %v495_v14 }
  0x50   : > { %5374 = vst [vmem:[#allocation28_spill] sm:$0xff] %v3657_v4  ;;  %v380_v6 = vmul.f32 %v3228_v61, %v3373_v63  ;;  %v5375_v29 = vand.u32 4294901760, %v3114_v20  ;;  %v5242_v28 = vand.u32 4294901760, %v3657_v4  ;;  %v918_v52 = vadd.f32 %v886_v23, %v816_v19  ;;  %v5376_v23 = vld [vmem:[#allocation8_spill] sm:$0xff]  ;;  %v5377_v19 = vld [vmem:[#allocation5_spill] sm:$0xff]  ;;  %2343 = vmatpush.msrb.mxu1 %v3100_v17 }
  0x51   : > { %v869_v35 = vmul.f32 %v3328_v2, %v3653_v41  ;;  %v481_v31 = vmul.f32 %v3240_v1, %v3376_v58  ;;  %1226 = vmatmul.f32.vlgmr.msra.gmra.mxu0 %v1225_v5  ;;  %v3683_v37 = vand.u32 4294901760, %v1138_v18  ;;  %v698_v63 = vadd.f32 %v666_v36, %v597_v12  ;;  %1726 = vmatpush.msrb.mxu2 %v5376_v23  ;;  %v3703_v12 = vld [vmem:[%s3171_s25 + $0x120] sm:$0xff] }
  0x52   : > { %2160 = vmatpush.msrb.mxu0 %v5375_v29  ;;  %v412_v20 = vadd.f32 %v380_v6, %v279_v43  ;;  %v583_v34 = vmul.f32 %v3255_v13, %v3519_v49  ;;  %v1368_v25 = vsub.f32 %v3657_v4, %v5242_v28  ;;  %v1019_v58 = vadd.f32 %v987_v57, %v918_v52  ;;  %v3853_v4 = vld [vmem:[%s3171_s25 + $0x62] sm:$0xff] }
  0x53   : > { %v970_v14 = vmul.f32 %v3352_v46, %v3667_v48  ;;  %v1071_v11 = vmul.f32 %v3357_v50, %v3670_v10  ;;  %1927 = vmatpush.msrb.mxu3 %v5377_v19  ;;  %v3697_v36 = vsub.f32 %v1138_v18, %v3683_v37  ;;  %1579 = vmatmul.f32.gmra.mxu1 %v3683_v37  ;;  %v5378_v18 = vand.u32 4294901760, %v3134_v30 }
  0x54   : > { %v799_v43 = vadd.f32 %v767_v56, %v698_v63  ;;  %v513_v5 = vadd.f32 %v481_v31, %v412_v20  ;;  %v684_v57 = vmul.f32 %v3279_v40, %v3527_v39  ;;  %v1369_v6 = vand.u32 4294901760, %v1368_v25  ;;  %v3714_v20 = vld [vmem:[%s3171_s25 + $0x121] sm:$0xff]  ;;  %2345 = vmatpush.msrb.mxu1 %v5377_v19 }
  0x55   : > { %v1120_v29 = vadd.f32 %v1088_v9, %v1019_v58  ;;  %v785_v52 = vmul.f32 %v3295_v53, %v3537_v51  ;;  %v262_v28 = vmul.f32 %v3205_v54, %v3516_v45  ;;  %2164 = vmatpush.msrb.mxu0 %v5378_v18  ;;  %v5246_v56 = vand.u32 4294901760, %v3697_v36  ;;  %v5379_v25 = vld [vmem:[#allocation10_spill] sm:$0xff] }
  0x56   : > { %v901_v31 = vadd.f32 %v869_v35, %v799_v43  ;;  %v615_v63 = vadd.f32 %v583_v34, %v513_v5  ;;  %v363_v9 = vmul.f32 %v3228_v61, %v3531_v24  ;;  %1729 = vmatpush.msrb.mxu2 %v5379_v25  ;;  %v5380_v58 = vld [vmem:[#allocation6_spill] sm:$0xff]  ;;  %v887_v17 = vmul.f32 %v3328_v2, %v3703_v12 }
  0x57   : > { %1929 = vmatpush.msrb.mxu3 %v5380_v58  ;;  %1370 = vmatmul.f32.gmra.mxu2 %v1369_v6  ;;  %v1156_v30 = vadd.f32 %v3454_v21, %v1120_v29  ;;  %v464_v45 = vmul.f32 %v3240_v1, %v3551_v62  ;;  %v566_v35 = vmul.f32 %v3255_v13, %v3565_v59  ;;  %v5381_v6 = vand.u32 4294901760, %v5376_v23 }
  0x58   : > { %v1232_v24 = vsub.f32 %v3697_v36, %v5246_v56  ;;  %v1002_v34 = vadd.f32 %v970_v14, %v901_v31  ;;  %v716_v43 = vadd.f32 %v684_v57, %v615_v63  ;;  %v395_v5 = vadd.f32 %v363_v9, %v262_v28  ;;  %v5383_v14 = vld [vmem:[#allocation12_spill] sm:$0xff]  ;;  %v3746_v63 = vld [vmem:[%s3171_s25 + $0x50] sm:$0xff]  ;;  %2347 = vmatpush.msrb.mxu1 %v5380_v58 }
  0x59   : > { %2168 = vmatpush.msrb.mxu0 %v5381_v6  ;;  %v3735_v29 = vand.u32 4294901760, %v1156_v30  ;;  %v988_v62 = vmul.f32 %v3352_v46, %v3714_v20  ;;  %v1089_v18 = vmul.f32 %v3357_v50, %v3717_v16  ;;  %v667_v32 = vmul.f32 %v3279_v40, %v3568_v47  ;;  %1732 = vmatpush.msrb.mxu2 %v5383_v14  ;;  %v5384_v9 = vld [vmem:[#allocation7_spill] sm:$0xff] }
  0x5a   : > { %v1233_v28 = vand.u32 4294901760, %v1232_v24  ;;  %v1103_v57 = vadd.f32 %v1071_v11, %v1002_v34  ;;  %v817_v23 = vadd.f32 %v785_v52, %v716_v43  ;;  %v496_v31 = vadd.f32 %v464_v45, %v395_v5  ;;  %1931 = vmatpush.msrb.mxu3 %v5384_v9  ;;  %v3758_v24 = vld [vmem:[%s3171_s25 + $0x51] sm:$0xff]  ;;  %2349 = vmatpush.msrb.mxu1 %v5384_v9 }
  0x5b   : > { %5382 = vst [vmem:[#allocation8_spill] sm:$0xff] %v3735_v29  ;;  %v5385_v6 = vand.u32 4294901760, %v5379_v25  ;;  %v3752_v56 = vsub.f32 %v1156_v30, %v3735_v29  ;;  %1651 = vmatmul.f32.gmra.mxu3 %v3735_v29  ;;  %v768_v19 = vmul.f32 %v3295_v53, %v3579_v42  ;;  %v280_v11 = vmul.f32 %v3205_v54, %v3412_v27  ;;  %v3766_v30 = vld [vmem:[%s3171_s25 + $0x52] sm:$0xff] }
  0x5c   : > { %v381_v52 = vmul.f32 %v3228_v61, %v3430_v0  ;;  %1234 = vmatmul.f32.gmra.mxu0 %v1233_v28  ;;  %v1139_v25 = vadd.f32 %v3454_v21, %v1103_v57  ;;  %v919_v45 = vadd.f32 %v887_v17, %v817_v23  ;;  %v598_v34 = vadd.f32 %v566_v35, %v496_v31  ;;  %v5387_v0 = vld [vmem:[#allocation14_spill] sm:$0xff]  ;;  %v5388_v57 = vld [vmem:[#allocation9_spill] sm:$0xff] }
  0x5d   : > { %2172 = vmatpush.msrb.mxu0 %v5385_v6  ;;  %5386 = vst [vmem:[#allocation5_spill] sm:$0xff] %v3752_v56  ;;  %v482_v43 = vmul.f32 %v3240_v1, %v3435_v38  ;;  %v5249_v5 = vand.u32 4294901760, %v3752_v56  ;;  %v870_v6 = vmul.f32 %v3328_v2, %v3746_v63  ;;  %v584_v27 = vmul.f32 %v3255_v13, %v3606_v33 }
  0x5e   : > { %v413_v29 = vadd.f32 %v381_v52, %v280_v11  ;;  %1735 = vmatpush.msrb.mxu2 %v5387_v0  ;;  %v3777_v17 = vand.u32 4294901760, %v1139_v25  ;;  %v1020_v35 = vadd.f32 %v988_v62, %v919_v45  ;;  %v699_v28 = vadd.f32 %v667_v32, %v598_v34  ;;  %1933 = vmatpush.msrb.mxu3 %v5388_v57  ;;  %v3799_v34 = vld [vmem:[%s3171_s25 + $0x128] sm:$0xff] }
  0x5f   : > { %v971_v38 = vmul.f32 %v3352_v46, %v3758_v24  ;;  %v5389_v23 = vand.u32 4294901760, %v5383_v14  ;;  %v1376_v58 = vsub.f32 %v3752_v56, %v5249_v5  ;;  %v1072_v31 = vmul.f32 %v3357_v50, %v3766_v30  ;;  %v5390_v5 = vld [vmem:[#allocation15_spill] sm:$0xff]  ;;  %2351 = vmatpush.msrb.mxu1 %v5388_v57 }
  0x60   : > { %v514_v11 = vadd.f32 %v482_v43, %v413_v29  ;;  %v685_v32 = vmul.f32 %v3279_v40, %v3619_v7  ;;  %v3793_v62 = vsub.f32 %v1139_v25, %v3777_v17  ;;  %1583 = vmatmul.f32.gmra.mxu1 %v3777_v17  ;;  %v1121_v14 = vadd.f32 %v1089_v18, %v1020_v35  ;;  %v3802_v43 = vld [vmem:[%s3171_s25 + $0x129] sm:$0xff] }
  0x61   : > { %2176 = vmatpush.msrb.mxu0 %v5389_v23  ;;  %v800_v52 = vadd.f32 %v768_v19, %v699_v28  ;;  %v786_v45 = vmul.f32 %v3295_v53, %v3622_v26  ;;  %v1377_v23 = vand.u32 4294901760, %v1376_v58  ;;  %v263_v9 = vmul.f32 %v3205_v54, %v3471_v55  ;;  %1738 = vmatpush.msrb.mxu2 %v5390_v5  ;;  %v5391_v56 = vld [vmem:[#allocation11_spill] sm:$0xff] }
  0x62   : > { %v616_v29 = vadd.f32 %v584_v27, %v514_v11  ;;  %v364_v25 = vmul.f32 %v3228_v61, %v3482_v60  ;;  %1935 = vmatpush.msrb.mxu3 %v5391_v56  ;;  %v5252_v18 = vand.u32 4294901760, %v3793_v62  ;;  %v1157_v19 = vadd.f32 %v3454_v21, %v1121_v14  ;;  %v3813_v28 = vld [vmem:[%s3171_s25 + $0x12a] sm:$0xff]  ;;  %2353 = vmatpush.msrb.mxu1 %v5391_v56 }
  0x63   : > { %v902_v35 = vadd.f32 %v870_v6, %v800_v52  ;;  %v465_v27 = vmul.f32 %v3240_v1, %v3485_v22  ;;  %v5392_v58 = vand.u32 4294901760, %v5387_v0  ;;  %1378 = vmatmul.f32.gmra.mxu2 %v1377_v23  ;;  %v888_v60 = vmul.f32 %v3328_v2, %v3799_v34  ;;  %v5394_v52 = vld [vmem:[#allocation17_spill] sm:$0xff] }
  0x64   : > { %v717_v55 = vadd.f32 %v685_v32, %v616_v29  ;;  %v396_v11 = vadd.f32 %v364_v25, %v263_v9  ;;  %v567_v6 = vmul.f32 %v3255_v13, %v3653_v41  ;;  %v1240_v14 = vsub.f32 %v3793_v62, %v5252_v18  ;;  %1741 = vmatpush.msrb.mxu2 %v5394_v52  ;;  %v5395_v32 = vld [vmem:[#allocation13_spill] sm:$0xff] }
  0x65   : > { %2180 = vmatpush.msrb.mxu0 %v5392_v58  ;;  %v3827_v22 = vand.u32 4294901760, %v1157_v19  ;;  %v1003_v0 = vadd.f32 %v971_v38, %v902_v35  ;;  %v989_v57 = vmul.f32 %v3352_v46, %v3802_v43  ;;  %1937 = vmatpush.msrb.mxu3 %v5395_v32  ;;  %v1090_v29 = vmul.f32 %v3357_v50, %v3813_v28  ;;  %v3838_v58 = vld [vmem:[%s3171_s25 + $0x60] sm:$0xff] }
  0x66   : > { %v818_v23 = vadd.f32 %v786_v45, %v717_v55  ;;  %v497_v9 = vadd.f32 %v465_v27, %v396_v11  ;;  %v668_v25 = vmul.f32 %v3279_v40, %v3667_v48  ;;  %v5396_v38 = vand.u32 4294901760, %v5390_v5  ;;  %v3850_v11 = vld [vmem:[%s3171_s25 + $0x61] sm:$0xff]  ;;  %2355 = vmatpush.msrb.mxu1 %v5395_v32 }
  0x67   : > { %5393 = vst [vmem:[#allocation10_spill] sm:$0xff] %v3827_v22  ;;  %v1241_v35 = vand.u32 4294901760, %v1240_v14  ;;  %v3843_v18 = vsub.f32 %v1157_v19, %v3827_v22  ;;  %v1104_v44 = vadd.f32 %v1072_v31, %v1003_v0  ;;  %1655 = vmatmul.f32.gmra.mxu3 %v3827_v22  ;;  %v769_v45 = vmul.f32 %v3295_v53, %v3670_v10  ;;  %v5398_v31 = vld [vmem:[#allocation20_spill] sm:$0xff] }
  0x68   : > { %2184 = vmatpush.msrb.mxu0 %v5396_v38  ;;  %v920_v27 = vadd.f32 %v888_v60, %v818_v23  ;;  %v599_v55 = vadd.f32 %v567_v6, %v497_v9  ;;  %v281_v5 = vmul.f32 %v3205_v54, %v3519_v49  ;;  %v382_v19 = vmul.f32 %v3228_v61, %v3527_v39  ;;  %v5399_v6 = vld [vmem:[#allocation16_spill] sm:$0xff] }
  0x69   : > { %5397 = vst [vmem:[#allocation6_spill] sm:$0xff] %v3843_v18  ;;  %1744 = vmatpush.msrb.mxu2 %v5398_v31  ;;  %1242 = vmatmul.f32.gmra.mxu0 %v1241_v35  ;;  %v5257_v14 = vand.u32 4294901760, %v3843_v18  ;;  %v1140_v0 = vadd.f32 %v3454_v21, %v1104_v44  ;;  %v871_v56 = vmul.f32 %v3328_v2, %v3838_v58  ;;  %v5400_v38 = vand.u32 4294901760, %v5394_v52 }
  0x6a   : > { %v483_v60 = vmul.f32 %v3240_v1, %v3537_v51  ;;  %1939 = vmatpush.msrb.mxu3 %v5399_v6  ;;  %v1021_v49 = vadd.f32 %v989_v57, %v920_v27  ;;  %v700_v23 = vadd.f32 %v668_v25, %v599_v55  ;;  %v414_v9 = vadd.f32 %v382_v19, %v281_v5  ;;  %v5401_v25 = vld [vmem:[#allocation21_spill] sm:$0xff]  ;;  %v3885_v19 = vld [vmem:[%s3171_s25 + $0x138] sm:$0xff] }
  0x6b   : > { %v585_v39 = vmul.f32 %v3255_v13, %v3703_v12  ;;  %2188 = vmatpush.msrb.mxu0 %v5400_v38  ;;  %v1384_v44 = vsub.f32 %v3843_v18, %v5257_v14  ;;  %v3874_v35 = vand.u32 4294901760, %v1140_v0  ;;  %v972_v51 = vmul.f32 %v3352_v46, %v3850_v11  ;;  %1747 = vmatpush.msrb.mxu2 %v5401_v25  ;;  %v5402_v38 = vld [vmem:[#allocation18_spill] sm:$0xff] }
  0x6c   : > { %v1073_v57 = vmul.f32 %v3357_v50, %v3853_v4  ;;  %v1122_v27 = vadd.f32 %v1090_v29, %v1021_v49  ;;  %v801_v52 = vadd.f32 %v769_v45, %v700_v23  ;;  %v515_v55 = vadd.f32 %v483_v60, %v414_v9  ;;  %1941 = vmatpush.msrb.mxu3 %v5402_v38  ;;  %v3900_v9 = vld [vmem:[%s3171_s25 + $0x139] sm:$0xff] }
  0x6d   : > { %v686_v5 = vmul.f32 %v3279_v40, %v3714_v20  ;;  %v1385_v14 = vand.u32 4294901760, %v1384_v44  ;;  %v3889_v22 = vsub.f32 %v1140_v0, %v3874_v35  ;;  %1587 = vmatmul.f32.gmra.mxu1 %v3874_v35  ;;  %v787_v32 = vmul.f32 %v3295_v53, %v3717_v16  ;;  %v3903_v44 = vld [vmem:[%s3171_s25 + $0x13a] sm:$0xff] }
  0x6e   : > { %v264_v29 = vmul.f32 %v3205_v54, %v3565_v59  ;;  %v5403_v45 = vand.u32 4294901760, %v5398_v31  ;;  %v1158_v60 = vadd.f32 %v3454_v21, %v1122_v27  ;;  %v903_v49 = vadd.f32 %v871_v56, %v801_v52  ;;  %2357 = vmatpush.msrb.mxu1 %v5399_v6  ;;  %v5404_v56 = vld [vmem:[#allocation19_spill] sm:$0xff] }
  0x6f   : > { %v617_v23 = vadd.f32 %v585_v39, %v515_v55  ;;  %v365_v0 = vmul.f32 %v3228_v61, %v3568_v47  ;;  %1386 = vmatmul.f32.gmra.mxu2 %v1385_v14  ;;  %v5264_v18 = vand.u32 4294901760, %v3889_v22  ;;  %v889_v54 = vmul.f32 %v3328_v2, %v3885_v19  ;;  %1943 = vmatpush.msrb.mxu3 %v5404_v56  ;;  %v5406_v14 = vld [vmem:[#allocation22_spill] sm:$0xff] }
  0x70   : > { %2192 = vmatpush.msrb.mxu0 %v5403_v45  ;;  %v466_v59 = vmul.f32 %v3240_v1, %v3579_v42  ;;  %v568_v31 = vmul.f32 %v3255_v13, %v3746_v63  ;;  %v3916_v39 = vand.u32 4294901760, %v1158_v60  ;;  %v1004_v47 = vadd.f32 %v972_v51, %v903_v49  ;;  %1750 = vmatpush.msrb.mxu2 %v5406_v14  ;;  %v3936_v49 = vld [vmem:[%s3171_s25 + $0x68] sm:$0xff] }
  0x71   : > { %v718_v27 = vadd.f32 %v686_v5, %v617_v23  ;;  %v397_v6 = vadd.f32 %v365_v0, %v264_v29  ;;  %v5407_v52 = vand.u32 4294901760, %v5401_v25  ;;  %v1248_v1 = vsub.f32 %v3889_v22, %v5264_v18  ;;  %2359 = vmatpush.msrb.mxu1 %v5402_v38  ;;  %v3943_v38 = vld [vmem:[%s5183_s1] ss:$0 sm:$0xff]  ;;  %v4080_v18 = vld [vmem:[%s5183_s1 + $0x7] ss:$0 sm:$0xff] }
  0x72   : > { %5405 = vst [vmem:[#allocation12_spill] sm:$0xff] %v3916_v39  ;;  %v990_v42 = vmul.f32 %v3352_v46, %v3900_v9  ;;  %v1091_v55 = vmul.f32 %v3357_v50, %v3903_v44  ;;  %v669_v51 = vmul.f32 %v3279_v40, %v3758_v24  ;;  %v3932_v5 = vsub.f32 %v1158_v60, %v3916_v39 }
  0x73   : > { %2196 = vmatpush.msrb.mxu0 %v5407_v52  ;;  %v1105_v25 = vadd.f32 %v1073_v57, %v1004_v47  ;;  %1659 = vmatmul.f32.gmra.mxu3 %v3916_v39  ;;  %v819_v29 = vadd.f32 %v787_v32, %v718_v27  ;;  %v498_v45 = vadd.f32 %v466_v59, %v397_v6  ;;  %v1249_v23 = vand.u32 4294901760, %v1248_v1  ;;  %v3955_v52 = vld [vmem:[%s3171_s25 + $0x69] sm:$0xff] }
  0x74   : > { %5408 = vst [vmem:[#allocation7_spill] sm:$0xff] %v3932_v5  ;;  %v770_v0 = vmul.f32 %v3295_v53, %v3766_v30  ;;  %v282_v57 = vmul.f32 %v3943_v38, %v3606_v33  ;;  %v383_v60 = vmul.f32 %v3228_v61, %v3619_v7  ;;  %v5409_v32 = vand.u32 4294901760, %v5406_v14  ;;  %2361 = vmatpush.msrb.mxu1 %v5404_v56  ;;  %v3958_v1 = vld [vmem:[%s3171_s25 + $0x6a] sm:$0xff]  ;;  %v3965_v7 = vld [vmem:[%s5183_s1 + $0x2] ss:$0 sm:$0xff] }
  0x75   : > { %v5262_v59 = vand.u32 4294901760, %v3932_v5  ;;  %v1141_v47 = vadd.f32 %v3454_v21, %v1105_v25  ;;  %v921_v27 = vadd.f32 %v889_v54, %v819_v29  ;;  %v600_v6 = vadd.f32 %v568_v31, %v498_v45  ;;  %1250 = vmatmul.f32.gmra.mxu0 %v1249_v23 }
  0x76   : > { %2200 = vmatpush.msrb.mxu0 %v5409_v32  ;;  %v872_v33 = vmul.f32 %v3328_v2, %v3936_v49  ;;  %v415_v61 = vadd.f32 %v383_v60, %v282_v57  ;;  %v484_v56 = vmul.f32 %v3965_v7, %v3622_v26  ;;  %v586_v54 = vmul.f32 %v3255_v13, %v3799_v34 }
  0x77   : > { %v1392_v31 = vsub.f32 %v3932_v5, %v5262_v59  ;;  %v3974_v14 = vand.u32 4294901760, %v1141_v47  ;;  %v1022_v25 = vadd.f32 %v990_v42, %v921_v27  ;;  %v701_v29 = vadd.f32 %v669_v51, %v600_v6  ;;  %v3987_v51 = vld [vmem:[%s3171_s25 + $0x140] sm:$0xff] }
  0x78   : > { %v973_v45 = vmul.f32 %v3352_v46, %v3955_v52  ;;  %v1074_v23 = vmul.f32 %v3357_v50, %v3958_v1  ;;  %v516_v57 = vadd.f32 %v484_v56, %v415_v61  ;;  %v687_v26 = vmul.f32 %v3279_v40, %v3802_v43  ;;  %v3992_v59 = vld [vmem:[%s3171_s25 + $0x141] sm:$0xff] }
  0x79   : > { %5410 = vst [vmem:[#allocation14_spill] sm:$0xff] %v3974_v14  ;;  %v1393_v13 = vand.u32 4294901760, %v1392_v31  ;;  %v3983_v60 = vsub.f32 %v1141_v47, %v3974_v14  ;;  %1591 = vmatmul.f32.gmra.mxu1 %v3974_v14  ;;  %v1123_v32 = vadd.f32 %v1091_v55, %v1022_v25  ;;  %v802_v42 = vadd.f32 %v770_v0, %v701_v29  ;;  %v3999_v47 = vld [vmem:[%s5183_s1 + $0x1] ss:$0 sm:$0xff] }
  0x7a   : > { %v618_v27 = vadd.f32 %v586_v54, %v516_v57  ;;  %v788_v6 = vmul.f32 %v3295_v53, %v3813_v28  ;;  %v265_v40 = vmul.f32 %v3943_v38, %v3653_v41  ;;  %v366_v55 = vmul.f32 %v3999_v47, %v3667_v48  ;;  %v4006_v53 = vld [vmem:[%s3171_s25 + $0x142] sm:$0xff] }
  0x7b   : > { %1394 = vmatmul.f32.gmra.mxu2 %v1393_v13  ;;  %v5263_v0 = vand.u32 4294901760, %v3983_v60  ;;  %v1159_v61 = vadd.f32 %v3454_v21, %v1123_v32  ;;  %v904_v56 = vadd.f32 %v872_v33, %v802_v42  ;;  %v467_v41 = vmul.f32 %v3965_v7, %v3670_v10  ;;  %v4015_v48 = vld [vmem:[%s5183_s1 + $0x3] ss:$0 sm:$0xff]  ;;  %v4031_v42 = vld [vmem:[%s5183_s1 + $0x4] ss:$0 sm:$0xff] }
  0x7c   : > { %v719_v54 = vadd.f32 %v687_v26, %v618_v27  ;;  %v890_v31 = vmul.f32 %v3328_v2, %v3987_v51  ;;  %v398_v25 = vadd.f32 %v366_v55, %v265_v40  ;;  %v569_v29 = vmul.f32 %v4015_v48, %v3838_v58  ;;  %v4036_v40 = vld [vmem:[%s3171_s25 + $0x78] sm:$0xff] }
  0x7d   : > { %v1256_v33 = vsub.f32 %v3983_v60, %v5263_v0  ;;  %v4022_v57 = vand.u32 4294901760, %v1159_v61  ;;  %v1005_v10 = vadd.f32 %v973_v45, %v904_v56  ;;  %v991_v2 = vmul.f32 %v3352_v46, %v3992_v59 }
  0x7e   : > { %v820_v26 = vadd.f32 %v788_v6, %v719_v54  ;;  %v1092_v13 = vmul.f32 %v3357_v50, %v4006_v53  ;;  %v499_v32 = vadd.f32 %v467_v41, %v398_v25  ;;  %v670_v27 = vmul.f32 %v4031_v42, %v3850_v11  ;;  %v4045_v50 = vld [vmem:[%s5183_s1 + $0x5] ss:$0 sm:$0xff]  ;;  %v4050_v54 = vld [vmem:[%s3171_s25 + $0x79] sm:$0xff] }
  0x7f   : > { %5411 = vst [vmem:[#allocation9_spill] sm:$0xff] %v4022_v57  ;;  %v1257_v45 = vand.u32 4294901760, %v1256_v33  ;;  %v4039_v55 = vsub.f32 %v1159_v61, %v4022_v57  ;;  %v1106_v46 = vadd.f32 %v1074_v23, %v1005_v10  ;;  %1663 = vmatmul.f32.gmra.mxu3 %v4022_v57  ;;  %v771_v6 = vmul.f32 %v4045_v50, %v3853_v4  ;;  %v4053_v25 = vld [vmem:[%s3171_s25 + $0x7a] sm:$0xff] }
  0x80   : > { %v922_v56 = vadd.f32 %v890_v31, %v820_v26  ;;  %v601_v41 = vadd.f32 %v569_v29, %v499_v32  ;;  %v283_v61 = vmul.f32 %v3943_v38, %v3703_v12  ;;  %v384_v23 = vmul.f32 %v3999_v47, %v3714_v20  ;;  %v4064_v31 = vld [vmem:[%s5183_s1 + $0x6] ss:$0 sm:$0xff] }
  0x81   : > { %5412 = vst [vmem:[#allocation15_spill] sm:$0xff] %v4039_v55  ;;  %1258 = vmatmul.f32.gmra.mxu0 %v1257_v45  ;;  %v5265_v33 = vand.u32 4294901760, %v4039_v55  ;;  %v1142_v10 = vadd.f32 %v3454_v21, %v1106_v46  ;;  %v873_v29 = vmul.f32 %v4064_v31, %v4036_v40  ;;  %v485_v12 = vmul.f32 %v3965_v7, %v3717_v16 }
  0x82   : > { %v1023_v26 = vadd.f32 %v991_v2, %v922_v56  ;;  %v702_v32 = vadd.f32 %v670_v27, %v601_v41  ;;  %v416_v20 = vadd.f32 %v384_v23, %v283_v61  ;;  %v587_v45 = vmul.f32 %v4015_v48, %v3885_v19  ;;  %v4087_v2 = vld [vmem:[%s5183_s1 + $0x8] ss:$0 sm:$0xff] }
  0x83   : > { %v1400_v46 = vsub.f32 %v4039_v55, %v5265_v33  ;;  %v4075_v0 = vand.u32 4294901760, %v1142_v10  ;;  %v974_v16 = vmul.f32 %v4080_v18, %v4050_v54  ;;  %v1075_v27 = vmul.f32 %v4087_v2, %v4053_v25  ;;  %v4094_v33 = vld [vmem:[%s3171_s25 + $0x150] sm:$0xff] }
  0x84   : > { %v1124_v56 = vadd.f32 %v1092_v13, %v1023_v26  ;;  %v803_v41 = vadd.f32 %v771_v6, %v702_v32  ;;  %v517_v61 = vadd.f32 %v485_v12, %v416_v20  ;;  %v688_v23 = vmul.f32 %v4031_v42, %v3900_v9  ;;  %v4106_v26 = vld [vmem:[%s3171_s25 + $0x151] sm:$0xff] }
  0x85   : > { %5413 = vst [vmem:[#allocation11_spill] sm:$0xff] %v4075_v0  ;;  %v1401_v57 = vand.u32 4294901760, %v1400_v46  ;;  %v4097_v39 = vsub.f32 %v1142_v10, %v4075_v0  ;;  %1595 = vmatmul.f32.gmra.mxu1 %v4075_v0  ;;  %v789_v55 = vmul.f32 %v4045_v50, %v3903_v44  ;;  %v266_v5 = vmul.f32 %v3943_v38, %v3746_v63  ;;  %v4109_v32 = vld [vmem:[%s3171_s25 + $0x152] sm:$0xff] }
  0x86   : > { %v1160_v13 = vadd.f32 %v3454_v21, %v1124_v56  ;;  %v905_v6 = vadd.f32 %v873_v29, %v803_v41  ;;  %v619_v12 = vadd.f32 %v587_v45, %v517_v61  ;;  %v367_v10 = vmul.f32 %v3999_v47, %v3758_v24 }
  0x87   : > { %1402 = vmatmul.f32.gmra.mxu2 %v1401_v57  ;;  %v5278_v20 = vand.u32 4294901760, %v4097_v39  ;;  %v891_v46 = vmul.f32 %v4064_v31, %v4094_v33  ;;  %v468_v63 = vmul.f32 %v3965_v7, %v3766_v30  ;;  %v570_v29 = vmul.f32 %v4015_v48, %v3936_v49 }
  0x88   : > { %v4120_v45 = vand.u32 4294901760, %v1160_v13  ;;  %v1006_v56 = vadd.f32 %v974_v16, %v905_v6  ;;  %v720_v41 = vadd.f32 %v688_v23, %v619_v12  ;;  %v399_v61 = vadd.f32 %v367_v10, %v266_v5  ;;  %v4136_v6 = vld [vmem:[%s3171_s25 + $0x80] sm:$0xff] }
  0x89   : > { %v1264_v24 = vsub.f32 %v4097_v39, %v5278_v20  ;;  %v992_v57 = vmul.f32 %v4080_v18, %v4106_v26  ;;  %v1093_v3 = vmul.f32 %v4087_v2, %v4109_v32  ;;  %v671_v30 = vmul.f32 %v4031_v42, %v3955_v52 }
  0x8a   : > { %5414 = vst [vmem:[#allocation17_spill] sm:$0xff] %v4120_v45  ;;  %v4132_v0 = vsub.f32 %v1160_v13, %v4120_v45  ;;  %v1107_v16 = vadd.f32 %v1075_v27, %v1006_v56  ;;  %1667 = vmatmul.f32.gmra.mxu3 %v4120_v45  ;;  %v821_v5 = vadd.f32 %v789_v55, %v720_v41  ;;  %v4147_v55 = vld [vmem:[%s3171_s25 + $0x81] sm:$0xff] }
  0x8b   : > { %v500_v23 = vadd.f32 %v468_v63, %v399_v61  ;;  %v1265_v12 = vand.u32 4294901760, %v1264_v24  ;;  %v772_v10 = vmul.f32 %v4045_v50, %v3958_v1  ;;  %v284_v20 = vmul.f32 %v3943_v38, %v3799_v34  ;;  %v4150_v63 = vld [vmem:[%s3171_s25 + $0x82] sm:$0xff] }
  0x8c   : > { %5415 = vst [vmem:[#allocation13_spill] sm:$0xff] %v4132_v0  ;;  %v385_v14 = vmul.f32 %v3999_v47, %v3802_v43  ;;  %v5283_v13 = vand.u32 4294901760, %v4132_v0  ;;  %v1143_v27 = vadd.f32 %v3454_v21, %v1107_v16  ;;  %v923_v56 = vadd.f32 %v891_v46, %v821_v5 }
  0x8d   : > { %v602_v45 = vadd.f32 %v570_v29, %v500_v23  ;;  %1266 = vmatmul.f32.gmra.mxu0 %v1265_v12  ;;  %v874_v41 = vmul.f32 %v4064_v31, %v4136_v6  ;;  %v486_v34 = vmul.f32 %v3965_v7, %v3813_v28  ;;  %v588_v43 = vmul.f32 %v4015_v48, %v3987_v51 }
  0x8e   : > { %v417_v61 = vadd.f32 %v385_v14, %v284_v20  ;;  %v1408_v21 = vsub.f32 %v4132_v0, %v5283_v13  ;;  %v4161_v46 = vand.u32 4294901760, %v1143_v27  ;;  %v1024_v29 = vadd.f32 %v992_v57, %v923_v56  ;;  %v4179_v13 = vld [vmem:[%s3171_s25 + $0x159] sm:$0xff] }
  0x8f   : > { %v703_v24 = vadd.f32 %v671_v30, %v602_v45  ;;  %v975_v16 = vmul.f32 %v4080_v18, %v4147_v55  ;;  %v1076_v14 = vmul.f32 %v4087_v2, %v4150_v63  ;;  %v689_v28 = vmul.f32 %v4031_v42, %v3992_v59  ;;  %v4174_v45 = vld [vmem:[%s3171_s25 + $0x158] sm:$0xff] }
  0x90   : > { %5416 = vst [vmem:[#allocation20_spill] sm:$0xff] %v4161_v46  ;;  %v518_v20 = vadd.f32 %v486_v34, %v417_v61  ;;  %v1409_v5 = vand.u32 4294901760, %v1408_v21  ;;  %v4170_v23 = vsub.f32 %v1143_v27, %v4161_v46  ;;  %1599 = vmatmul.f32.gmra.mxu1 %v4161_v46  ;;  %v1125_v12 = vadd.f32 %v1093_v3, %v1024_v29  ;;  %v4189_v3 = vld [vmem:[%s5184_s2] ss:$0 sm:$0xff] }
  0x91   : > { %v804_v57 = vadd.f32 %v772_v10, %v703_v24  ;;  %v790_v56 = vmul.f32 %v4045_v50, %v4006_v53  ;;  %v267_v61 = vmul.f32 %v3943_v38, %v3838_v58  ;;  %v368_v34 = vmul.f32 %v3999_v47, %v3850_v11  ;;  %v4193_v21 = vld [vmem:[%s3171_s25 + $0x15a] sm:$0xff] }
  0x92   : > { %5417 = vst [vmem:[#allocation16_spill] sm:$0xff] %v4170_v23  ;;  %v620_v30 = vadd.f32 %v588_v43, %v518_v20  ;;  %1410 = vmatmul.f32.gmra.mxu2 %v1409_v5  ;;  %v5286_v27 = vand.u32 4294901760, %v4170_v23  ;;  %v1161_v10 = vadd.f32 %v4189_v3, %v1125_v12  ;;  %v469_v58 = vmul.f32 %v3965_v7, %v3853_v4 }
  0x93   : > { %v906_v43 = vadd.f32 %v874_v41, %v804_v57  ;;  %v892_v11 = vmul.f32 %v4064_v31, %v4174_v45  ;;  %v400_v24 = vadd.f32 %v368_v34, %v267_v61  ;;  %v571_v20 = vmul.f32 %v4015_v48, %v4036_v40  ;;  %v4213_v34 = vld [vmem:[%s3171_s25 + $0x90] sm:$0xff] }
  0x94   : > { %v721_v29 = vadd.f32 %v689_v28, %v620_v30  ;;  %v1272_v5 = vsub.f32 %v4170_v23, %v5286_v27  ;;  %v4204_v12 = vand.u32 4294901760, %v1161_v10  ;;  %v993_v4 = vmul.f32 %v4080_v18, %v4179_v13 }
  0x95   : > { %v1007_v41 = vadd.f32 %v975_v16, %v906_v43  ;;  %v1094_v57 = vmul.f32 %v4087_v2, %v4193_v21  ;;  %v501_v30 = vadd.f32 %v469_v58, %v400_v24  ;;  %v672_v61 = vmul.f32 %v4031_v42, %v4050_v54  ;;  %v4225_v58 = vld [vmem:[%s3171_s25 + $0x92] sm:$0xff] }
  0x96   : > { %5418 = vst [vmem:[#allocation21_spill] sm:$0xff] %v4204_v12  ;;  %v822_v28 = vadd.f32 %v790_v56, %v721_v29  ;;  %v1273_v0 = vand.u32 4294901760, %v1272_v5  ;;  %v4216_v27 = vsub.f32 %v1161_v10, %v4204_v12  ;;  %1671 = vmatmul.f32.gmra.mxu3 %v4204_v12  ;;  %v773_v16 = vmul.f32 %v4045_v50, %v4053_v25  ;;  %v4222_v29 = vld [vmem:[%s3171_s25 + $0x91] sm:$0xff] }
  0x97   : > { %v1108_v46 = vadd.f32 %v1076_v14, %v1007_v41  ;;  %v603_v43 = vadd.f32 %v571_v20, %v501_v30  ;;  %v285_v24 = vmul.f32 %v3943_v38, %v3885_v19  ;;  %v386_v5 = vmul.f32 %v3999_v47, %v3900_v9 }
  0x98   : > { %5419 = vst [vmem:[#allocation18_spill] sm:$0xff] %v4216_v27  ;;  %v924_v56 = vadd.f32 %v892_v11, %v822_v28  ;;  %1274 = vmatmul.f32.gmra.mxu0 %v1273_v0  ;;  %v5289_v14 = vand.u32 4294901760, %v4216_v27  ;;  %v875_v11 = vmul.f32 %v4064_v31, %v4213_v34  ;;  %v487_v20 = vmul.f32 %v3965_v7, %v3903_v44 }
  0x99   : > { %v1144_v10 = vadd.f32 %v4189_v3, %v1108_v46  ;;  %v704_v28 = vadd.f32 %v672_v61, %v603_v43  ;;  %v418_v30 = vadd.f32 %v386_v5, %v285_v24  ;;  %v589_v19 = vmul.f32 %v4015_v48, %v4094_v33  ;;  %v4251_v24 = vld [vmem:[%s3171_s25 + $0x168] sm:$0xff] }
  0x9a   : > { %v1025_v41 = vadd.f32 %v993_v4, %v924_v56  ;;  %v1416_v9 = vsub.f32 %v4216_v27, %v5289_v14  ;;  %v976_v46 = vmul.f32 %v4080_v18, %v4222_v29  ;;  %v1077_v44 = vmul.f32 %v4087_v2, %v4225_v58 }
  0x9b   : > { %v4242_v0 = vand.u32 4294901760, %v1144_v10  ;;  %v805_v61 = vadd.f32 %v773_v16, %v704_v28  ;;  %v519_v56 = vadd.f32 %v487_v20, %v418_v30  ;;  %v690_v43 = vmul.f32 %v4031_v42, %v4106_v26  ;;  %v4266_v28 = vld [vmem:[%s3171_s25 + $0x16a] sm:$0xff] }
  0x9c   : > { %v1126_v4 = vadd.f32 %v1094_v57, %v1025_v41  ;;  %v1417_v5 = vand.u32 4294901760, %v1416_v9  ;;  %v791_v12 = vmul.f32 %v4045_v50, %v4109_v32  ;;  %v268_v27 = vmul.f32 %v3943_v38, %v3936_v49  ;;  %v4263_v41 = vld [vmem:[%s3171_s25 + $0x169] sm:$0xff] }
  0x9d   : > { %5420 = vst [vmem:[#allocation19_spill] sm:$0xff] %v4242_v0  ;;  %v4254_v14 = vsub.f32 %v1144_v10, %v4242_v0  ;;  %1603 = vmatmul.f32.gmra.mxu1 %v4242_v0  ;;  %v907_v16 = vadd.f32 %v875_v11, %v805_v61  ;;  %v621_v20 = vadd.f32 %v589_v19, %v519_v56 }
  0x9e   : > { %v1162_v57 = vadd.f32 %v4189_v3, %v1126_v4  ;;  %v369_v10 = vmul.f32 %v3999_v47, %v3955_v52  ;;  %1418 = vmatmul.f32.gmra.mxu2 %v1417_v5  ;;  %v893_v9 = vmul.f32 %v4064_v31, %v4251_v24  ;;  %v470_v49 = vmul.f32 %v3965_v7, %v3958_v1 }
  0x9f   : > { %5421 = vst [vmem:[#allocation22_spill] sm:$0xff] %v4254_v14  ;;  %v5298_v30 = vand.u32 4294901760, %v4254_v14  ;;  %v572_v11 = vmul.f32 %v4015_v48, %v4136_v6  ;;  %v1008_v4 = vadd.f32 %v976_v46, %v907_v16  ;;  %v722_v61 = vadd.f32 %v690_v43, %v621_v20  ;;  %v4293_v16 = vld [vmem:[%s3171_s25 + $0x98] sm:$0xff] }
  0xa0   : > { %v4277_v19 = vand.u32 4294901760, %v1162_v57  ;;  %v401_v56 = vadd.f32 %v369_v10, %v268_v27  ;;  %v994_v5 = vmul.f32 %v4080_v18, %v4263_v41  ;;  %v1095_v0 = vmul.f32 %v4087_v2, %v4266_v28 }
  0xa1   : > { %v1280_v52 = vsub.f32 %v4254_v14, %v5298_v30  ;;  %v673_v1 = vmul.f32 %v4031_v42, %v4147_v55  ;;  %v1109_v46 = vadd.f32 %v1077_v44, %v1008_v4  ;;  %v823_v27 = vadd.f32 %v791_v12, %v722_v61  ;;  %v4304_v12 = vld [vmem:[%s3171_s25 + $0x99] sm:$0xff] }
  0xa2   : > { %5422 = vst [vmem:[#allocation29_spill] sm:$0xff] %v4277_v19  ;;  %v4289_v23 = vsub.f32 %v1162_v57, %v4277_v19  ;;  %1675 = vmatmul.f32.gmra.mxu3 %v4277_v19  ;;  %v502_v43 = vadd.f32 %v470_v49, %v401_v56  ;;  %v774_v10 = vmul.f32 %v4045_v50, %v4150_v63  ;;  %v4307_v49 = vld [vmem:[%s3171_s25 + $0x9a] sm:$0xff] }
  0xa3   : > { %v1281_v20 = vand.u32 4294901760, %v1280_v52  ;;  %v286_v30 = vmul.f32 %v3943_v38, %v3987_v51  ;;  %v387_v14 = vmul.f32 %v3999_v47, %v3992_v59  ;;  %v1145_v44 = vadd.f32 %v4189_v3, %v1109_v46 }
  0xa4   : > { %5423 = vst [vmem:[#allocation30_spill] sm:$0xff] %v4289_v23  ;;  %v5303_v57 = vand.u32 4294901760, %v4289_v23  ;;  %v925_v4 = vadd.f32 %v893_v9, %v823_v27  ;;  %v604_v19 = vadd.f32 %v572_v11, %v502_v43  ;;  %v876_v61 = vmul.f32 %v4064_v31, %v4293_v16 }
  0xa5   : > { %1282 = vmatmul.f32.gmra.mxu0 %v1281_v20  ;;  %v419_v56 = vadd.f32 %v387_v14, %v286_v30  ;;  %v488_v51 = vmul.f32 %v3965_v7, %v4006_v53  ;;  %v590_v59 = vmul.f32 %v4015_v48, %v4174_v45  ;;  %v4318_v11 = vand.u32 4294901760, %v1145_v44 }
  0xa6   : > { %v1424_v9 = vsub.f32 %v4289_v23, %v5303_v57  ;;  %v1026_v52 = vadd.f32 %v994_v5, %v925_v4  ;;  %v705_v46 = vadd.f32 %v673_v1, %v604_v19  ;;  %v977_v27 = vmul.f32 %v4080_v18, %v4304_v12  ;;  %v4331_v19 = vld [vmem:[%s3171_s25 + $0x170] sm:$0xff] }
  0xa7   : > { %5424 = vst [vmem:[#allocation31_spill] sm:$0xff] %v4318_v11  ;;  %v1078_v14 = vmul.f32 %v4087_v2, %v4307_v49  ;;  %v520_v30 = vadd.f32 %v488_v51, %v419_v56  ;;  %v691_v53 = vmul.f32 %v4031_v42, %v4179_v13  ;;  %v4327_v20 = vsub.f32 %v1145_v44, %v4318_v11  ;;  %v4336_v23 = vld [vmem:[%s3171_s25 + $0x171] sm:$0xff] }
  0xa8   : > { %v1425_v43 = vand.u32 4294901760, %v1424_v9  ;;  %1607 = vmatmul.f32.gmra.mxu1 %v4318_v11  ;;  %v1127_v57 = vadd.f32 %v1095_v0, %v1026_v52  ;;  %v806_v5 = vadd.f32 %v774_v10, %v705_v46  ;;  %v792_v4 = vmul.f32 %v4045_v50, %v4193_v21  ;;  %v4345_v9 = vld [vmem:[%s3171_s25 + $0x172] sm:$0xff] }
  0xa9   : > { %5425 = vst [vmem:[#allocation32_spill] sm:$0xff] %v4327_v20  ;;  %v622_v1 = vadd.f32 %v590_v59, %v520_v30  ;;  %v269_v56 = vmul.f32 %v3943_v38, %v4036_v40  ;;  %v370_v51 = vmul.f32 %v3999_v47, %v4050_v54  ;;  %v5306_v44 = vand.u32 4294901760, %v4327_v20 }
  0xaa   : > { %1426 = vmatmul.f32.gmra.mxu2 %v1425_v43  ;;  %v1163_v0 = vadd.f32 %v4189_v3, %v1127_v57  ;;  %v908_v10 = vadd.f32 %v876_v61, %v806_v5  ;;  %v471_v59 = vmul.f32 %v3965_v7, %v4053_v25  ;;  %v894_v46 = vmul.f32 %v4064_v31, %v4331_v19 }
  0xab   : > { %v723_v52 = vadd.f32 %v691_v53, %v622_v1  ;;  %v402_v40 = vadd.f32 %v370_v51, %v269_v56  ;;  %v573_v54 = vmul.f32 %v4015_v48, %v4213_v34  ;;  %v1288_v30 = vsub.f32 %v4327_v20, %v5306_v44  ;;  %v4365_v56 = vld [vmem:[%s3171_s25 + $0xa8] sm:$0xff] }
  0xac   : > { %v4356_v57 = vand.u32 4294901760, %v1163_v0  ;;  %v1009_v61 = vadd.f32 %v977_v27, %v908_v10  ;;  %v995_v25 = vmul.f32 %v4080_v18, %v4336_v23  ;;  %v1096_v43 = vmul.f32 %v4087_v2, %v4345_v9 }
  0xad   : > { %v824_v53 = vadd.f32 %v792_v4, %v723_v52  ;;  %v503_v5 = vadd.f32 %v471_v59, %v402_v40  ;;  %v674_v1 = vmul.f32 %v4031_v42, %v4222_v29  ;;  %v1289_v51 = vand.u32 4294901760, %v1288_v30  ;;  %v4374_v52 = vld [vmem:[%s3171_s25 + $0xa9] sm:$0xff] }
  0xae   : > { %5426 = vst [vmem:[#allocation33_spill] sm:$0xff] %v4356_v57  ;;  %v4368_v44 = vsub.f32 %v1163_v0, %v4356_v57  ;;  %v1110_v11 = vadd.f32 %v1078_v14, %v1009_v61  ;;  %1679 = vmatmul.f32.gmra.mxu3 %v4356_v57  ;;  %v775_v27 = vmul.f32 %v4045_v50, %v4225_v58  ;;  %v4377_v59 = vld [vmem:[%s3171_s25 + $0xaa] sm:$0xff] }
  0xaf   : > { %v926_v4 = vadd.f32 %v894_v46, %v824_v53  ;;  %v605_v10 = vadd.f32 %v573_v54, %v503_v5  ;;  %v287_v40 = vmul.f32 %v3943_v38, %v4094_v33  ;;  %v388_v30 = vmul.f32 %v3999_v47, %v4106_v26  ;;  %1290 = vmatmul.f32.gmra.mxu0 %v1289_v51 }
  0xb0   : > { %5427 = vst [vmem:[#allocation34_spill] sm:$0xff] %v4368_v44  ;;  %v5309_v14 = vand.u32 4294901760, %v4368_v44  ;;  %v1146_v0 = vadd.f32 %v4189_v3, %v1110_v11  ;;  %v877_v46 = vmul.f32 %v4064_v31, %v4365_v56  ;;  %v489_v54 = vmul.f32 %v3965_v7, %v4109_v32 }
  0xb1   : > { %v1027_v61 = vadd.f32 %v995_v25, %v926_v4  ;;  %v706_v53 = vadd.f32 %v674_v1, %v605_v10  ;;  %v420_v5 = vadd.f32 %v388_v30, %v287_v40  ;;  %v591_v33 = vmul.f32 %v4015_v48, %v4251_v24  ;;  %v4403_v40 = vld [vmem:[%s3171_s25 + $0x180] sm:$0xff] }
  0xb2   : > { %v1432_v26 = vsub.f32 %v4368_v44, %v5309_v14  ;;  %v4394_v51 = vand.u32 4294901760, %v1146_v0  ;;  %v978_v11 = vmul.f32 %v4080_v18, %v4374_v52  ;;  %v1079_v32 = vmul.f32 %v4087_v2, %v4377_v59 }
  0xb3   : > { %v1128_v25 = vadd.f32 %v1096_v43, %v1027_v61  ;;  %v807_v1 = vadd.f32 %v775_v27, %v706_v53  ;;  %v521_v4 = vadd.f32 %v489_v54, %v420_v5  ;;  %v692_v10 = vmul.f32 %v4031_v42, %v4263_v41  ;;  %v4415_v61 = vld [vmem:[%s3171_s25 + $0x181] sm:$0xff] }
  0xb4   : > { %5428 = vst [vmem:[#allocation35_spill] sm:$0xff] %v4394_v51  ;;  %v1433_v30 = vand.u32 4294901760, %v1432_v26  ;;  %v4406_v14 = vsub.f32 %v1146_v0, %v4394_v51  ;;  %1611 = vmatmul.f32.gmra.mxu1 %v4394_v51  ;;  %v793_v57 = vmul.f32 %v4045_v50, %v4266_v28  ;;  %v270_v44 = vmul.f32 %v3943_v38, %v4136_v6  ;;  %v4418_v53 = vld [vmem:[%s3171_s25 + $0x182] sm:$0xff] }
  0xb5   : > { %v1164_v43 = vadd.f32 %v4189_v3, %v1128_v25  ;;  %v909_v27 = vadd.f32 %v877_v46, %v807_v1  ;;  %v623_v54 = vadd.f32 %v591_v33, %v521_v4  ;;  %v371_v0 = vmul.f32 %v3999_v47, %v4147_v55 }
  0xb6   : > { %5429 = vst [vmem:[#allocation36_spill] sm:$0xff] %v4406_v14  ;;  %1434 = vmatmul.f32.gmra.mxu2 %v1433_v30  ;;  %v5318_v5 = vand.u32 4294901760, %v4406_v14  ;;  %v895_v26 = vmul.f32 %v4064_v31, %v4403_v40  ;;  %v472_v6 = vmul.f32 %v3965_v7, %v4150_v63  ;;  %v574_v46 = vmul.f32 %v4015_v48, %v4293_v16 }
  0xb7   : > { %v4429_v33 = vand.u32 4294901760, %v1164_v43  ;;  %v1010_v25 = vadd.f32 %v978_v11, %v909_v27  ;;  %v724_v1 = vadd.f32 %v692_v10, %v623_v54  ;;  %v403_v4 = vadd.f32 %v371_v0, %v270_v44  ;;  %v4445_v27 = vld [vmem:[%s3171_s25 + $0xb0] sm:$0xff] }
  0xb8   : > { %v1296_v55 = vsub.f32 %v4406_v14, %v5318_v5  ;;  %v996_v30 = vmul.f32 %v4080_v18, %v4415_v61  ;;  %v1097_v51 = vmul.f32 %v4087_v2, %v4418_v53  ;;  %v675_v63 = vmul.f32 %v4031_v42, %v4304_v12 }
  0xb9   : > { %5430 = vst [vmem:[#allocation37_spill] sm:$0xff] %v4429_v33  ;;  %v4441_v20 = vsub.f32 %v1164_v43, %v4429_v33  ;;  %v1111_v11 = vadd.f32 %v1079_v32, %v1010_v25  ;;  %1683 = vmatmul.f32.gmra.mxu3 %v4429_v33  ;;  %v825_v44 = vadd.f32 %v793_v57, %v724_v1  ;;  %v4456_v57 = vld [vmem:[%s3171_s25 + $0xb1] sm:$0xff] }
  0xba   : > { %v504_v10 = vadd.f32 %v472_v6, %v403_v4  ;;  %v1297_v54 = vand.u32 4294901760, %v1296_v55  ;;  %v776_v0 = vmul.f32 %v4045_v50, %v4307_v49  ;;  %v288_v5 = vmul.f32 %v3943_v38, %v4174_v45  ;;  %v4459_v6 = vld [vmem:[%s3171_s25 + $0xb2] sm:$0xff] }
  0xbb   : > { %5431 = vst [vmem:[#allocation38_spill] sm:$0xff] %v4441_v20  ;;  %v389_v14 = vmul.f32 %v3999_v47, %v4179_v13  ;;  %v5323_v43 = vand.u32 4294901760, %v4441_v20  ;;  %v1147_v32 = vadd.f32 %v4189_v3, %v1111_v11  ;;  %v927_v25 = vadd.f32 %v895_v26, %v825_v44 }
  0xbc   : > { %v606_v33 = vadd.f32 %v574_v46, %v504_v10  ;;  %1298 = vmatmul.f32.gmra.mxu0 %v1297_v54  ;;  %v878_v1 = vmul.f32 %v4064_v31, %v4445_v27  ;;  %v490_v45 = vmul.f32 %v3965_v7, %v4193_v21  ;;  %v592_v13 = vmul.f32 %v4015_v48, %v4331_v19 }
  0xbd   : > { %v421_v4 = vadd.f32 %v389_v14, %v288_v5  ;;  %v1440_v26 = vsub.f32 %v4441_v20, %v5323_v43  ;;  %v4470_v46 = vand.u32 4294901760, %v1147_v32  ;;  %v1028_v55 = vadd.f32 %v996_v30, %v927_v25  ;;  %v4488_v20 = vld [vmem:[%s3171_s25 + $0x189] sm:$0xff] }
  0xbe   : > { %v707_v11 = vadd.f32 %v675_v63, %v606_v33  ;;  %v979_v44 = vmul.f32 %v4080_v18, %v4456_v57  ;;  %v1080_v14 = vmul.f32 %v4087_v2, %v4459_v6  ;;  %v693_v21 = vmul.f32 %v4031_v42, %v4336_v23  ;;  %v4483_v33 = vld [vmem:[%s3171_s25 + $0x188] sm:$0xff] }
  0xbf   : > { %5432 = vst [vmem:[#allocation39_spill] sm:$0xff] %v4470_v46  ;;  %v522_v5 = vadd.f32 %v490_v45, %v421_v4  ;;  %v1441_v10 = vand.u32 4294901760, %v1440_v26  ;;  %v4479_v54 = vsub.f32 %v1147_v32, %v4470_v46  ;;  %1615 = vmatmul.f32.gmra.mxu1 %v4470_v46  ;;  %v1129_v43 = vadd.f32 %v1097_v51, %v1028_v55  ;;  %v4497_v26 = vld [vmem:[%s3171_s25 + $0x18a] sm:$0xff] }
  0xc0   : > { %v808_v30 = vadd.f32 %v776_v0, %v707_v11  ;;  %v794_v25 = vmul.f32 %v4045_v50, %v4345_v9  ;;  %v271_v4 = vmul.f32 %v3943_v38, %v4213_v34  ;;  %v372_v45 = vmul.f32 %v3999_v47, %v4222_v29 }
  0xc1   : > { %v624_v63 = vadd.f32 %v592_v13, %v522_v5  ;;  %1442 = vmatmul.f32.gmra.mxu2 %v1441_v10  ;;  %v5326_v32 = vand.u32 4294901760, %v4479_v54  ;;  %v1165_v51 = vadd.f32 %v4189_v3, %v1129_v43  ;;  %v473_v13 = vmul.f32 %v3965_v7, %v4225_v58 }
  0xc2   : > { %v910_v0 = vadd.f32 %v878_v1, %v808_v30  ;;  %v896_v11 = vmul.f32 %v4064_v31, %v4483_v33  ;;  %v404_v34 = vadd.f32 %v372_v45, %v271_v4  ;;  %v575_v29 = vmul.f32 %v4015_v48, %v4365_v56  ;;  %v4517_v4 = vld [vmem:[%s3171_s25 + $0xc0] sm:$0xff] }
  0xc3   : > { %v725_v55 = vadd.f32 %v693_v21, %v624_v63  ;;  %v1304_v5 = vsub.f32 %v4479_v54, %v5326_v32  ;;  %v4508_v43 = vand.u32 4294901760, %v1165_v51  ;;  %v997_v58 = vmul.f32 %v4080_v18, %v4488_v20 }
  0xc4   : > { %v1011_v1 = vadd.f32 %v979_v44, %v910_v0  ;;  %v1098_v10 = vmul.f32 %v4087_v2, %v4497_v26  ;;  %v505_v30 = vadd.f32 %v473_v13, %v404_v34  ;;  %v676_v63 = vmul.f32 %v4031_v42, %v4374_v52  ;;  %v4529_v13 = vld [vmem:[%s3171_s25 + $0xc2] sm:$0xff] }
  0xc5   : > { %5433 = vst [vmem:[#allocation40_spill] sm:$0xff] %v4508_v43  ;;  %v826_v21 = vadd.f32 %v794_v25, %v725_v55  ;;  %v1305_v45 = vand.u32 4294901760, %v1304_v5  ;;  %v4520_v32 = vsub.f32 %v1165_v51, %v4508_v43  ;;  %1687 = vmatmul.f32.gmra.mxu3 %v4508_v43  ;;  %v777_v44 = vmul.f32 %v4045_v50, %v4377_v59  ;;  %v4526_v55 = vld [vmem:[%s3171_s25 + $0xc1] sm:$0xff] }
  0xc6   : > { %v1112_v46 = vadd.f32 %v1080_v14, %v1011_v1  ;;  %v607_v0 = vadd.f32 %v575_v29, %v505_v30  ;;  %v289_v34 = vmul.f32 %v3943_v38, %v4251_v24  ;;  %v390_v5 = vmul.f32 %v3999_v47, %v4263_v41 }
  0xc7   : > { %v928_v25 = vadd.f32 %v896_v11, %v826_v21  ;;  %1306 = vmatmul.f32.gmra.mxu0 %v1305_v45  ;;  %v5329_v14 = vand.u32 4294901760, %v4520_v32  ;;  %v879_v11 = vmul.f32 %v4064_v31, %v4517_v4  ;;  %v491_v29 = vmul.f32 %v3965_v7, %v4266_v28 }
  0xc8   : > { %v1148_v51 = vadd.f32 %v4189_v3, %v1112_v46  ;;  %v708_v21 = vadd.f32 %v676_v63, %v607_v0  ;;  %v422_v30 = vadd.f32 %v390_v5, %v289_v34  ;;  %v593_v24 = vmul.f32 %v4015_v48, %v4403_v40  ;;  %v2738_v0 = vld [vmem:[%s3171_s25 + $0x198] sm:$0xff] }
  0xc9   : > { %v1029_v1 = vadd.f32 %v997_v58, %v928_v25  ;;  %v1448_v41 = vsub.f32 %v4520_v32, %v5329_v14  ;;  %v980_v46 = vmul.f32 %v4080_v18, %v4526_v55  ;;  %v1081_v28 = vmul.f32 %v4087_v2, %v4529_v13 }
  0xca   : > { %v4546_v45 = vand.u32 4294901760, %v1148_v51  ;;  %v809_v63 = vadd.f32 %v777_v44, %v708_v21  ;;  %v523_v25 = vadd.f32 %v491_v29, %v422_v30  ;;  %v694_v40 = vmul.f32 %v4031_v42, %v4415_v61  ;;  %v2804_v21 = vld [vmem:[%s3171_s25 + $0x19a] sm:$0xff] }
  0xcb   : > { %v1130_v58 = vadd.f32 %v1098_v10, %v1029_v1  ;;  %v1449_v34 = vand.u32 4294901760, %v1448_v41  ;;  %v795_v14 = vmul.f32 %v4045_v50, %v4418_v53  ;;  %v272_v43 = vmul.f32 %v3943_v38, %v4293_v16  ;;  %v2771_v1 = vld [vmem:[%s3171_s25 + $0x199] sm:$0xff] }
  0xcc   : > { %v4556_v5 = vsub.f32 %v1148_v51, %v4546_v45  ;;  %1619 = vmatmul.f32.gmra.mxu1 %v4546_v45  ;;  %v911_v44 = vadd.f32 %v879_v11, %v809_v63  ;;  %v625_v29 = vadd.f32 %v593_v24, %v523_v25  ;;  %v373_v61 = vmul.f32 %v3999_v47, %v4304_v12 }
  0xcd   : > { %v1166_v10 = vadd.f32 %v4189_v3, %v1130_v58  ;;  %1450 = vmatmul.f32.gmra.mxu2 %v1449_v34  ;;  %v897_v30 = vmul.f32 %v4064_v31, %v2738_v0  ;;  %v474_v53 = vmul.f32 %v3965_v7, %v4307_v49  ;;  %v576_v16 = vmul.f32 %v4015_v48, %v4445_v27 }
  0xce   : > { %v5339_v51 = vand.u32 4294901760, %v4556_v5  ;;  %v1012_v11 = vadd.f32 %v980_v46, %v911_v44  ;;  %v726_v24 = vadd.f32 %v694_v40, %v625_v29  ;;  %v405_v58 = vadd.f32 %v373_v61, %v272_v43  ;;  %v4588_v40 = vld [vmem:[%s3171_s25 + $0xc8] sm:$0xff] }
  0xcf   : > { %v4574_v41 = vand.u32 4294901760, %v1166_v10  ;;  %v998_v63 = vmul.f32 %v4080_v18, %v2771_v1  ;;  %v1099_v25 = vmul.f32 %v4087_v2, %v2804_v21  ;;  %v677_v49 = vmul.f32 %v4031_v42, %v4456_v57 }
  0xd0   : > { %v1312_v12 = vsub.f32 %v4556_v5, %v5339_v51  ;;  %v1113_v34 = vadd.f32 %v1081_v28, %v1012_v11  ;;  %v827_v43 = vadd.f32 %v795_v14, %v726_v24  ;;  %v506_v46 = vadd.f32 %v474_v53, %v405_v58  ;;  %v4599_v14 = vld [vmem:[%s3171_s25 + $0xc9] sm:$0xff] }
  0xd1   : > { %v4584_v0 = vsub.f32 %v1166_v10, %v4574_v41  ;;  %1691 = vmatmul.f32.gmra.mxu3 %v4574_v41  ;;  %v778_v29 = vmul.f32 %v4045_v50, %v4459_v6  ;;  %v290_v1 = vmul.f32 %v3943_v38, %v4331_v19  ;;  %v391_v21 = vmul.f32 %v3999_v47, %v4336_v23  ;;  %v4602_v53 = vld [vmem:[%s3171_s25 + $0xca] sm:$0xff] }
  0xd2   : > { %v1313_v44 = vand.u32 4294901760, %v1312_v12  ;;  %v1149_v28 = vadd.f32 %v4189_v3, %v1113_v34  ;;  %v929_v61 = vadd.f32 %v897_v30, %v827_v43  ;;  %v608_v11 = vadd.f32 %v576_v16, %v506_v46 }
  0xd3   : > { %v5332_v10 = vand.u32 4294901760, %v4584_v0  ;;  %v880_v24 = vmul.f32 %v4064_v31, %v4588_v40  ;;  %v423_v58 = vadd.f32 %v391_v21, %v290_v1  ;;  %v492_v19 = vmul.f32 %v3965_v7, %v4345_v9  ;;  %v2739_v21 = vld [vmem:[%s3171_s25 + $0x1a0] sm:$0xff] }
  0xd4   : > { %1314 = vmatmul.f32.gmra.mxu0 %v1313_v44  ;;  %v594_v23 = vmul.f32 %v4015_v48, %v4483_v33  ;;  %v4613_v16 = vand.u32 4294901760, %v1149_v28  ;;  %v1030_v12 = vadd.f32 %v998_v63, %v929_v61  ;;  %v709_v34 = vadd.f32 %v677_v49, %v608_v11 }
  0xd5   : > { %v1456_v30 = vsub.f32 %v4584_v0, %v5332_v10  ;;  %v981_v43 = vmul.f32 %v4080_v18, %v4599_v14  ;;  %v1082_v46 = vmul.f32 %v4087_v2, %v4602_v53  ;;  %v524_v44 = vadd.f32 %v492_v19, %v423_v58  ;;  %v2772_v10 = vld [vmem:[%s3171_s25 + $0x1a1] sm:$0xff] }
  0xd6   : > { %v695_v9 = vmul.f32 %v4031_v42, %v4488_v20  ;;  %v4622_v1 = vsub.f32 %v1149_v28, %v4613_v16  ;;  %1623 = vmatmul.f32.gmra.mxu1 %v4613_v16  ;;  %v1131_v63 = vadd.f32 %v1099_v25, %v1030_v12  ;;  %v810_v49 = vadd.f32 %v778_v29, %v709_v34 }
  0xd7   : > { %v1457_v33 = vand.u32 4294901760, %v1456_v30  ;;  %v626_v61 = vadd.f32 %v594_v23, %v524_v44  ;;  %v796_v11 = vmul.f32 %v4045_v50, %v4497_v26  ;;  %v273_v58 = vmul.f32 %v3943_v38, %v4365_v56  ;;  %v2805_v26 = vld [vmem:[%s3171_s25 + $0x1a2] sm:$0xff] }
  0xd8   : > { %v374_v20 = vmul.f32 %v3999_v47, %v4374_v52  ;;  %v5338_v28 = vand.u32 4294901760, %v4622_v1  ;;  %v1167_v19 = vadd.f32 %v4189_v3, %v1131_v63  ;;  %v912_v30 = vadd.f32 %v880_v24, %v810_v49  ;;  %v4649_v63 = vpop.f32.mrf.mxu2 }
  0xd9   : > { %1458 = vmatmul.f32.gmra.mxu2 %v1457_v33  ;;  %v475_v25 = vmul.f32 %v3965_v7, %v4377_v59  ;;  %v727_v29 = vadd.f32 %v695_v9, %v626_v61  ;;  %v898_v23 = vmul.f32 %v4064_v31, %v2739_v21  ;;  %v577_v56 = vmul.f32 %v4015_v48, %v4517_v4 }
  0xda   : > { %v406_v12 = vadd.f32 %v374_v20, %v273_v58  ;;  %v1320_v52 = vsub.f32 %v4622_v1, %v5338_v28  ;;  %v4644_v34 = vand.u32 4294901760, %v1167_v19  ;;  %v1013_v24 = vadd.f32 %v981_v43, %v912_v30  ;;  %v2722_v43 = vld [vmem:[%s3171_s25 + $0xd8] sm:$0xff]  ;;  %v4661_v20 = vpop.f32.mrf.mxu3 }
  0xdb   : > { %v828_v44 = vadd.f32 %v796_v11, %v727_v29  ;;  %v999_v33 = vmul.f32 %v4080_v18, %v2772_v10  ;;  %v678_v9 = vmul.f32 %v4031_v42, %v4526_v55  ;;  %v1100_v61 = vmul.f32 %v4087_v2, %v2805_v26  ;;  %v2755_v30 = vld [vmem:[%s3171_s25 + $0xd9] sm:$0xff] }
  0xdc   : > { %v507_v59 = vadd.f32 %v475_v25, %v406_v12  ;;  %v1321_v49 = vand.u32 4294901760, %v1320_v52  ;;  %v4652_v4 = vsub.f32 %v1167_v19, %v4644_v34  ;;  %v1114_v21 = vadd.f32 %v1082_v46, %v1013_v24  ;;  %1695 = vmatmul.f32.gmra.mxu3 %v4644_v34  ;;  %v2788_v12 = vld [vmem:[%s3171_s25 + $0xda] sm:$0xff] }
  0xdd   : > { %v930_v11 = vadd.f32 %v898_v23, %v828_v44  ;;  %v779_v58 = vmul.f32 %v4045_v50, %v4529_v13  ;;  %v274_v55 = vmul.f32 %v3943_v38, %v4445_v27  ;;  %v375_v25 = vmul.f32 %v3999_v47, %v4456_v57  ;;  %v4679_v47 = vpop.f32.mrf.mxu1 }
  0xde   : > { %v609_v10 = vadd.f32 %v577_v56, %v507_v59  ;;  %1322 = vmatmul.f32.gmra.mxu0 %v1321_v49  ;;  %v5334_v19 = vand.u32 4294901760, %v4652_v4  ;;  %v1150_v46 = vadd.f32 %v4189_v3, %v1114_v21  ;;  %v476_v29 = vmul.f32 %v3965_v7, %v4459_v6  ;;  %v2723_v49 = vld [vmem:[%s3171_s25 + $0xe0] sm:$0xff] }
  0xdf   : > { %v1031_v23 = vadd.f32 %v999_v33, %v930_v11  ;;  %v881_v13 = vmul.f32 %v4064_v31, %v2722_v43  ;;  %v407_v56 = vadd.f32 %v375_v25, %v274_v55  ;;  %v578_v52 = vmul.f32 %v4015_v48, %v4588_v40  ;;  %v4705_v25 = vpop.f32.mrf.mxu0 }
  0xe0   : > { %v710_v26 = vadd.f32 %v678_v9, %v609_v10  ;;  %v1464_v38 = vsub.f32 %v4652_v4, %v5334_v19  ;;  %v4674_v27 = vand.u32 4294901760, %v1150_v46  ;;  %v982_v6 = vmul.f32 %v4080_v18, %v2755_v30  ;;  %v4697_v55 = vpop.f32.mrf.mxu2 }
  0xe1   : > { %v1132_v57 = vadd.f32 %v1100_v61, %v1031_v23  ;;  %v508_v33 = vadd.f32 %v476_v29, %v407_v56  ;;  %v679_v59 = vmul.f32 %v4031_v42, %v4599_v14  ;;  %v1083_v40 = vmul.f32 %v4087_v2, %v2788_v12 }
  0xe2   : > { %v811_v7 = vadd.f32 %v779_v58, %v710_v26  ;;  %v1465_v24 = vand.u32 4294901760, %v1464_v38  ;;  %v4683_v44 = vsub.f32 %v1150_v46, %v4674_v27  ;;  %1627 = vmatmul.f32.gmra.mxu1 %v4674_v27  ;;  %v780_v43 = vmul.f32 %v4045_v50, %v4602_v53  ;;  %v2756_v58 = vld [vmem:[%s3171_s25 + $0xe1] sm:$0xff]  ;;  %v4699_v42 = vpop.f32.mrf.mxu3 }
  0xe3   : > { %v1168_v9 = vadd.f32 %v4189_v3, %v1132_v57  ;;  %v610_v61 = vadd.f32 %v578_v52, %v508_v33  ;;  %v882_v30 = vmul.f32 %v4064_v31, %v2723_v49  ;;  %v2789_v53 = vld [vmem:[%s3171_s25 + $0xe2] sm:$0xff] }
  0xe4   : > { %v913_v48 = vadd.f32 %v881_v13, %v811_v7  ;;  %1466 = vmatmul.f32.gmra.mxu2 %v1465_v24  ;;  %v5337_v21 = vand.u32 4294901760, %v4683_v44  ;;  %v983_v13 = vmul.f32 %v4080_v18, %v2756_v58  ;;  %v1084_v52 = vmul.f32 %v4087_v2, %v2789_v53 }
  0xe5   : > { %v4694_v11 = vand.u32 4294901760, %v1168_v9  ;;  %v711_v46 = vadd.f32 %v679_v59, %v610_v61  ;;  %v4713_v38 = vpop.f32.mrf.mxu1  ;;  %v5434_v2 = vand.u32 4294901760, %v3615_v15 }
  0xe6   : > { %v1014_v10 = vadd.f32 %v982_v6, %v913_v48  ;;  %v1328_v14 = vsub.f32 %v4683_v44, %v5337_v21 }
  0xe7   : > { %v4708_v29 = vsub.f32 %v1168_v9, %v4694_v11  ;;  %1699 = vmatmul.f32.gmra.mxu3 %v4694_v11  ;;  %v812_v26 = vadd.f32 %v780_v43, %v711_v46  ;;  %v4735_v49 = vpop.f32.mrf.mxu0 }
  0xe8   : > { %v1115_v50 = vadd.f32 %v1083_v40, %v1014_v10  ;;  %v1329_v23 = vand.u32 4294901760, %v1328_v14  ;;  %v4732_v48 = vpop.f32.mrf.mxu2 }
  0xe9   : > { %v5333_v12 = vand.u32 4294901760, %v4708_v29  ;;  %v914_v31 = vadd.f32 %v882_v30, %v812_v26  ;;  %v5435_v30 = vand.u32 4294901760, %v3697_v36 }
  0xea   : > { %v1151_v56 = vadd.f32 %v4189_v3, %v1115_v50  ;;  %1330 = vmatmul.f32.gmra.mxu0 %v1329_v23  ;;  %v4727_v33 = vpop.f32.mrf.mxu3 }
  0xeb   : > { %v1472_v57 = vsub.f32 %v4708_v29, %v5333_v12  ;;  %v1015_v6 = vadd.f32 %v983_v13, %v914_v31  ;;  %v5456_v12 = vld [vmem:[#allocation20_spill] sm:$0xff] }
  0xec   : > { %v4721_v7 = vand.u32 4294901760, %v1151_v56 }
  0xed   : > { %v1473_v24 = vand.u32 4294901760, %v1472_v57  ;;  %v1116_v59 = vadd.f32 %v1084_v52, %v1015_v6  ;;  %v4742_v10 = vpop.f32.mrf.mxu1 }
  0xee   : > { %v4724_v18 = vsub.f32 %v1151_v56, %v4721_v7  ;;  %1631 = vmatmul.f32.gmra.mxu1 %v4721_v7 }
  0xef   : > { %1474 = vmatmul.f32.gmra.mxu2 %v1473_v24  ;;  %1947 = vmatmul.f32.vlgmr.msrb.gmra.mxu3 %v5434_v2  ;;  %v1152_v40 = vadd.f32 %v4189_v3, %v1116_v59  ;;  %v4759_v26 = vpop.f32.mrf.mxu0  ;;  %v5440_v24 = vand.u32 4294901760, %v3889_v22 }
  0xf0   : > { %v5336_v9 = vand.u32 4294901760, %v4724_v18  ;;  %v4757_v53 = vpop.f32.mrf.mxu2 }
  0xf1   : > { %v4740_v43 = vand.u32 4294901760, %v1152_v40 }
  0xf2   : > { %v1336_v61 = vsub.f32 %v4724_v18, %v5336_v9  ;;  %v4748_v46 = vpop.f32.mrf.mxu3 }
  0xf3   : > { %v4745_v14 = vsub.f32 %v1152_v40, %v4740_v43 }
  0xf4   : > { %v1337_v58 = vand.u32 4294901760, %v1336_v61 }
  0xf5   : > { %v5335_v3 = vand.u32 4294901760, %v4745_v14  ;;  %v4761_v13 = vpop.f32.mrf.mxu1 }
  0xf6   : > { %1338 = vmatmul.f32.gmra.mxu0 %v1337_v58  ;;  %1635 = vmatmul.f32.gmra.mxu1 %v4740_v43 }
  0xf7   : > { %1753 = vmatmul.f32.vlgmr.msrb.gmra.mxu2 %v3615_v15  ;;  %1953 = vmatmul.f32.gmra.mxu3 %v5435_v30  ;;  %v1344_v50 = vsub.f32 %v4745_v14, %v5335_v3  ;;  %v5437_v15 = vand.u32 4294901760, %v3793_v62  ;;  %v4771_v52 = vpop.f32.mrf.mxu0  ;;  %v5447_v30 = vld [vmem:[#allocation14_spill] sm:$0xff] }
  0xf8   : > { %v4769_v31 = vpop.f32.mrf.mxu2 }
  0xf9   : > { %v1345_v23 = vand.u32 4294901760, %v1344_v50  ;;  %5438 = vst [vmem:[#allocation42_spill] sm:$0xff] %v4769_v31 }
  0xfa   : > { %v4764_v56 = vpop.f32.mrf.mxu3 }
  0xfb   : > { %5436 = vst [vmem:[#allocation41_spill] sm:$0xff] %v4764_v56 }
  0xfd   : > { %v4775_v57 = vpop.f32.mrf.mxu1 }
  0xfe   : > { %1346 = vmatmul.f32.gmra.mxu0 %v1345_v23  ;;  %2363 = vmatmul.f32.vlgmr.msrb.gmra.mxu1 %v3598_v8 }
  0xff   : > { %1758 = vmatmul.f32.gmra.mxu2 %v3697_v36  ;;  %1959 = vmatmul.f32.gmra.mxu3 %v5437_v15  ;;  %v4786_v59 = vpop.f32.mrf.mxu0 }
 0x100   : > { %v4784_v36 = vpop.f32.mrf.mxu2 }
 0x101   : > { %5441 = vst [vmem:[#allocation44_spill] sm:$0xff] %v4784_v36 }
 0x102   : > { %v4777_v6 = vpop.f32.mrf.mxu3 }
 0x103   : > { %5439 = vst [vmem:[#allocation43_spill] sm:$0xff] %v4777_v6 }
 0x105   : > { %v4791_v2 = vpop.f32.mrf.mxu1 }
 0x106   : > { %2202 = vmatmul.f32.vlgmr.msrb.gmra.mxu0 %v3598_v8  ;;  %2367 = vmatmul.f32.gmra.mxu1 %v3683_v37  ;;  %v5442_v8 = vand.u32 4294901760, %v3983_v60 }
 0x107   : > { %1763 = vmatmul.f32.gmra.mxu2 %v3793_v62  ;;  %1965 = vmatmul.f32.gmra.mxu3 %v5440_v24 }
 0x10a   : > { %v4793_v40 = vpop.f32.mrf.mxu3  ;;  %v4800_v62 = vpop.f32.mrf.mxu2 }
 0x10b   : > { %5443 = vst [vmem:[#allocation45_spill] sm:$0xff] %v4793_v40  ;;  %v4802_v61 = vpop.f32.mrf.mxu0 }
 0x10c   : > { %5445 = vst [vmem:[#allocation46_spill] sm:$0xff] %v4800_v62 }
 0x10e   : > { %2206 = vmatmul.f32.gmra.mxu0 %v3683_v37  ;;  %2371 = vmatmul.f32.gmra.mxu1 %v3777_v17  ;;  %v5444_v37 = vand.u32 4294901760, %v4097_v39 }
 0x10f   : > { %1768 = vmatmul.f32.gmra.mxu2 %v3889_v22  ;;  %1971 = vmatmul.f32.gmra.mxu3 %v5442_v8  ;;  %v4804_v22 = vpop.f32.mrf.mxu1  ;;  %v5452_v8 = vld [vmem:[#allocation11_spill] sm:$0xff] }
 0x112   : > { %v4806_v58 = vpop.f32.mrf.mxu3 }
 0x113   : > { %5446 = vst [vmem:[#allocation47_spill] sm:$0xff] %v4806_v58 }
 0x115   : > { %v4815_v23 = vpop.f32.mrf.mxu0 }
 0x116   : > { %2210 = vmatmul.f32.gmra.mxu0 %v3777_v17  ;;  %2375 = vmatmul.f32.gmra.mxu1 %v3874_v35  ;;  %v5448_v17 = vld [vmem:[#allocation16_spill] sm:$0xff] }
 0x117   : > { %1773 = vmatmul.f32.gmra.mxu2 %v3983_v60  ;;  %1977 = vmatmul.f32.gmra.mxu3 %v5444_v37  ;;  %v5449_v50 = vand.u32 4294901760, %v5448_v17  ;;  %v4813_v60 = vpop.f32.mrf.mxu2 }
 0x118   : > { %5450 = vst [vmem:[#allocation14_spill] sm:$0xff] %v4813_v60 }
 0x11a   : > { %v4817_v15 = vpop.f32.mrf.mxu1  ;;  %v4819_v24 = vpop.f32.mrf.mxu3 }
 0x11b   : > { %5451 = vst [vmem:[#allocation16_spill] sm:$0xff] %v4819_v24 }
 0x11e   : > { %2214 = vmatmul.f32.gmra.mxu0 %v3874_v35  ;;  %2379 = vmatmul.f32.gmra.mxu1 %v5447_v30  ;;  %v5453_v35 = vld [vmem:[#allocation22_spill] sm:$0xff] }
 0x11f   : > { %1778 = vmatmul.f32.gmra.mxu2 %v4097_v39  ;;  %1983 = vmatmul.f32.gmra.mxu3 %v5449_v50  ;;  %v5454_v37 = vand.u32 4294901760, %v5453_v35 }
 0x121   : > { %v4826_v39 = vpop.f32.mrf.mxu2 }
 0x122   : > { %5455 = vst [vmem:[#allocation11_spill] sm:$0xff] %v4826_v39  ;;  %v4828_v50 = vpop.f32.mrf.mxu0 }
 0x125   : > { %v4832_v19 = vpop.f32.mrf.mxu1  ;;  %v4834_v3 = vpop.f32.mrf.mxu3 }
 0x126   : > { %2218 = vmatmul.f32.gmra.mxu0 %v5447_v30  ;;  %2383 = vmatmul.f32.gmra.mxu1 %v5452_v8  ;;  %5457 = vst [vmem:[#allocation22_spill] sm:$0xff] %v4834_v3  ;;  %v5458_v30 = vld [vmem:[#allocation32_spill] sm:$0xff] }
 0x127   : > { %1783 = vmatmul.f32.gmra.mxu2 %v5448_v17  ;;  %1989 = vmatmul.f32.gmra.mxu3 %v5454_v37  ;;  %v5459_v9 = vand.u32 4294901760, %v5458_v30  ;;  %v5460_v17 = vld [vmem:[#allocation19_spill] sm:$0xff] }
 0x12c   : > { %v4843_v21 = vpop.f32.mrf.mxu0 }
 0x12d   : > { %v4841_v37 = vpop.f32.mrf.mxu2 }
 0x12e   : > { %2222 = vmatmul.f32.gmra.mxu0 %v5452_v8  ;;  %2387 = vmatmul.f32.gmra.mxu1 %v5456_v12  ;;  %5461 = vst [vmem:[#allocation20_spill] sm:$0xff] %v4841_v37  ;;  %v5462_v8 = vld [vmem:[#allocation36_spill] sm:$0xff] }
 0x12f   : > { %1788 = vmatmul.f32.gmra.mxu2 %v5453_v35  ;;  %1995 = vmatmul.f32.gmra.mxu3 %v5459_v9  ;;  %v5463_v28 = vand.u32 4294901760, %v5462_v8  ;;  %v5465_v9 = vld [vmem:[#allocation31_spill] sm:$0xff]  ;;  %v5467_v35 = vand.u32 4294901760, %v4479_v54 }
 0x131   : > { %v4848_v51 = vpop.f32.mrf.mxu1  ;;  %v4850_v3 = vpop.f32.mrf.mxu3 }
 0x132   : > { %5464 = vst [vmem:[#allocation32_spill] sm:$0xff] %v4850_v3  ;;  %v5469_v3 = vld [vmem:[#allocation35_spill] sm:$0xff] }
 0x136   : > { %2226 = vmatmul.f32.gmra.mxu0 %v5456_v12  ;;  %2391 = vmatmul.f32.gmra.mxu1 %v5460_v17 }
 0x137   : > { %1793 = vmatmul.f32.gmra.mxu2 %v5458_v30  ;;  %2001 = vmatmul.f32.gmra.mxu3 %v5463_v28 }
 0x139   : > { %v4855_v12 = vpop.f32.mrf.mxu2  ;;  %v4859_v37 = vpop.f32.mrf.mxu0 }
 0x13a   : > { %5466 = vst [vmem:[#allocation19_spill] sm:$0xff] %v4855_v12 }
 0x13c   : > { %v4861_v30 = vpop.f32.mrf.mxu1  ;;  %v4863_v28 = vpop.f32.mrf.mxu3 }
 0x13d   : > { %5468 = vst [vmem:[#allocation36_spill] sm:$0xff] %v4863_v28  ;;  %v5473_v28 = vld [vmem:[#allocation39_spill] sm:$0xff] }
 0x13e   : > { %2230 = vmatmul.f32.gmra.mxu0 %v5460_v17  ;;  %2395 = vmatmul.f32.gmra.mxu1 %v5465_v9  ;;  %v5470_v17 = vand.u32 4294901760, %v4556_v5 }
 0x13f   : > { %1798 = vmatmul.f32.gmra.mxu2 %v5462_v8  ;;  %2007 = vmatmul.f32.gmra.mxu3 %v5467_v35 }
 0x144   : > { %v4870_v8 = vpop.f32.mrf.mxu2  ;;  %v4872_v12 = vpop.f32.mrf.mxu0 }
 0x145   : > { %5471 = vst [vmem:[#allocation31_spill] sm:$0xff] %v4870_v8 }
 0x146   : > { %2234 = vmatmul.f32.gmra.mxu0 %v5465_v9  ;;  %2399 = vmatmul.f32.gmra.mxu1 %v5469_v3  ;;  %v5474_v9 = vand.u32 4294901760, %v4622_v1 }
 0x147   : > { %1803 = vmatmul.f32.gmra.mxu2 %v4479_v54  ;;  %2013 = vmatmul.f32.gmra.mxu3 %v5470_v17 }
 0x148   : > { %v4876_v24 = vpop.f32.mrf.mxu3 }
 0x149   : > { %v4874_v35 = vpop.f32.mrf.mxu1  ;;  %5472 = vst [vmem:[#allocation35_spill] sm:$0xff] %v4876_v24 }
 0x14e   : > { %2238 = vmatmul.f32.gmra.mxu0 %v5469_v3  ;;  %2403 = vmatmul.f32.gmra.mxu1 %v5473_v28  ;;  %v5477_v3 = vand.u32 4294901760, %v4683_v44 }
 0x14f   : > { %1808 = vmatmul.f32.gmra.mxu2 %v4556_v5  ;;  %2019 = vmatmul.f32.gmra.mxu3 %v5474_v9 }
 0x150   : > { %v4883_v54 = vpop.f32.mrf.mxu2 }
 0x151   : > { %5475 = vst [vmem:[#allocation39_spill] sm:$0xff] %v4883_v54  ;;  %v4885_v17 = vpop.f32.mrf.mxu0 }
 0x153   : > { %v4889_v8 = vpop.f32.mrf.mxu1 }
 0x154   : > { %v4891_v24 = vpop.f32.mrf.mxu3 }
 0x155   : > { %5476 = vst [vmem:[#allocation48_spill] sm:$0xff] %v4891_v24 }
 0x156   : > { %2242 = vmatmul.f32.gmra.mxu0 %v5473_v28  ;;  %2407 = vmatmul.f32.gmra.mxu1 %v4546_v45  ;;  %v5479_v28 = vand.u32 4294901760, %v4724_v18 }
 0x157   : > { %1813 = vmatmul.f32.gmra.mxu2 %v4622_v1  ;;  %2025 = vmatmul.f32.gmra.mxu3 %v5477_v3 }
 0x15b   : > { %v4900_v9 = vpop.f32.mrf.mxu0 }
 0x15c   : > { %v4897_v5 = vpop.f32.mrf.mxu2 }
 0x15d   : > { %5478 = vst [vmem:[#allocation49_spill] sm:$0xff] %v4897_v5 }
 0x15e   : > { %2246 = vmatmul.f32.gmra.mxu0 %v4546_v45  ;;  %2411 = vmatmul.f32.gmra.mxu1 %v4613_v16  ;;  %v4912_v45 = vld [vmem:[%s5186_s4] ss:$0 sm:$0xff] }
 0x15f   : > { %1818 = vmatmul.f32.gmra.mxu2 %v4683_v44  ;;  %2031 = vmatmul.f32.gmra.mxu3 %v5479_v28  ;;  %v4905_v54 = vpop.f32.mrf.mxu1  ;;  %v1696_v24 = vpop.f32.mrf.mxu3  ;;  %v5480_v44 = vand.u32 4294901760, %v4745_v14 }
 0x166   : > { %2250 = vmatmul.f32.gmra.mxu0 %v4613_v16  ;;  %2415 = vmatmul.f32.gmra.mxu1 %v4674_v27 }
 0x167   : > { %1823 = vmatmul.f32.gmra.mxu2 %v4724_v18  ;;  %v1467_v1 = vpop.f32.mrf.mxu2  ;;  %2037 = vmatmul.f32.gmra.mxu3 %v5480_v44  ;;  %v4917_v3 = vpop.f32.mrf.mxu0  ;;  %v5482_v18 = vld [vmem:[#allocation24_spill] sm:$0xff] }
 0x168   : > { %v1468_v28 = vadd.f32 %v4912_v45, %v1467_v1  ;;  %v5483_v58 = vand.u32 4294901760, %v5482_v18 }
 0x16a   : > { %v4920_v5 = vadd.f32 %v1696_v24, %v1468_v28  ;;  %v1700_v39 = vpop.f32.mrf.mxu3 }
 0x16b   : > { %v4922_v16 = vpop.f32.mrf.mxu1 }
 0x16c   : > { %5481 = vst [vmem:[#allocation50_spill] sm:$0xff] %v4920_v5 }
 0x16e   : > { %2254 = vmatmul.f32.gmra.mxu0 %v4674_v27  ;;  %2419 = vmatmul.f32.gmra.mxu1 %v4721_v7  ;;  %v1228_v27 = vadd.f32 %v4912_v45, %v4705_v25  ;;  %v1236_v25 = vadd.f32 %v4912_v45, %v4735_v49  ;;  %v5490_v49 = vld [vmem:[#allocation25_spill] sm:$0xff] }
 0x16f   : > { %1828 = vmatmul.f32.gmra.mxu2 %v4745_v14  ;;  %2043 = vmatmul.f32.gmra.mxu3 %v5483_v58  ;;  %v5485_v14 = vld [vmem:[#allocation26_spill] sm:$0xff] }
 0x170   : > { %v5486_v58 = vand.u32 4294901760, %v5485_v14  ;;  %v1577_v62 = vadd.f32 %v4679_v47, %v1228_v27 }
 0x172   : > { %v1475_v44 = vpop.f32.mrf.mxu2  ;;  %v1948_v24 = vpop.f32.mrf.mxu3 }
 0x173   : > { %v4929_v60 = vpop.f32.mrf.mxu0  ;;  %v1476_v40 = vadd.f32 %v4912_v45, %v1475_v44  ;;  %v4932_v1 = vpop.f32.mrf.mxu1 }
 0x175   : > { %v4935_v28 = vadd.f32 %v1700_v39, %v1476_v40  ;;  %v5487_v39 = vld [vmem:[#allocation23_spill] sm:$0xff] }
 0x176   : > { %2258 = vmatmul.f32.gmra.mxu0 %v4721_v7  ;;  %2423 = vmatmul.f32.gmra.mxu1 %v4740_v43 }
 0x177   : > { %5484 = vst [vmem:[#allocation24_spill] sm:$0xff] %v4935_v28  ;;  %1833 = vmatmul.f32.gmra.mxu2 %v5482_v18  ;;  %2049 = vmatmul.f32.gmra.mxu3 %v5486_v58  ;;  %v5488_v58 = vld [vmem:[#allocation28_spill] sm:$0xff] }
 0x178   : > { %v5489_v28 = vand.u32 4294901760, %v5488_v58 }
 0x17a   : > { %v1754_v5 = vpop.f32.mrf.mxu2  ;;  %v1954_v7 = vpop.f32.mrf.mxu3 }
 0x17b   : > { %v4943_v44 = vpop.f32.mrf.mxu0  ;;  %v2364_v6 = vpop.f32.mrf.mxu1  ;;  %v1755_v40 = vadd.f32 %v1754_v5, %v1577_v62  ;;  %v1581_v62 = vadd.f32 %v4713_v38, %v1236_v25  ;;  %v5491_v38 = vld [vmem:[#allocation5_spill] sm:$0xff] }
 0x17d   : > { %v1949_v18 = vadd.f32 %v1948_v24, %v1755_v40  ;;  %v1244_v24 = vadd.f32 %v4912_v45, %v4759_v26 }
 0x17e   : > { %2262 = vmatmul.f32.gmra.mxu0 %v4740_v43  ;;  %2427 = vmatmul.f32.gmra.mxu1 %v5487_v39 }
 0x17f   : > { %1838 = vmatmul.f32.gmra.mxu2 %v5485_v14  ;;  %2055 = vmatmul.f32.gmra.mxu3 %v5489_v28  ;;  %v5492_v14 = vand.u32 4294901760, %v5491_v38 }
 0x182   : > { %v1759_v27 = vpop.f32.mrf.mxu2  ;;  %v1960_v36 = vpop.f32.mrf.mxu3 }
 0x183   : > { %v2203_v47 = vpop.f32.mrf.mxu0  ;;  %v2368_v43 = vpop.f32.mrf.mxu1  ;;  %v1760_v56 = vadd.f32 %v1759_v27, %v1581_v62  ;;  %v5493_v62 = vld [vmem:[#allocation27_spill] sm:$0xff] }
 0x184   : > { %v2204_v5 = vadd.f32 %v2203_v47, %v1949_v18 }
 0x185   : > { %v1955_v28 = vadd.f32 %v1954_v7, %v1760_v56  ;;  %v1252_v56 = vadd.f32 %v4912_v45, %v4771_v52  ;;  %v5494_v7 = vld [vmem:[#allocation6_spill] sm:$0xff]  ;;  %v5496_v52 = vld [vmem:[#allocation8_spill] sm:$0xff] }
 0x186   : > { %v2365_v31 = vadd.f32 %v2364_v6, %v2204_v5  ;;  %2266 = vmatmul.f32.gmra.mxu0 %v5487_v39  ;;  %2431 = vmatmul.f32.gmra.mxu1 %v5490_v49  ;;  %v1585_v39 = vadd.f32 %v4742_v10, %v1244_v24 }
 0x187   : > { %1843 = vmatmul.f32.gmra.mxu2 %v5488_v58  ;;  %2061 = vmatmul.f32.gmra.mxu3 %v5492_v14  ;;  %v5495_v58 = vand.u32 4294901760, %v5494_v7  ;;  %v1589_v24 = vadd.f32 %v4761_v13, %v1252_v56 }
 0x188   : > { %2491 = vst [vmem:[%s4961_s8] sm:$0xff] %v2365_v31 }
 0x18a   : > { %v1764_v6 = vpop.f32.mrf.mxu2  ;;  %v1966_v47 = vpop.f32.mrf.mxu3 }
 0x18b   : > { %v2207_v40 = vpop.f32.mrf.mxu0  ;;  %v2372_v18 = vpop.f32.mrf.mxu1  ;;  %v1765_v27 = vadd.f32 %v1764_v6, %v1585_v39  ;;  %v5497_v6 = vld [vmem:[#allocation7_spill] sm:$0xff] }
 0x18c   : > { %v2208_v25 = vadd.f32 %v2207_v40, %v1955_v28  ;;  %v5498_v39 = vand.u32 4294901760, %v5497_v6 }
 0x18d   : > { %v1961_v31 = vadd.f32 %v1960_v36, %v1765_v27  ;;  %v1260_v36 = vadd.f32 %v4912_v45, %v4786_v59  ;;  %v5499_v59 = vld [vmem:[#allocation10_spill] sm:$0xff] }
 0x18e   : > { %v2369_v26 = vadd.f32 %v2368_v43, %v2208_v25  ;;  %2270 = vmatmul.f32.gmra.mxu0 %v5490_v49  ;;  %2435 = vmatmul.f32.gmra.mxu1 %v5493_v62 }
 0x18f   : > { %1848 = vmatmul.f32.gmra.mxu2 %v5491_v38  ;;  %2067 = vmatmul.f32.gmra.mxu3 %v5495_v58  ;;  %v1593_v27 = vadd.f32 %v4775_v57, %v1260_v36  ;;  %v5500_v58 = vld [vmem:[#allocation15_spill] sm:$0xff] }
 0x190   : > { %2492 = vst [vmem:[%s4961_s8 + $0x8] sm:$0xff] %v2369_v26 }
 0x192   : > { %v1769_v5 = vpop.f32.mrf.mxu2  ;;  %v1972_v49 = vpop.f32.mrf.mxu3 }
 0x193   : > { %v2211_v10 = vpop.f32.mrf.mxu0  ;;  %v2376_v28 = vpop.f32.mrf.mxu1  ;;  %v1770_v14 = vadd.f32 %v1769_v5, %v1589_v24 }
 0x194   : > { %v2212_v43 = vadd.f32 %v2211_v10, %v1961_v31  ;;  %v5501_v10 = vand.u32 4294901760, %v5500_v58 }
 0x195   : > { %v1967_v38 = vadd.f32 %v1966_v47, %v1770_v14  ;;  %v1268_v47 = vadd.f32 %v4912_v45, %v4802_v61  ;;  %v5502_v61 = vld [vmem:[#allocation12_spill] sm:$0xff] }
 0x196   : > { %v2373_v40 = vadd.f32 %v2372_v18, %v2212_v43  ;;  %2274 = vmatmul.f32.gmra.mxu0 %v5493_v62  ;;  %2439 = vmatmul.f32.gmra.mxu1 %v5496_v52 }
 0x197   : > { %1853 = vmatmul.f32.gmra.mxu2 %v5494_v7  ;;  %2073 = vmatmul.f32.gmra.mxu3 %v5498_v39  ;;  %v1597_v24 = vadd.f32 %v4791_v2, %v1268_v47 }
 0x198   : > { %2493 = vst [vmem:[%s4961_s8 + $0x10] sm:$0xff] %v2373_v40 }
 0x19a   : > { %v1774_v25 = vpop.f32.mrf.mxu2  ;;  %v1978_v62 = vpop.f32.mrf.mxu3 }
 0x19b   : > { %v2215_v13 = vpop.f32.mrf.mxu0  ;;  %v2380_v26 = vpop.f32.mrf.mxu1  ;;  %v1775_v56 = vadd.f32 %v1774_v25, %v1593_v27 }
 0x19c   : > { %v2216_v18 = vadd.f32 %v2215_v13, %v1967_v38  ;;  %v5503_v38 = vld [vmem:[#allocation13_spill] sm:$0xff] }
 0x19d   : > { %v1973_v7 = vadd.f32 %v1972_v49, %v1775_v56  ;;  %v1276_v49 = vadd.f32 %v4912_v45, %v4815_v23  ;;  %v5505_v23 = vld [vmem:[#allocation9_spill] sm:$0xff] }
 0x19e   : > { %v2377_v31 = vadd.f32 %v2376_v28, %v2216_v18  ;;  %2278 = vmatmul.f32.gmra.mxu0 %v5496_v52  ;;  %2443 = vmatmul.f32.gmra.mxu1 %v5499_v59 }
 0x19f   : > { %1858 = vmatmul.f32.gmra.mxu2 %v5497_v6  ;;  %2079 = vmatmul.f32.gmra.mxu3 %v5501_v10  ;;  %v5504_v6 = vand.u32 4294901760, %v5503_v38  ;;  %v1601_v13 = vadd.f32 %v4804_v22, %v1276_v49 }
 0x1a0   : > { %2494 = vst [vmem:[%s4961_s8 + $0x18] sm:$0xff] %v2377_v31 }
 0x1a2   : > { %v1779_v5 = vpop.f32.mrf.mxu2  ;;  %v1984_v14 = vpop.f32.mrf.mxu3 }
 0x1a3   : > { %v2219_v57 = vpop.f32.mrf.mxu0  ;;  %v2384_v28 = vpop.f32.mrf.mxu1  ;;  %v1780_v40 = vadd.f32 %v1779_v5, %v1597_v24 }
 0x1a4   : > { %v2220_v43 = vadd.f32 %v2219_v57, %v1973_v7 }
 0x1a5   : > { %v1979_v36 = vadd.f32 %v1978_v62, %v1780_v40  ;;  %v1284_v62 = vadd.f32 %v4912_v45, %v4828_v50  ;;  %v5508_v50 = vld [vmem:[#allocation17_spill] sm:$0xff]  ;;  %v5509_v40 = vld [vmem:[#allocation30_spill] sm:$0xff] }
 0x1a6   : > { %v2381_v52 = vadd.f32 %v2380_v26, %v2220_v43  ;;  %2282 = vmatmul.f32.gmra.mxu0 %v5499_v59  ;;  %2447 = vmatmul.f32.gmra.mxu1 %v5502_v61  ;;  %v5506_v59 = vld [vmem:[#allocation18_spill] sm:$0xff] }
 0x1a7   : > { %1863 = vmatmul.f32.gmra.mxu2 %v5500_v58  ;;  %2085 = vmatmul.f32.gmra.mxu3 %v5504_v6  ;;  %v5507_v47 = vand.u32 4294901760, %v5506_v59  ;;  %v1605_v58 = vadd.f32 %v4817_v15, %v1284_v62 }
 0x1a8   : > { %2495 = vst [vmem:[%s4961_s8 + $0x20] sm:$0xff] %v2381_v52  ;;  %v5510_v52 = vand.u32 4294901760, %v5509_v40 }
 0x1aa   : > { %v1784_v39 = vpop.f32.mrf.mxu2  ;;  %v1990_v18 = vpop.f32.mrf.mxu3 }
 0x1ab   : > { %v2223_v2 = vpop.f32.mrf.mxu0  ;;  %v2388_v27 = vpop.f32.mrf.mxu1  ;;  %v1785_v26 = vadd.f32 %v1784_v39, %v1601_v13  ;;  %v1300_v13 = vadd.f32 %v4912_v45, %v4859_v37  ;;  %v5514_v37 = vld [vmem:[#allocation29_spill] sm:$0xff] }
 0x1ac   : > { %v2224_v25 = vadd.f32 %v2223_v2, %v1979_v36 }
 0x1ad   : > { %v1985_v31 = vadd.f32 %v1984_v14, %v1785_v26 }
 0x1ae   : > { %v2385_v56 = vadd.f32 %v2384_v28, %v2224_v25  ;;  %2286 = vmatmul.f32.gmra.mxu0 %v5502_v61  ;;  %2451 = vmatmul.f32.gmra.mxu1 %v5505_v23  ;;  %v1292_v28 = vadd.f32 %v4912_v45, %v4843_v21  ;;  %v5511_v21 = vld [vmem:[#allocation21_spill] sm:$0xff] }
 0x1af   : > { %1868 = vmatmul.f32.gmra.mxu2 %v5503_v38  ;;  %2091 = vmatmul.f32.gmra.mxu3 %v5507_v47 }
 0x1b0   : > { %2496 = vst [vmem:[%s4961_s8 + $0x28] sm:$0xff] %v2385_v56  ;;  %v1609_v49 = vadd.f32 %v4832_v19, %v1292_v28  ;;  %v1613_v56 = vadd.f32 %v4848_v51, %v1300_v13 }
 0x1b2   : > { %v1789_v7 = vpop.f32.mrf.mxu2  ;;  %v1996_v5 = vpop.f32.mrf.mxu3 }
 0x1b3   : > { %v2227_v22 = vpop.f32.mrf.mxu0  ;;  %v2392_v57 = vpop.f32.mrf.mxu1  ;;  %v1790_v24 = vadd.f32 %v1789_v7, %v1605_v58  ;;  %v5515_v58 = vld [vmem:[#allocation38_spill] sm:$0xff] }
 0x1b4   : > { %v2228_v10 = vadd.f32 %v2227_v22, %v1985_v31  ;;  %v1308_v22 = vadd.f32 %v4912_v45, %v4872_v12  ;;  %v5517_v12 = vld [vmem:[#allocation33_spill] sm:$0xff] }
 0x1b5   : > { %v1991_v14 = vadd.f32 %v1990_v18, %v1790_v24 }
 0x1b6   : > { %v2389_v43 = vadd.f32 %v2388_v27, %v2228_v10  ;;  %2290 = vmatmul.f32.gmra.mxu0 %v5505_v23  ;;  %2455 = vmatmul.f32.gmra.mxu1 %v5508_v50  ;;  %v5512_v27 = vld [vmem:[#allocation34_spill] sm:$0xff]  ;;  %v5516_v10 = vand.u32 4294901760, %v5515_v58 }
 0x1b7   : > { %1873 = vmatmul.f32.gmra.mxu2 %v5506_v59  ;;  %2097 = vmatmul.f32.gmra.mxu3 %v5510_v52  ;;  %v5513_v18 = vand.u32 4294901760, %v5512_v27 }
 0x1b8   : > { %2497 = vst [vmem:[%s4961_s8 + $0x30] sm:$0xff] %v2389_v43 }
 0x1ba   : > { %v1794_v61 = vpop.f32.mrf.mxu2  ;;  %v2002_v6 = vpop.f32.mrf.mxu3 }
 0x1bb   : > { %v2231_v15 = vpop.f32.mrf.mxu0  ;;  %v2396_v38 = vpop.f32.mrf.mxu1  ;;  %v1795_v2 = vadd.f32 %v1794_v61, %v1609_v49 }
 0x1bc   : > { %v2232_v36 = vadd.f32 %v2231_v15, %v1991_v14  ;;  %v5518_v15 = vand.u32 4294901760, %v4520_v32 }
 0x1bd   : > { %v1997_v25 = vadd.f32 %v1996_v5, %v1795_v2  ;;  %v1617_v5 = vadd.f32 %v4861_v30, %v1308_v22 }
 0x1be   : > { %v2393_v39 = vadd.f32 %v2392_v57, %v2232_v36  ;;  %2294 = vmatmul.f32.gmra.mxu0 %v5508_v50  ;;  %2459 = vmatmul.f32.gmra.mxu1 %v5511_v21 }
 0x1bf   : > { %1878 = vmatmul.f32.gmra.mxu2 %v5509_v40  ;;  %2103 = vmatmul.f32.gmra.mxu3 %v5513_v18  ;;  %v1316_v40 = vadd.f32 %v4912_v45, %v4885_v17  ;;  %v5519_v17 = vld [vmem:[#allocation37_spill] sm:$0xff] }
 0x1c0   : > { %2498 = vst [vmem:[%s4961_s8 + $0x38] sm:$0xff] %v2393_v39 }
 0x1c1   : > { %v1621_v49 = vadd.f32 %v4874_v35, %v1316_v40 }
 0x1c2   : > { %v1799_v26 = vpop.f32.mrf.mxu2  ;;  %v2008_v31 = vpop.f32.mrf.mxu3 }
 0x1c3   : > { %v2235_v19 = vpop.f32.mrf.mxu0  ;;  %v2400_v62 = vpop.f32.mrf.mxu1  ;;  %v1800_v59 = vadd.f32 %v1799_v26, %v1613_v56 }
 0x1c4   : > { %v2236_v23 = vadd.f32 %v2235_v19, %v1997_v25  ;;  %v5520_v25 = vand.u32 4294901760, %v4584_v0 }
 0x1c5   : > { %v2003_v7 = vadd.f32 %v2002_v6, %v1800_v59  ;;  %v5522_v59 = vand.u32 4294901760, %v4652_v4 }
 0x1c6   : > { %v2397_v47 = vadd.f32 %v2396_v38, %v2236_v23  ;;  %2298 = vmatmul.f32.gmra.mxu0 %v5511_v21  ;;  %2463 = vmatmul.f32.gmra.mxu1 %v5514_v37  ;;  %v1324_v21 = vadd.f32 %v4912_v45, %v4900_v9  ;;  %v5521_v9 = vld [vmem:[#allocation40_spill] sm:$0xff] }
 0x1c7   : > { %1883 = vmatmul.f32.gmra.mxu2 %v5512_v27  ;;  %2109 = vmatmul.f32.gmra.mxu3 %v5516_v10 }
 0x1c8   : > { %2499 = vst [vmem:[%s4961_s8 + $0x40] sm:$0xff] %v2397_v47  ;;  %v1625_v18 = vadd.f32 %v4889_v8, %v1324_v21 }
 0x1ca   : > { %v1804_v57 = vpop.f32.mrf.mxu2  ;;  %v2014_v50 = vpop.f32.mrf.mxu3 }
 0x1cb   : > { %v2239_v51 = vpop.f32.mrf.mxu0  ;;  %v2404_v43 = vpop.f32.mrf.mxu1  ;;  %v1805_v28 = vadd.f32 %v1804_v57, %v1617_v5  ;;  %v5523_v57 = vand.u32 4294901760, %v4708_v29 }
 0x1cc   : > { %v2240_v24 = vadd.f32 %v2239_v51, %v2003_v7 }
 0x1cd   : > { %v2009_v52 = vadd.f32 %v2008_v31, %v1805_v28  ;;  %v1332_v31 = vadd.f32 %v4912_v45, %v4917_v3  ;;  %v1340_v3 = vadd.f32 %v4912_v45, %v4929_v60 }
 0x1ce   : > { %v2401_v14 = vadd.f32 %v2400_v62, %v2240_v24  ;;  %2302 = vmatmul.f32.gmra.mxu0 %v5514_v37  ;;  %2467 = vmatmul.f32.gmra.mxu1 %v5517_v12 }
 0x1cf   : > { %1888 = vmatmul.f32.gmra.mxu2 %v5515_v58  ;;  %2115 = vmatmul.f32.gmra.mxu3 %v5518_v15  ;;  %v1629_v37 = vadd.f32 %v4905_v54, %v1332_v31  ;;  %v1633_v24 = vadd.f32 %v4922_v16, %v1340_v3  ;;  %v5524_v3 = vld [vmem:[#allocation42_spill] sm:$0xff] }
 0x1d0   : > { %2500 = vst [vmem:[%s4961_s8 + $0x48] sm:$0xff] %v2401_v14 }
 0x1d2   : > { %v1809_v61 = vpop.f32.mrf.mxu2  ;;  %v2020_v6 = vpop.f32.mrf.mxu3 }
 0x1d3   : > { %v2243_v30 = vpop.f32.mrf.mxu0  ;;  %v2408_v38 = vpop.f32.mrf.mxu1  ;;  %v1810_v2 = vadd.f32 %v1809_v61, %v1621_v49 }
 0x1d4   : > { %v2244_v36 = vadd.f32 %v2243_v30, %v2009_v52 }
 0x1d5   : > { %v2015_v13 = vadd.f32 %v2014_v50, %v1810_v2 }
 0x1d6   : > { %v2405_v39 = vadd.f32 %v2404_v43, %v2244_v36  ;;  %2306 = vmatmul.f32.gmra.mxu0 %v5517_v12  ;;  %2471 = vmatmul.f32.gmra.mxu1 %v5519_v17 }
 0x1d7   : > { %1893 = vmatmul.f32.gmra.mxu2 %v4520_v32  ;;  %2121 = vmatmul.f32.gmra.mxu3 %v5520_v25 }
 0x1d8   : > { %2501 = vst [vmem:[%s4961_s8 + $0x50] sm:$0xff] %v2405_v39 }
 0x1da   : > { %v1814_v27 = vpop.f32.mrf.mxu2  ;;  %v2026_v56 = vpop.f32.mrf.mxu3 }
 0x1db   : > { %v2247_v35 = vpop.f32.mrf.mxu0  ;;  %v2412_v26 = vpop.f32.mrf.mxu1  ;;  %v1815_v23 = vadd.f32 %v1814_v27, %v1625_v18 }
 0x1dc   : > { %v2248_v19 = vadd.f32 %v2247_v35, %v2015_v13 }
 0x1dd   : > { %v2021_v32 = vadd.f32 %v2020_v6, %v1815_v23 }
 0x1de   : > { %v2409_v62 = vadd.f32 %v2408_v38, %v2248_v19  ;;  %2310 = vmatmul.f32.gmra.mxu0 %v5519_v17  ;;  %2475 = vmatmul.f32.gmra.mxu1 %v5521_v9 }
 0x1df   : > { %1898 = vmatmul.f32.gmra.mxu2 %v4584_v0  ;;  %2127 = vmatmul.f32.gmra.mxu3 %v5522_v59 }
 0x1e0   : > { %2502 = vst [vmem:[%s4961_s8 + $0x58] sm:$0xff] %v2409_v62 }
 0x1e2   : > { %v1819_v47 = vpop.f32.mrf.mxu2  ;;  %v2032_v58 = vpop.f32.mrf.mxu3 }
 0x1e3   : > { %v2251_v8 = vpop.f32.mrf.mxu0  ;;  %v2416_v7 = vpop.f32.mrf.mxu1  ;;  %v1820_v10 = vadd.f32 %v1819_v47, %v1629_v37 }
 0x1e4   : > { %v2252_v22 = vadd.f32 %v2251_v8, %v2021_v32  ;;  %v1380_v8 = vadd.f32 %v4912_v45, %v4757_v53  ;;  %v5525_v53 = vld [vmem:[#allocation41_spill] sm:$0xff] }
 0x1e5   : > { %v2027_v0 = vadd.f32 %v2026_v56, %v1820_v10  ;;  %v1372_v56 = vadd.f32 %v4912_v45, %v4732_v48 }
 0x1e6   : > { %v2413_v51 = vadd.f32 %v2412_v26, %v2252_v22  ;;  %2314 = vmatmul.f32.gmra.mxu0 %v5521_v9  ;;  %2479 = vmatmul.f32.gmra.mxu1 %v4574_v41  ;;  %v1653_v48 = vadd.f32 %v4748_v46, %v1380_v8  ;;  %v5533_v8 = vld [vmem:[#allocation16_spill] sm:$0xff] }
 0x1e7   : > { %1903 = vmatmul.f32.gmra.mxu2 %v4652_v4  ;;  %2133 = vmatmul.f32.gmra.mxu3 %v5523_v57  ;;  %v1348_v4 = vadd.f32 %v4912_v45, %v4943_v44 }
 0x1e8   : > { %2503 = vst [vmem:[%s4961_s8 + $0x60] sm:$0xff] %v2413_v51 }
 0x1e9   : > { %v1637_v16 = vadd.f32 %v4932_v1, %v1348_v4 }
 0x1ea   : > { %v1824_v5 = vpop.f32.mrf.mxu2  ;;  %v2038_v28 = vpop.f32.mrf.mxu3 }
 0x1eb   : > { %v2255_v54 = vpop.f32.mrf.mxu0  ;;  %v2420_v50 = vpop.f32.mrf.mxu1  ;;  %v1825_v14 = vadd.f32 %v1824_v5, %v1633_v24 }
 0x1ec   : > { %v2256_v43 = vadd.f32 %v2255_v54, %v2027_v0  ;;  %v1388_v0 = vadd.f32 %v4912_v45, %v5524_v3 }
 0x1ed   : > { %v2033_v60 = vadd.f32 %v2032_v58, %v1825_v14 }
 0x1ee   : > { %v2417_v12 = vadd.f32 %v2416_v7, %v2256_v43  ;;  %2318 = vmatmul.f32.gmra.mxu0 %v4574_v41  ;;  %2483 = vmatmul.f32.gmra.mxu1 %v4644_v34  ;;  %v1356_v41 = vadd.f32 %v4912_v45, %v4649_v63  ;;  %v1657_v24 = vadd.f32 %v5525_v53, %v1388_v0 }
 0x1ef   : > { %1908 = vmatmul.f32.gmra.mxu2 %v4708_v29 }
 0x1f0   : > { %2504 = vst [vmem:[%s4961_s8 + $0x68] sm:$0xff] %v2417_v12  ;;  %v1641_v6 = vadd.f32 %v4661_v20, %v1356_v41  ;;  %v5526_v12 = vld [vmem:[#allocation44_spill] sm:$0xff] }
 0x1f1   : > { %v1396_v4 = vadd.f32 %v4912_v45, %v5526_v12 }
 0x1f2   : > { %v1829_v52 = vpop.f32.mrf.mxu2  ;;  %v2044_v61 = vpop.f32.mrf.mxu3 }
 0x1f3   : > { %v2259_v40 = vpop.f32.mrf.mxu0  ;;  %v2424_v30 = vpop.f32.mrf.mxu1  ;;  %v1830_v49 = vadd.f32 %v1829_v52, %v1637_v16  ;;  %v5527_v16 = vld [vmem:[#allocation43_spill] sm:$0xff] }
 0x1f4   : > { %v2260_v15 = vadd.f32 %v2259_v40, %v2033_v60 }
 0x1f5   : > { %v2039_v44 = vadd.f32 %v2038_v28, %v1830_v49 }
 0x1f6   : > { %v2421_v36 = vadd.f32 %v2420_v50, %v2260_v15  ;;  %2322 = vmatmul.f32.gmra.mxu0 %v4644_v34  ;;  %2487 = vmatmul.f32.gmra.mxu1 %v4694_v11  ;;  %v1364_v34 = vadd.f32 %v4912_v45, %v4697_v55  ;;  %v1649_v55 = vadd.f32 %v4727_v33, %v1372_v56 }
 0x1f7   : > { %v1661_v15 = vadd.f32 %v5527_v16, %v1396_v4 }
 0x1f8   : > { %2505 = vst [vmem:[%s4961_s8 + $0x70] sm:$0xff] %v2421_v36  ;;  %v1645_v35 = vadd.f32 %v4699_v42, %v1364_v34 }
 0x1fa   : > { %v1834_v38 = vpop.f32.mrf.mxu2  ;;  %v2050_v39 = vpop.f32.mrf.mxu3 }
 0x1fb   : > { %v2263_v29 = vpop.f32.mrf.mxu0  ;;  %v2428_v2 = vpop.f32.mrf.mxu1  ;;  %v1835_v17 = vadd.f32 %v1834_v38, %v1641_v6 }
 0x1fc   : > { %v2264_v1 = vadd.f32 %v2263_v29, %v2039_v44  ;;  %v5528_v44 = vld [vmem:[#allocation46_spill] sm:$0xff] }
 0x1fd   : > { %v2045_v13 = vadd.f32 %v2044_v61, %v1835_v17  ;;  %v1404_v29 = vadd.f32 %v4912_v45, %v5528_v44 }
 0x1fe   : > { %v2425_v21 = vadd.f32 %v2424_v30, %v2264_v1  ;;  %2326 = vmatmul.f32.gmra.mxu0 %v4694_v11 }
 0x200   : > { %2506 = vst [vmem:[%s4961_s8 + $0x78] sm:$0xff] %v2425_v21 }
 0x202   : > { %v1839_v25 = vpop.f32.mrf.mxu2  ;;  %v2056_v20 = vpop.f32.mrf.mxu3 }
 0x203   : > { %v2267_v63 = vpop.f32.mrf.mxu0  ;;  %v2432_v18 = vpop.f32.mrf.mxu1  ;;  %v1840_v19 = vadd.f32 %v1839_v25, %v1645_v35  ;;  %v5530_v25 = vld [vmem:[#allocation14_spill] sm:$0xff] }
 0x204   : > { %v2268_v27 = vadd.f32 %v2267_v63, %v2045_v13  ;;  %v1412_v35 = vadd.f32 %v4912_v45, %v5530_v25 }
 0x205   : > { %v2051_v11 = vadd.f32 %v2050_v39, %v1840_v19  ;;  %v5531_v19 = vld [vmem:[#allocation47_spill] sm:$0xff] }
 0x206   : > { %v2429_v26 = vadd.f32 %v2428_v2, %v2268_v27  ;;  %v5529_v2 = vld [vmem:[#allocation45_spill] sm:$0xff] }
 0x207   : > { %v1665_v39 = vadd.f32 %v5529_v2, %v1404_v29 }
 0x208   : > { %2507 = vst [vmem:[%s4961_s8 + $0x80] sm:$0xff] %v2429_v26  ;;  %v1669_v26 = vadd.f32 %v5531_v19, %v1412_v35 }
 0x20a   : > { %v1844_v62 = vpop.f32.mrf.mxu2  ;;  %v2062_v32 = vpop.f32.mrf.mxu3 }
 0x20b   : > { %v2271_v23 = vpop.f32.mrf.mxu0  ;;  %v2436_v31 = vpop.f32.mrf.mxu1  ;;  %v1845_v42 = vadd.f32 %v1844_v62, %v1649_v55 }
 0x20c   : > { %v2272_v9 = vadd.f32 %v2271_v23, %v2051_v11 }
 0x20d   : > { %v2057_v47 = vadd.f32 %v2056_v20, %v1845_v42 }
 0x20e   : > { %v2433_v59 = vadd.f32 %v2432_v18, %v2272_v9  ;;  %v5532_v9 = vld [vmem:[#allocation11_spill] sm:$0xff] }
 0x210   : > { %2508 = vst [vmem:[%s4961_s8 + $0x88] sm:$0xff] %v2433_v59 }
 0x212   : > { %v1849_v22 = vpop.f32.mrf.mxu2  ;;  %v2068_v10 = vpop.f32.mrf.mxu3 }
 0x213   : > { %v2275_v37 = vpop.f32.mrf.mxu0  ;;  %v2440_v58 = vpop.f32.mrf.mxu1  ;;  %v1850_v33 = vadd.f32 %v1849_v22, %v1653_v48 }
 0x214   : > { %v2276_v7 = vadd.f32 %v2275_v37, %v2057_v47 }
 0x215   : > { %v2063_v57 = vadd.f32 %v2062_v32, %v1850_v33 }
 0x216   : > { %v2437_v51 = vadd.f32 %v2436_v31, %v2276_v7  ;;  %v1420_v31 = vadd.f32 %v4912_v45, %v5532_v9 }
 0x218   : > { %2509 = vst [vmem:[%s4961_s8 + $0x90] sm:$0xff] %v2437_v51  ;;  %v1673_v47 = vadd.f32 %v5533_v8, %v1420_v31 }
 0x21a   : > { %v1854_v5 = vpop.f32.mrf.mxu2  ;;  %v2074_v28 = vpop.f32.mrf.mxu3 }
 0x21b   : > { %v2279_v54 = vpop.f32.mrf.mxu0  ;;  %v2444_v50 = vpop.f32.mrf.mxu1  ;;  %v1855_v46 = vadd.f32 %v1854_v5, %v1657_v24 }
 0x21c   : > { %v2280_v43 = vadd.f32 %v2279_v54, %v2063_v57  ;;  %v5535_v57 = vld [vmem:[#allocation22_spill] sm:$0xff] }
 0x21d   : > { %v2069_v60 = vadd.f32 %v2068_v10, %v1855_v46  ;;  %v5534_v10 = vld [vmem:[#allocation20_spill] sm:$0xff] }
 0x21e   : > { %v2441_v14 = vadd.f32 %v2440_v58, %v2280_v43  ;;  %v1428_v33 = vadd.f32 %v4912_v45, %v5534_v10  ;;  %v5544_v10 = vld [vmem:[#allocation50_spill] sm:$0xff] }
 0x220   : > { %2510 = vst [vmem:[%s4961_s8 + $0x98] sm:$0xff] %v2441_v14  ;;  %v1677_v54 = vadd.f32 %v5535_v57, %v1428_v33 }
 0x222   : > { %v1859_v52 = vpop.f32.mrf.mxu2  ;;  %v2080_v49 = vpop.f32.mrf.mxu3 }
 0x223   : > { %v2283_v40 = vpop.f32.mrf.mxu0  ;;  %v2448_v61 = vpop.f32.mrf.mxu1  ;;  %v1860_v36 = vadd.f32 %v1859_v52, %v1661_v15 }
 0x224   : > { %v2284_v30 = vadd.f32 %v2283_v40, %v2069_v60  ;;  %v5537_v60 = vld [vmem:[#allocation32_spill] sm:$0xff] }
 0x225   : > { %v2075_v38 = vadd.f32 %v2074_v28, %v1860_v36  ;;  %v5536_v28 = vld [vmem:[#allocation19_spill] sm:$0xff] }
 0x226   : > { %v2445_v41 = vadd.f32 %v2444_v50, %v2284_v30  ;;  %v1436_v46 = vadd.f32 %v4912_v45, %v5536_v28 }
 0x228   : > { %2511 = vst [vmem:[%s4961_s8 + $0xa0] sm:$0xff] %v2445_v41  ;;  %v1681_v40 = vadd.f32 %v5537_v60, %v1436_v46 }
 0x22a   : > { %v1864_v1 = vpop.f32.mrf.mxu2  ;;  %v2086_v34 = vpop.f32.mrf.mxu3 }
 0x22b   : > { %v2287_v6 = vpop.f32.mrf.mxu0  ;;  %v2452_v21 = vpop.f32.mrf.mxu1  ;;  %v1865_v13 = vadd.f32 %v1864_v1, %v1665_v39 }
 0x22c   : > { %v2288_v17 = vadd.f32 %v2287_v6, %v2075_v38  ;;  %v5539_v38 = vld [vmem:[#allocation36_spill] sm:$0xff] }
 0x22d   : > { %v2081_v27 = vadd.f32 %v2080_v49, %v1865_v13  ;;  %v5538_v49 = vld [vmem:[#allocation31_spill] sm:$0xff] }
 0x22e   : > { %v2449_v63 = vadd.f32 %v2448_v61, %v2288_v17  ;;  %v1444_v36 = vadd.f32 %v4912_v45, %v5538_v49 }
 0x230   : > { %2512 = vst [vmem:[%s4961_s8 + $0xa8] sm:$0xff] %v2449_v63  ;;  %v1685_v6 = vadd.f32 %v5539_v38, %v1444_v36 }
 0x232   : > { %v1869_v20 = vpop.f32.mrf.mxu2  ;;  %v2092_v23 = vpop.f32.mrf.mxu3 }
 0x233   : > { %v2291_v18 = vpop.f32.mrf.mxu0  ;;  %v2456_v11 = vpop.f32.mrf.mxu1  ;;  %v1870_v62 = vadd.f32 %v1869_v20, %v1669_v26 }
 0x234   : > { %v2292_v56 = vadd.f32 %v2291_v18, %v2081_v27  ;;  %v5541_v27 = vld [vmem:[#allocation35_spill] sm:$0xff] }
 0x235   : > { %v2087_v32 = vadd.f32 %v2086_v34, %v1870_v62  ;;  %v5540_v34 = vld [vmem:[#allocation39_spill] sm:$0xff] }
 0x236   : > { %v2453_v55 = vadd.f32 %v2452_v21, %v2292_v56  ;;  %v1452_v13 = vadd.f32 %v4912_v45, %v5540_v34 }
 0x238   : > { %2513 = vst [vmem:[%s4961_s8 + $0xb0] sm:$0xff] %v2453_v55  ;;  %v1689_v18 = vadd.f32 %v5541_v27, %v1452_v13 }
 0x23a   : > { %v1874_v59 = vpop.f32.mrf.mxu2  ;;  %v2098_v48 = vpop.f32.mrf.mxu3 }
 0x23b   : > { %v2295_v42 = vpop.f32.mrf.mxu0  ;;  %v2460_v22 = vpop.f32.mrf.mxu1  ;;  %v1875_v7 = vadd.f32 %v1874_v59, %v1673_v47 }
 0x23c   : > { %v2296_v37 = vadd.f32 %v2295_v42, %v2087_v32  ;;  %v5543_v32 = vld [vmem:[#allocation48_spill] sm:$0xff] }
 0x23d   : > { %v2093_v51 = vadd.f32 %v2092_v23, %v1875_v7 }
 0x23e   : > { %v2457_v58 = vadd.f32 %v2456_v11, %v2296_v37  ;;  %v5542_v11 = vld [vmem:[#allocation49_spill] sm:$0xff] }
 0x23f   : > { %v1460_v23 = vadd.f32 %v4912_v45, %v5542_v11 }
 0x240   : > { %2514 = vst [vmem:[%s4961_s8 + $0xb8] sm:$0xff] %v2457_v58 }
 0x241   : > { %v1693_v42 = vadd.f32 %v5543_v32, %v1460_v23 }
 0x242   : > { %v1879_v0 = vpop.f32.mrf.mxu2  ;;  %v2104_v24 = vpop.f32.mrf.mxu3 }
 0x243   : > { %v2299_v3 = vpop.f32.mrf.mxu0  ;;  %v2464_v53 = vpop.f32.mrf.mxu1  ;;  %v1880_v43 = vadd.f32 %v1879_v0, %v1677_v54 }
 0x244   : > { %v2300_v5 = vadd.f32 %v2299_v3, %v2093_v51 }
 0x245   : > { %v2099_v14 = vadd.f32 %v2098_v48, %v1880_v43 }
 0x246   : > { %v2461_v50 = vadd.f32 %v2460_v22, %v2300_v5 }
 0x248   : > { %2515 = vst [vmem:[%s4961_s8 + $0xc0] sm:$0xff] %v2461_v50 }
 0x24a   : > { %v1884_v4 = vpop.f32.mrf.mxu2  ;;  %v2110_v15 = vpop.f32.mrf.mxu3 }
 0x24b   : > { %v2303_v12 = vpop.f32.mrf.mxu0  ;;  %v2468_v16 = vpop.f32.mrf.mxu1  ;;  %v1885_v30 = vadd.f32 %v1884_v4, %v1681_v40 }
 0x24c   : > { %v2304_v52 = vadd.f32 %v2303_v12, %v2099_v14 }
 0x24d   : > { %v2105_v41 = vadd.f32 %v2104_v24, %v1885_v30  ;;  %v5545_v24 = vld [vmem:[#allocation24_spill] sm:$0xff] }
 0x24e   : > { %v2465_v61 = vadd.f32 %v2464_v53, %v2304_v52 }
 0x250   : > { %2516 = vst [vmem:[%s4961_s8 + $0xc8] sm:$0xff] %v2465_v61 }
 0x252   : > { %v1889_v29 = vpop.f32.mrf.mxu2  ;;  %v2116_v21 = vpop.f32.mrf.mxu3 }
 0x253   : > { %v2307_v44 = vpop.f32.mrf.mxu0  ;;  %v2472_v2 = vpop.f32.mrf.mxu1  ;;  %v1890_v39 = vadd.f32 %v1889_v29, %v1685_v6 }
 0x254   : > { %v2308_v1 = vadd.f32 %v2307_v44, %v2105_v41 }
 0x255   : > { %v2111_v63 = vadd.f32 %v2110_v15, %v1890_v39 }
 0x256   : > { %v2469_v17 = vadd.f32 %v2468_v16, %v2308_v1 }
 0x258   : > { %2517 = vst [vmem:[%s4961_s8 + $0xd0] sm:$0xff] %v2469_v17 }
 0x25a   : > { %v1894_v35 = vpop.f32.mrf.mxu2  ;;  %v2122_v55 = vpop.f32.mrf.mxu3 }
 0x25b   : > { %v2311_v25 = vpop.f32.mrf.mxu0  ;;  %v2476_v19 = vpop.f32.mrf.mxu1  ;;  %v1895_v26 = vadd.f32 %v1894_v35, %v1689_v18 }
 0x25c   : > { %v2312_v20 = vadd.f32 %v2311_v25, %v2111_v63 }
 0x25d   : > { %v2117_v62 = vadd.f32 %v2116_v21, %v1895_v26 }
 0x25e   : > { %v2473_v56 = vadd.f32 %v2472_v2, %v2312_v20 }
 0x260   : > { %2518 = vst [vmem:[%s4961_s8 + $0xd8] sm:$0xff] %v2473_v56 }
 0x262   : > { %v1899_v31 = vpop.f32.mrf.mxu2  ;;  %v2128_v48 = vpop.f32.mrf.mxu3 }
 0x263   : > { %v2315_v9 = vpop.f32.mrf.mxu0  ;;  %v1900_v8 = vadd.f32 %v1899_v31, %v1693_v42  ;;  %v2480_v37 = vpop.f32.mrf.mxu1 }
 0x264   : > { %v2316_v59 = vadd.f32 %v2315_v9, %v2117_v62 }
 0x265   : > { %v2123_v22 = vadd.f32 %v2122_v55, %v1900_v8 }
 0x266   : > { %v2477_v47 = vadd.f32 %v2476_v19, %v2316_v59 }
 0x268   : > { %2519 = vst [vmem:[%s4961_s8 + $0xe0] sm:$0xff] %v2477_v47 }
 0x26a   : > { %v1904_v58 = vpop.f32.mrf.mxu2  ;;  %v2134_v53 = vpop.f32.mrf.mxu3 }
 0x26b   : > { %v2319_v7 = vpop.f32.mrf.mxu0  ;;  %v1905_v33 = vadd.f32 %v1904_v58, %v5544_v10  ;;  %v2484_v0 = vpop.f32.mrf.mxu1 }
 0x26c   : > { %v2320_v45 = vadd.f32 %v2319_v7, %v2123_v22 }
 0x26d   : > { %v2129_v3 = vadd.f32 %v2128_v48, %v1905_v33 }
 0x26e   : > { %v2481_v51 = vadd.f32 %v2480_v37, %v2320_v45 }
 0x270   : > { %2520 = vst [vmem:[%s4961_s8 + $0xe8] sm:$0xff] %v2481_v51 }
 0x272   : > { %v1909_v54 = vpop.f32.mrf.mxu2 }
 0x273   : > { %v2323_v57 = vpop.f32.mrf.mxu0  ;;  %v1910_v43 = vadd.f32 %v1909_v54, %v5545_v24  ;;  %v2488_v14 = vpop.f32.mrf.mxu1 }
 0x274   : > { %v2324_v5 = vadd.f32 %v2323_v57, %v2129_v3 }
 0x275   : > { %v2135_v28 = vadd.f32 %v2134_v53, %v1910_v43 }
 0x276   : > { %v2485_v50 = vadd.f32 %v2484_v0, %v2324_v5 }
 0x278   : > { %2521 = vst [vmem:[%s4961_s8 + $0xf0] sm:$0xff] %v2485_v50 }
 0x27b   : > { %v2327_v46 = vpop.f32.mrf.mxu0 }
 0x27c   : > { %v2328_v12 = vadd.f32 %v2327_v46, %v2135_v28 }
 0x27e   : > { %v2489_v4 = vadd.f32 %v2488_v14, %v2328_v12 }
 0x280   : > { %2522 = vst [vmem:[%s4961_s8 + $0xf8] sm:$0xff] %v2489_v4 }
 0x281   : > { %2935 = shalt.err (!%p2932_p3)
}
 0x282   : > { %s2972_s6 = smov 128   ;;  %s2973_s7 = smov 8  }
 0x283   : > { %2846 = dma.vmem_to_hbm [thread:$0]  (%p3042_p5), %s2537_s13, 4096, %s2539_s14, %s2524_s22, %s2972_s6, %s2972_s6, %s2973_s7  }
 0x284 PF: > { %p2852_p4 = scmp.ge.s32.totalorder %s2970_s21, 2  ;;  %s2553_s8 = sand.u32 1, %s2958_s18  }
 0x285   : > { %s2554_s9 = scalar_lea.sflag [#allocation3], %s2553_s8 }
 0x286   : > { %p2849_p7 = pnand %p2852_p4, %p3046_p6 }
 0x288   : > { %p2850_p8 = pneg %p2849_p7 }
 0x28a   : > { %2953 = dma.done.wait (%p2850_p8), %s2554_s9, 4096  }
 0x28b   : > { %2955 = vsyncadd (%p2850_p8), %s2554_s9, 4294963200  ;;  %p15_p9 = scmp.ge.s32.totalorder %s3029_s24, 4   ;;  %s5546_s18 = smov %s2962_s19 }
 0x28c   : > { %s5547_s19 = smov %s2966_s20  ;;  %s5548_s20 = smov %s3040_s27 }
 0x28d   : > { %s5549_s21 = smov %s3029_s24  ;;  %17 = sbr.rel (!%p15_p9) target bundleno = 3 (0x3), region = 85 }
 0x292   :  { %2560 = vsyncpa [#allocation3], 1 }
 0x293   :  { %2562 = vsyncpa [#allocation3 + $0x1], 1 }

</bundles_post_ra>
